<compile_context>
chip_gen: v7x
topology: tpu7x:2x2x1
jax: 0.10.0
libtpu: 0.0.40
codegen_flags: <defaults>
</compile_context>

<pallas_src>
import math

import numpy as np
import jax
import jax.numpy as jnp
from jax import lax
from jax.experimental import pallas as pl
from jax.experimental.pallas import tpu as pltpu


def _round_up(x, m):
    return (x + m - 1) // m * m


# ------------------------------------------------------------- VMEM sizing --
def _vmem_caps():
    """Generation-aware VMEM sizing (v5e/v6e: 128 MiB physical, v7x: 64 MiB)."""
    cap = 64 * 1024 * 1024                                # conservative default (v7x-safe)
    try:
        info = pltpu.get_tpu_info()
        cap = int(getattr(info, "vmem_capacity_bytes", cap)) or cap
    except Exception:
        pass
    budget = min(int(cap * 0.40), 64 * 1024 * 1024)       # used to size tile_h
    limit = min(int(cap * 0.75), cap - (8 << 20))         # compiler scoped-VMEM limit
    return budget, limit


def _auto_tile_h(H, wp_pad, cin, cout_pad, vmem_budget):
    """Largest tile_h whose per-step VMEM footprint fits the budget."""
    # Bytes per wide output row (one row of the flattened (h, w) grid):
    #   bf16 halo slab (2*cin) + bf16 9-tap patch (18*cin)
    #   + bf16 double-buffered output block (4*cout_pad)
    #   + f32 matmul result / epilogue temporaries (~8*cout_pad)
    per_row = 20 * cin + 12 * cout_pad
    fixed = 18 * cin * cout_pad * 2 + 16 * cout_pad + 4 * wp_pad * cin
    tile_h = (vmem_budget - fixed) // (wp_pad * per_row)
    return int(max(1, min(H, tile_h)))


def _resident_spec(block_shape):
    """BlockSpec for a grid-constant block; single-buffered when the API allows it."""
    index_map = lambda n, i: (0,) * len(block_shape)
    try:
        return pl.BlockSpec(block_shape, index_map, pipeline_mode=pl.Buffered(1))
    except Exception:  # older BlockSpec signature: fall back to default buffering
        return pl.BlockSpec(block_shape, index_map)


# ------------------------------------------------------------------ kernel ---
def _make_kernel(tile_h, wp_pad, cin, cout_pad, copy_rows, r_slab, rows_per_image):
    """Fused 3x3 conv (single K=9*Cin MXU dot) + BN(eval) affine + LeakyReLU(0.01)."""
    rows_wide = tile_h * wp_pad

    def kernel(x_hbm, w_ref, scale_ref, shift_ref, o_ref, slab, patch, sem):
        n = pl.program_id(0)
        i = pl.program_id(1)
        row0 = pl.multiple_of(n * rows_per_image + i * rows_wide, 8)

        # --- fetch this tile's (tile_h + 2)-row halo window, HBM -> VMEM (no HBM copies). ---
        cp = pltpu.make_async_copy(
            x_hbm.at[pl.ds(row0, copy_rows)],
            slab.at[pl.ds(0, copy_rows)],
            sem,
        )
        cp.start()
        cp.wait()
        # Zero the tiny overhang read by the (dh=2, dw=1/2) taps of the junk columns.
        slab[copy_rows:r_slab, :] = jnp.zeros((r_slab - copy_rows, cin), dtype=slab.dtype)

        # --- pack the 9 taps into one K = 9*Cin contraction (single wide MXU dot). ---
        for t in range(9):
            dh, dw = divmod(t, 3)
            off = dh * wp_pad + dw                       # static offset into the flat slab
            patch[:, t * cin:(t + 1) * cin] = slab[off:off + rows_wide, :]

        acc = jnp.dot(patch[...], w_ref[...], preferred_element_type=jnp.float32)

        # --- BN(eval) scale/shift (conv bias folded into shift) + LeakyReLU(0.01). ---
        y = acc * scale_ref[...] + shift_ref[...]
        y = jnp.where(y >= 0.0, y, 0.01 * y)
        o_ref[...] = y.astype(o_ref.dtype)               # bf16 writeback

    return kernel


# ------------------------------------------------------------------ wrappers --
def conv_dropout_norm_nonlin_nhwc(x_nhwc, params, *, eps=1e-5, tile_h=None):
    """Eval-mode ConvDropoutNormNonlin, NHWC in -> NHWC out (preferred for chaining)."""
    weight = params["weight"]          # (Cout, Cin, 3, 3)  -- PyTorch layout
    bias = params["bias"]
    gamma = params["gamma"]
    beta = params["beta"]
    r_mean = params["running_mean"]
    r_var = params["running_var"]

    N, H, W, Cin = x_nhwc.shape
    Cout, Cin_w, kh, kw = weight.shape
    assert Cin_w == Cin and (kh, kw) == (3, 3), "this kernel implements the module's 3x3 conv"

    wp_pad = _round_up(W + 2, 8)                         # conv pad=1 + sublane alignment
    # Lane-dense (128) padding only when channels are plentiful; tiny Cout stays unpadded
    # because the kernel is writeback-bound there and padding multiplies output bytes.
    cout_pad = _round_up(Cout, 128) if Cout > 32 else Cout

    vmem_budget, vmem_limit = _vmem_caps()
    if tile_h is None:
        tile_h = _auto_tile_h(H, wp_pad, Cin, cout_pad, vmem_budget)
    tile_h = max(1, min(int(tile_h), H))
    num_h = math.ceil(H / tile_h)
    h_pad = num_h * tile_h                               # remainder rows handled by zero pad

    rows_wide = tile_h * wp_pad
    copy_rows = (tile_h + 2) * wp_pad
    r_slab = _round_up(copy_rows + 2, 8)
    rows_per_image = (h_pad + 2) * wp_pad

    # ---- BN(eval) folding as epilogue affine: y = conv(x, W)*scale + shift (f32). ----
    scale = gamma.astype(jnp.float32) / jnp.sqrt(r_var.astype(jnp.float32) + eps)
    shift = (bias.astype(jnp.float32) - r_mean.astype(jnp.float32)) * scale + beta.astype(jnp.float32)
    scale_p = jnp.pad(scale, (0, cout_pad - Cout)).reshape(1, cout_pad)
    shift_p = jnp.pad(shift, (0, cout_pad - Cout)).reshape(1, cout_pad)

    # (Cout, Cin, 3, 3) -> (3, 3, Cin, Cout) -> (9*Cin, Cout_pad); row (dh*3+dw)*Cin + c
    # matches the in-kernel patch column layout.
    w_m = jnp.transpose(weight.astype(jnp.float32), (2, 3, 1, 0)).reshape(9 * Cin, Cout)
    w_m = jnp.pad(w_m, ((0, 0), (0, cout_pad - Cout))).astype(jnp.bfloat16)

    # ---- zero-pad input (conv pad=1 + alignment + bottom tile remainder), flatten (h, w). ----
    xp = jnp.pad(x_nhwc.astype(jnp.bfloat16),
                 ((0, 0), (1, 1 + h_pad - H), (1, wp_pad - 1 - W), (0, 0)))
    x_flat = xp.reshape(N * rows_per_image, Cin)         # stays in HBM; kernel DMAs halo windows

    kernel = _make_kernel(tile_h, wp_pad, Cin, cout_pad, copy_rows, r_slab, rows_per_image)

    flops = 2 * N * h_pad * wp_pad * 9 * Cin * cout_pad
    bytes_accessed = (x_flat.size * 2                    # bf16 input (read once via DMA)
                      + w_m.size * 2                     # bf16 weights
                      + (scale_p.size + shift_p.size) * 4
                      + N * num_h * rows_wide * cout_pad * 2)   # bf16 output

    out = pl.pallas_call(
        kernel,
        out_shape=jax.ShapeDtypeStruct((N, num_h, rows_wide, cout_pad), jnp.bfloat16),
        grid_spec=pltpu.PrefetchScalarGridSpec(
            num_scalar_prefetch=0,
            grid=(N, num_h),
            in_specs=[
                pl.BlockSpec(memory_space=pl.ANY),        # padded NHWC input, raw HBM ref
                _resident_spec((9 * Cin, cout_pad)),      # conv weights (grid-constant)
                _resident_spec((1, cout_pad)),            # BN scale
                _resident_spec((1, cout_pad)),            # BN shift (+ folded conv bias)
            ],
            out_specs=pl.BlockSpec((None, None, rows_wide, cout_pad),
                                   lambda n, i: (n, i, 0, 0)),
            scratch_shapes=[
                pltpu.VMEM((r_slab, Cin), jnp.bfloat16),          # halo slab
                pltpu.VMEM((rows_wide, 9 * Cin), jnp.bfloat16),   # 9-tap im2col patch
                pltpu.SemaphoreType.DMA,                          # slab-copy semaphore
            ],
        ),
        compiler_params=pltpu.CompilerParams(
            dimension_semantics=("parallel", "parallel"),
            vmem_limit_bytes=vmem_limit,
        ),
        cost_estimate=pl.CostEstimate(
            flops=flops, transcendentals=0, bytes_accessed=bytes_accessed),
    )(x_flat, w_m, scale_p, shift_p)

    # Free (metadata-only) reshape, then drop pad rows / junk columns / pad channels.
    out = out.reshape(N, h_pad, wp_pad, cout_pad)
    return out[:, :H, :W, :Cout]


def conv_dropout_norm_nonlin(x_nchw, params, *, eps=1e-5, tile_h=None):
    """PyTorch-layout (NCHW) convenience wrapper. When chaining blocks, prefer the NHWC
    entry point and keep activations in NHWC between layers (avoids per-layer transposes)."""
    x_nhwc = jnp.transpose(x_nchw, (0, 2, 3, 1))
    y = conv_dropout_norm_nonlin_nhwc(x_nhwc, params, eps=eps, tile_h=tile_h)
    return jnp.transpose(y, (0, 3, 1, 2))


# ---------------------------------------------------------------- reference --
def _reference(x_nchw, params, eps=1e-5):
    """Plain-JAX f32 reference (eval mode) for verification."""
    w = params["weight"].astype(jnp.float32)
    y = lax.conv_general_dilated(
        x_nchw.astype(jnp.float32), w,
        window_strides=(1, 1), padding=((1, 1), (1, 1)),
        dimension_numbers=("NCHW", "OIHW", "NCHW"),
    )
    y = y + params["bias"].reshape(1, -1, 1, 1)
    scale = params["gamma"] / jnp.sqrt(params["running_var"] + eps)
    shift = params["beta"] - params["running_mean"] * scale
    y = y * scale.reshape(1, -1, 1, 1) + shift.reshape(1, -1, 1, 1)
    return jnp.where(y >= 0.0, y, 0.01 * y)


def _make_params(key, cin, cout, ksize=3):
    k_w, k_b, k_g, k_be, k_m, k_v = jax.random.split(key, 6)
    return {
        "weight": jax.random.normal(k_w, (cout, cin, ksize, ksize), dtype=jnp.float32) * 0.1,
        "bias": jax.random.normal(k_b, (cout,), dtype=jnp.float32) * 0.1,
        "gamma": 1.0 + 0.1 * jax.random.normal(k_g, (cout,), dtype=jnp.float32),
        "beta": 0.1 * jax.random.normal(k_be, (cout,), dtype=jnp.float32),
        "running_mean": 0.1 * jax.random.normal(k_m, (cout,), dtype=jnp.float32),
        "running_var": 1.0 + 0.1 * jnp.abs(jax.random.normal(k_v, (cout,), dtype=jnp.float32)),
    }


# --------------------------------------------------------------------- main --
if __name__ == "__main__":
    key = jax.random.PRNGKey(0)
    k_x1, k_p1, k_x2, k_p2 = jax.random.split(key, 4)

    # Config 1 (module-sized demo): NCHW = (2, 4, 16, 16), Cout = 8. Auto tile_h (single H tile).
    N, Cin, H, W = 2, 4, 16, 16
    Cout = 8
    x = jax.random.normal(k_x1, (N, Cin, H, W), dtype=jnp.float32)
    params = _make_params(k_p1, Cin, Cout)

    out = jax.block_until_ready(conv_dropout_norm_nonlin(x, params))
    ref = jax.block_until_ready(_reference(x, params))
    assert out.shape == (N, Cout, H, W), out.shape
    np.testing.assert_allclose(np.asarray(out, dtype=np.float32), np.asarray(ref),
                               rtol=2e-2, atol=3e-2)

    # Config 2: odd, non-divisible shapes + explicit tile_h to exercise multi-tile halos,
    # remainder rows and the unpadded-Cout path.
    N2, Cin2, H2, W2, Cout2 = 1, 3, 13, 11, 5
    x2 = jax.random.normal(k_x2, (N2, Cin2, H2, W2), dtype=jnp.float32)
    params2 = _make_params(k_p2, Cin2, Cout2)
    out2 = jax.block_until_ready(conv_dropout_norm_nonlin(x2, params2, tile_h=8))
    ref2 = jax.block_until_ready(_reference(x2, params2))
    assert out2.shape == (N2, Cout2, H2, W2), out2.shape
    np.testing.assert_allclose(np.asarray(out2, dtype=np.float32), np.asarray(ref2),
                               rtol=2e-2, atol=3e-2)

    print("KERNEL_OK")
</pallas_src>

<mosaic_0001>
module attributes {stable_mosaic.version = 11 : i64} {
  func.func @kernel(%arg0: i32, %arg1: i32, %arg2: memref<864x4xbf16, #tpu.memory_space<any>>, %arg3: memref<36x8xbf16, #tpu.memory_space<vmem>>, %arg4: memref<1x8xf32, #tpu.memory_space<vmem>>, %arg5: memref<1x8xf32, #tpu.memory_space<vmem>>, %arg6: memref<1x1x384x8xbf16, #tpu.memory_space<vmem>>, %arg7: memref<440x4xbf16, #tpu.memory_space<vmem>>, %arg8: memref<384x36xbf16, #tpu.memory_space<vmem>>, %arg9: memref<!tpu.dma_semaphore, #tpu.memory_space<semaphore_mem>>) attributes {dimension_semantics = [#tpu.dimension_semantics<parallel>, #tpu.dimension_semantics<parallel>], iteration_bounds = array<i64: 2, 1>, scalar_prefetch = 0 : i64, scratch_operands = 3 : i64, tpu.core_type = #tpu.core_type<tc>, window_params = [{}, {pipeline_mode = #tpu.pipeline_mode<synchronous>, transform_indices = @transform_1, window_bounds = array<i64: 36, 8>}, {pipeline_mode = #tpu.pipeline_mode<synchronous>, transform_indices = @transform_2, window_bounds = array<i64: 1, 8>}, {pipeline_mode = #tpu.pipeline_mode<synchronous>, transform_indices = @transform_3, window_bounds = array<i64: 1, 8>}, {transform_indices = @transform_4, window_bounds = array<i64: 1, 1, 384, 8>}]} {
    %c432_i32 = arith.constant 432 : i32
    %0 = arith.muli %arg0, %c432_i32 : i32
    %c384_i32 = arith.constant 384 : i32
    %1 = arith.muli %arg1, %c384_i32 : i32
    %2 = arith.addi %0, %1 : i32
    %3 = tpu.assume_multiple %2, 8 : i32
    %c0_i32 = arith.constant 0 : i32
    %4 = tpu.memref_slice %arg2[%3, %c0_i32] : memref<864x4xbf16, #tpu.memory_space<any>> -> memref<432x4xbf16, #tpu.memory_space<any>>
    %c0_i32_0 = arith.constant 0 : i32
    %c0_i32_1 = arith.constant 0 : i32
    %5 = tpu.memref_slice %arg7[%c0_i32_0, %c0_i32_1] : memref<440x4xbf16, #tpu.memory_space<vmem>> -> memref<432x4xbf16, #tpu.memory_space<vmem>>
    tpu.enqueue_dma source(%4 : memref<432x4xbf16, #tpu.memory_space<any>>) target(%5 : memref<432x4xbf16, #tpu.memory_space<vmem>>) target_semaphore(%arg9 : memref<!tpu.dma_semaphore, #tpu.memory_space<semaphore_mem>>)
    %c0_i32_2 = arith.constant 0 : i32
    %6 = tpu.memref_slice %arg2[%3, %c0_i32_2] : memref<864x4xbf16, #tpu.memory_space<any>> -> memref<432x4xbf16, #tpu.memory_space<any>>
    %c0_i32_3 = arith.constant 0 : i32
    %c0_i32_4 = arith.constant 0 : i32
    %7 = tpu.memref_slice %arg7[%c0_i32_3, %c0_i32_4] : memref<440x4xbf16, #tpu.memory_space<vmem>> -> memref<432x4xbf16, #tpu.memory_space<vmem>>
    tpu.wait_dma2 semaphore(%arg9 : memref<!tpu.dma_semaphore, #tpu.memory_space<semaphore_mem>>) src(%6 : memref<432x4xbf16, #tpu.memory_space<any>>) dst(%7 : memref<432x4xbf16, #tpu.memory_space<vmem>>)
    %cst = arith.constant 0.000000e+00 : bf16
    %8 = vector.broadcast %cst : bf16 to vector<8x4xbf16>
    %c432 = arith.constant 432 : index
    %c0 = arith.constant 0 : index
    %9 = vector.load %arg7[%c432, %c0] : memref<440x4xbf16, #tpu.memory_space<vmem>>, vector<8x4xbf16>
    tpu.vector_store %arg7[%c432, %c0], %8 {strides = array<i32>} : memref<440x4xbf16, #tpu.memory_space<vmem>>, vector<8x4xbf16>,
    %c0_5 = arith.constant 0 : index
    %c0_6 = arith.constant 0 : index
    %10 = vector.load %arg7[%c0_5, %c0_6] : memref<440x4xbf16, #tpu.memory_space<vmem>>, vector<384x4xbf16>
    %c0_7 = arith.constant 0 : index
    %c0_8 = arith.constant 0 : index
    %11 = vector.load %arg8[%c0_7, %c0_8] : memref<384x36xbf16, #tpu.memory_space<vmem>>, vector<384x4xbf16>
    tpu.vector_store %arg8[%c0_7, %c0_8], %10 {strides = array<i32>} : memref<384x36xbf16, #tpu.memory_space<vmem>>, vector<384x4xbf16>,
    %c1 = arith.constant 1 : index
    %c0_9 = arith.constant 0 : index
    %12 = vector.load %arg7[%c1, %c0_9] : memref<440x4xbf16, #tpu.memory_space<vmem>>, vector<384x4xbf16>
    %c0_10 = arith.constant 0 : index
    %c4 = arith.constant 4 : index
    %13 = vector.load %arg8[%c0_10, %c4] : memref<384x36xbf16, #tpu.memory_space<vmem>>, vector<384x4xbf16>
    tpu.vector_store %arg8[%c0_10, %c4], %12 {strides = array<i32>} : memref<384x36xbf16, #tpu.memory_space<vmem>>, vector<384x4xbf16>,
    %c2 = arith.constant 2 : index
    %c0_11 = arith.constant 0 : index
    %14 = vector.load %arg7[%c2, %c0_11] : memref<440x4xbf16, #tpu.memory_space<vmem>>, vector<384x4xbf16>
    %c0_12 = arith.constant 0 : index
    %c8 = arith.constant 8 : index
    %15 = vector.load %arg8[%c0_12, %c8] : memref<384x36xbf16, #tpu.memory_space<vmem>>, vector<384x4xbf16>
    tpu.vector_store %arg8[%c0_12, %c8], %14 {strides = array<i32>} : memref<384x36xbf16, #tpu.memory_space<vmem>>, vector<384x4xbf16>,
    %c24 = arith.constant 24 : index
    %c0_13 = arith.constant 0 : index
    %16 = vector.load %arg7[%c24, %c0_13] : memref<440x4xbf16, #tpu.memory_space<vmem>>, vector<384x4xbf16>
    %c0_14 = arith.constant 0 : index
    %c12 = arith.constant 12 : index
    %17 = vector.load %arg8[%c0_14, %c12] : memref<384x36xbf16, #tpu.memory_space<vmem>>, vector<384x4xbf16>
    tpu.vector_store %arg8[%c0_14, %c12], %16 {strides = array<i32>} : memref<384x36xbf16, #tpu.memory_space<vmem>>, vector<384x4xbf16>,
    %c25 = arith.constant 25 : index
    %c0_15 = arith.constant 0 : index
    %18 = vector.load %arg7[%c25, %c0_15] : memref<440x4xbf16, #tpu.memory_space<vmem>>, vector<384x4xbf16>
    %c0_16 = arith.constant 0 : index
    %c16 = arith.constant 16 : index
    %19 = vector.load %arg8[%c0_16, %c16] : memref<384x36xbf16, #tpu.memory_space<vmem>>, vector<384x4xbf16>
    tpu.vector_store %arg8[%c0_16, %c16], %18 {strides = array<i32>} : memref<384x36xbf16, #tpu.memory_space<vmem>>, vector<384x4xbf16>,
    %c26 = arith.constant 26 : index
    %c0_17 = arith.constant 0 : index
    %20 = vector.load %arg7[%c26, %c0_17] : memref<440x4xbf16, #tpu.memory_space<vmem>>, vector<384x4xbf16>
    %c0_18 = arith.constant 0 : index
    %c20 = arith.constant 20 : index
    %21 = vector.load %arg8[%c0_18, %c20] : memref<384x36xbf16, #tpu.memory_space<vmem>>, vector<384x4xbf16>
    tpu.vector_store %arg8[%c0_18, %c20], %20 {strides = array<i32>} : memref<384x36xbf16, #tpu.memory_space<vmem>>, vector<384x4xbf16>,
    %c48 = arith.constant 48 : index
    %c0_19 = arith.constant 0 : index
    %22 = vector.load %arg7[%c48, %c0_19] : memref<440x4xbf16, #tpu.memory_space<vmem>>, vector<384x4xbf16>
    %c0_20 = arith.constant 0 : index
    %c24_21 = arith.constant 24 : index
    %23 = vector.load %arg8[%c0_20, %c24_21] : memref<384x36xbf16, #tpu.memory_space<vmem>>, vector<384x4xbf16>
    tpu.vector_store %arg8[%c0_20, %c24_21], %22 {strides = array<i32>} : memref<384x36xbf16, #tpu.memory_space<vmem>>, vector<384x4xbf16>,
    %c49 = arith.constant 49 : index
    %c0_22 = arith.constant 0 : index
    %24 = vector.load %arg7[%c49, %c0_22] : memref<440x4xbf16, #tpu.memory_space<vmem>>, vector<384x4xbf16>
    %c0_23 = arith.constant 0 : index
    %c28 = arith.constant 28 : index
    %25 = vector.load %arg8[%c0_23, %c28] : memref<384x36xbf16, #tpu.memory_space<vmem>>, vector<384x4xbf16>
    tpu.vector_store %arg8[%c0_23, %c28], %24 {strides = array<i32>} : memref<384x36xbf16, #tpu.memory_space<vmem>>, vector<384x4xbf16>,
    %c50 = arith.constant 50 : index
    %c0_24 = arith.constant 0 : index
    %26 = vector.load %arg7[%c50, %c0_24] : memref<440x4xbf16, #tpu.memory_space<vmem>>, vector<384x4xbf16>
    %c0_25 = arith.constant 0 : index
    %c32 = arith.constant 32 : index
    %27 = vector.load %arg8[%c0_25, %c32] : memref<384x36xbf16, #tpu.memory_space<vmem>>, vector<384x4xbf16>
    tpu.vector_store %arg8[%c0_25, %c32], %26 {strides = array<i32>} : memref<384x36xbf16, #tpu.memory_space<vmem>>, vector<384x4xbf16>,
    %c0_26 = arith.constant 0 : index
    %c0_27 = arith.constant 0 : index
    %28 = vector.load %arg8[%c0_26, %c0_27] : memref<384x36xbf16, #tpu.memory_space<vmem>>, vector<384x36xbf16>
    %c0_28 = arith.constant 0 : index
    %c0_29 = arith.constant 0 : index
    %29 = vector.load %arg3[%c0_28, %c0_29] : memref<36x8xbf16, #tpu.memory_space<vmem>>, vector<36x8xbf16>
    %cst_30 = arith.constant dense<0.000000e+00> : vector<384x8xf32>
    %30 = tpu.matmul %28, %29, %cst_30 {dimension_numbers = #tpu.dot_dimension_numbers<[1], [0], [0], [1], [0, 0, 1, 1], [], []>} : vector<384x36xbf16>, vector<36x8xbf16>, vector<384x8xf32> -> vector<384x8xf32>
    %c0_31 = arith.constant 0 : index
    %c0_32 = arith.constant 0 : index
    %31 = vector.load %arg4[%c0_31, %c0_32] : memref<1x8xf32, #tpu.memory_space<vmem>>, vector<1x8xf32>
    %32 = vector.broadcast %31 : vector<1x8xf32> to vector<384x8xf32>
    %33 = arith.mulf %30, %32 : vector<384x8xf32>
    %c0_33 = arith.constant 0 : index
    %c0_34 = arith.constant 0 : index
    %34 = vector.load %arg5[%c0_33, %c0_34] : memref<1x8xf32, #tpu.memory_space<vmem>>, vector<1x8xf32>
    %35 = vector.broadcast %34 : vector<1x8xf32> to vector<384x8xf32>
    %36 = arith.addf %33, %35 : vector<384x8xf32>
    %cst_35 = arith.constant 0.000000e+00 : f32
    %37 = vector.broadcast %cst_35 : f32 to vector<384x8xf32>
    %38 = arith.cmpf oge, %36, %37 : vector<384x8xf32>
    %cst_36 = arith.constant 0.00999999977 : f32
    %39 = vector.broadcast %cst_36 : f32 to vector<384x8xf32>
    %40 = arith.mulf %39, %36 : vector<384x8xf32>
    %41 = arith.select %38, %36, %40 : vector<384x8xi1>, vector<384x8xf32>
    %42 = arith.truncf %41 : vector<384x8xf32> to vector<384x8xbf16>
    %c0_37 = arith.constant 0 : index
    %c0_38 = arith.constant 0 : index
    %c0_39 = arith.constant 0 : index
    %c0_40 = arith.constant 0 : index
    %43 = vector.load %arg6[%c0_37, %c0_38, %c0_39, %c0_40] : memref<1x1x384x8xbf16, #tpu.memory_space<vmem>>, vector<1x1x384x8xbf16>
    %44 = vector.shape_cast %43 : vector<1x1x384x8xbf16> to vector<384x8xbf16>
    %45 = vector.shape_cast %42 : vector<384x8xbf16> to vector<1x1x384x8xbf16>
    tpu.vector_store %arg6[%c0_37, %c0_38, %c0_39, %c0_40], %45 {strides = array<i32>} : memref<1x1x384x8xbf16, #tpu.memory_space<vmem>>, vector<1x1x384x8xbf16>,
    return
  }
  func.func @transform_1(%arg0: i32, %arg1: i32) -> (i32, i32) {
    %c0_i32 = arith.constant 0 : i32
    %c0_i32_0 = arith.constant 0 : i32
    %c0_i32_1 = arith.constant 0 : i32
    return %c0_i32, %c0_i32_0 : i32, i32
  }
  func.func @transform_2(%arg0: i32, %arg1: i32) -> (i32, i32) {
    %c0_i32 = arith.constant 0 : i32
    %c0_i32_0 = arith.constant 0 : i32
    %c0_i32_1 = arith.constant 0 : i32
    return %c0_i32, %c0_i32_0 : i32, i32
  }
  func.func @transform_3(%arg0: i32, %arg1: i32) -> (i32, i32) {
    %c0_i32 = arith.constant 0 : i32
    %c0_i32_0 = arith.constant 0 : i32
    %c0_i32_1 = arith.constant 0 : i32
    return %c0_i32, %c0_i32_0 : i32, i32
  }
  func.func @transform_4(%arg0: i32, %arg1: i32) -> (i32, i32, i32, i32) {
    %c0_i32 = arith.constant 0 : i32
    %c0_i32_0 = arith.constant 0 : i32
    %c0_i32_1 = arith.constant 0 : i32
    return %arg0, %arg1, %c0_i32, %c0_i32_0 : i32, i32, i32, i32
  }
}

</mosaic_0001>

<bundles_post_ra>
// kernel: tpu_custom_call.1
= control target key start
LH: loop header
LB: loop body
LE: loop exit
PB: predicated region body
PF: predicated region fallthrough
CT: control target
= control target key end

     0   :  { %s5072_s15 = smov 0   ;;  %s5074_s16 = smov 0   ;;  %s6325_s0 = inlined_call_operand.vmem [shape: bf16[864,4], index: 0, kind: input, shape index: {}]   ;;  %s6326_s1 = inlined_call_operand.vmem [shape: bf16[36,8], index: 1, kind: input, shape index: {}]   ;;  %s6327_s2 = inlined_call_operand.vmem [shape: f32[1,8], index: 2, kind: input, shape index: {}]   ;;  %s6328_s3 = inlined_call_operand.vmem [shape: f32[1,8], index: 3, kind: input, shape index: {}]   ;;  %s6329_s4 = inlined_call_operand.vmem [shape: bf16[2,1,384,8], index: 4, kind: output, shape index: {}]  }
   0x1   :  { %s5076_s17 = smov 0  }
   0x2 LB: > { %s26_s18 = sadd.s32 1, %s5032_s16  ;;  %p4311_p0 = scmp.ge.s32.totalorder %s5036_s17, 1  ;;  %s5036_s17 = sphi %s5076_s17, %s14_s17   ;;  %s5032_s16 = sphi %s5074_s16, %s6331_s16   ;;  %s5028_s15 = sphi %s5072_s15, %s6330_s15  }
   0x3   : > { %p28_p1 = scmp.ge.s32.totalorder %s26_s18, 2  ;;  %p142_p2 = scmp.lt.s32.totalorder %s5036_s17, 3 }
   0x5   : > { %s6333_s18 = smov (%p28_p1, %s26_s18), 0  ;;  %p143_p3 = pnand %p4311_p0, %p142_p2 }
   0x6   : > { %p165_p4 = scmp.lt.s32.totalorder (!%p143_p3), %s5028_s15, 1  ;;  %s175_s19 = smul.u32 (!%p143_p3), 432, %s5028_s15 }
   0x7   : > { %146 = sbr.rel (%p143_p3) target bundleno = 770 (0x302), region = 32 }
   0x8   : > { %s178_s20 = sshra.s32 (!%p143_p3), %s175_s19, 3 }
   0x9   : > { %s4313_s22 = sshll.u32 (!%p143_p3), %s178_s20, 2 }
   0xa   : > { %s5093_s25 = scalar_lea.vmem (!%p143_p3), %s6325_s0, %s4313_s22 }
   0xb   : > { %v214_v0 = vld [vmem:[%s5093_s25] sm:$0xff] (!%p143_p3)  ;;  %v216_v1 = vld [vmem:[%s5093_s25 + $0x8] sm:$0xff] (!%p143_p3)  ;;  %v218_v2 = vld [vmem:[%s5093_s25 + $0x10] sm:$0xff] (!%p143_p3) }
   0xc   : > { %215 = vst [vmem:[#allocation2] sm:$0xff] (!%p143_p3), %v214_v0  ;;  %217 = vst [vmem:[#allocation2 + $0x8] sm:$0xff] (!%p143_p3), %v216_v1  ;;  %v220_v3 = vld [vmem:[%s5093_s25 + $0x18] sm:$0xff] (!%p143_p3)  ;;  %v222_v4 = vld [vmem:[%s5093_s25 + $0x20] sm:$0xff] (!%p143_p3) }
   0xd   : > { %219 = vst [vmem:[#allocation2 + $0x10] sm:$0xff] (!%p143_p3), %v218_v2  ;;  %v224_v5 = vld [vmem:[%s5093_s25 + $0x28] sm:$0xff] (!%p143_p3)  ;;  %221 = vst [vmem:[#allocation2 + $0x18] sm:$0xff] (!%p143_p3), %v220_v3  ;;  %v226_v6 = vld [vmem:[%s5093_s25 + $0x30] sm:$0xff] (!%p143_p3) }
   0xe   : > { %s6335_s15 = smov (!%p165_p4, %s5028_s15), 1  ;;  %223 = vst [vmem:[#allocation2 + $0x20] sm:$0xff] %v222_v4  ;;  %225 = vst [vmem:[#allocation2 + $0x28] sm:$0xff] %v224_v5  ;;  %v228_v7 = vld [vmem:[%s5093_s25 + $0x38] sm:$0xff]  ;;  %v230_v8 = vld [vmem:[%s5093_s25 + $0x40] sm:$0xff] }
   0xf   : > { %s4753_s21 = smul.u32 192, %s6335_s15  ;;  %227 = vst [vmem:[#allocation2 + $0x30] sm:$0xff] %v226_v6  ;;  %229 = vst [vmem:[#allocation2 + $0x38] sm:$0xff] %v228_v7  ;;  %v232_v9 = vld [vmem:[%s5093_s25 + $0x48] sm:$0xff]  ;;  %v234_v10 = vld [vmem:[%s5093_s25 + $0x50] sm:$0xff] }
  0x10   : > { %231 = vst [vmem:[#allocation2 + $0x40] sm:$0xff] %v230_v8  ;;  %v236_v11 = vld [vmem:[%s5093_s25 + $0x58] sm:$0xff]  ;;  %233 = vst [vmem:[#allocation2 + $0x48] sm:$0xff] %v232_v9  ;;  %v238_v12 = vld [vmem:[%s5093_s25 + $0x60] sm:$0xff] }
  0x11   : > { %s5098_s28 = scalar_lea.vmem %s6329_s4, %s4753_s21  ;;  %235 = vst [vmem:[#allocation2 + $0x50] sm:$0xff] %v234_v10  ;;  %237 = vst [vmem:[#allocation2 + $0x58] sm:$0xff] %v236_v11  ;;  %v240_v13 = vld [vmem:[%s5093_s25 + $0x68] sm:$0xff]  ;;  %v242_v14 = vld [vmem:[%s5093_s25 + $0x70] sm:$0xff] }
  0x12   : > { %239 = vst [vmem:[#allocation2 + $0x60] sm:$0xff] %v238_v12  ;;  %241 = vst [vmem:[#allocation2 + $0x68] sm:$0xff] %v240_v13  ;;  %v244_v15 = vld [vmem:[%s5093_s25 + $0x78] sm:$0xff]  ;;  %v246_v16 = vld [vmem:[%s5093_s25 + $0x80] sm:$0xff] }
  0x13   : > { %243 = vst [vmem:[#allocation2 + $0x70] sm:$0xff] %v242_v14  ;;  %v248_v17 = vld [vmem:[%s5093_s25 + $0x88] sm:$0xff]  ;;  %245 = vst [vmem:[#allocation2 + $0x78] sm:$0xff] %v244_v15  ;;  %v250_v18 = vld [vmem:[%s5093_s25 + $0x90] sm:$0xff] }
  0x14   : > { %247 = vst [vmem:[#allocation2 + $0x80] sm:$0xff] %v246_v16  ;;  %249 = vst [vmem:[#allocation2 + $0x88] sm:$0xff] %v248_v17  ;;  %v252_v19 = vld [vmem:[%s5093_s25 + $0x98] sm:$0xff]  ;;  %v254_v20 = vld [vmem:[%s5093_s25 + $0xa0] sm:$0xff] }
  0x15   : > { %251 = vst [vmem:[#allocation2 + $0x90] sm:$0xff] %v250_v18  ;;  %253 = vst [vmem:[#allocation2 + $0x98] sm:$0xff] %v252_v19  ;;  %v256_v21 = vld [vmem:[%s5093_s25 + $0xa8] sm:$0xff]  ;;  %v258_v22 = vld [vmem:[%s5093_s25 + $0xb0] sm:$0xff] }
  0x16   : > { %255 = vst [vmem:[#allocation2 + $0xa0] sm:$0xff] %v254_v20  ;;  %v260_v23 = vld [vmem:[%s5093_s25 + $0xb8] sm:$0xff]  ;;  %257 = vst [vmem:[#allocation2 + $0xa8] sm:$0xff] %v256_v21  ;;  %v262_v24 = vld [vmem:[%s5093_s25 + $0xc0] sm:$0xff] }
  0x17   : > { %259 = vst [vmem:[#allocation2 + $0xb0] sm:$0xff] %v258_v22  ;;  %261 = vst [vmem:[#allocation2 + $0xb8] sm:$0xff] %v260_v23  ;;  %v264_v25 = vld [vmem:[%s5093_s25 + $0xc8] sm:$0xff]  ;;  %v266_v26 = vld [vmem:[%s5093_s25 + $0xd0] sm:$0xff] }
  0x18   : > { %263 = vst [vmem:[#allocation2 + $0xc0] sm:$0xff] %v262_v24  ;;  %265 = vst [vmem:[#allocation2 + $0xc8] sm:$0xff] %v264_v25 }
  0x19   : > { %267 = vst [vmem:[#allocation2 + $0xd0] sm:$0xff] %v266_v26 }
  0x1a   : > { %275 = vsyncadd [#allocation4], 3456 }
  0x1b   : > { %5024 = dma.done.wait [#allocation4], 3456 }
  0x1c   : > { %5025 = vsyncadd [#allocation4], 4294963840  ;;  %vm671_vm0 = vsmask.f32 7424  ;;  %v4787_v27 = vld [vmem:[#allocation2 + $0x10] sm:$0xff]   ;;  %v4788_v28 = vld [vmem:[#allocation2 + $0x18] sm:$0xff]  }
  0x1d   : > { %v688_v29 = vshll.u32 %v4787_v27, 16  ;;  %v692_v30 = vshrl.u32 %v4787_v27, 16  ;;  %v696_v31 = vshll.u32 %v4788_v28, 16  ;;  %v4789_v32 = vld [vmem:[#allocation2] sm:$0xff]   ;;  %v4790_v33 = vld [vmem:[#allocation2 + $0x8] sm:$0xff]   ;;  %v700_v34 = vshrl.u32 %v4788_v28, 16 }
  0x1e   : > { %v673_v37 = vshrl.u32 %v4789_v32, 16  ;;  %v675_v38 = vshll.u32 %v4789_v32, 16  ;;  %v4791_v39 = vld [vmem:[#allocation2 + $0x20] sm:$0xff]   ;;  %v4792_v40 = vld [vmem:[#allocation2 + $0x28] sm:$0xff]   ;;  %v680_v41 = vshll.u32 %v4790_v33, 16  ;;  %v684_v42 = vshrl.u32 %v4790_v33, 16 }
  0x1f   : > { %v690_v35 = vrot.slane %v688_v29, 1  ;;  %v698_v36 = vrot.slane %v696_v31, 1  ;;  %v704_v46 = vshll.u32 %v4791_v39, 16  ;;  %v4793_v48 = vld [vmem:[#allocation2 + $0x30] sm:$0xff]   ;;  %v712_v49 = vshll.u32 %v4792_v40, 16  ;;  %v4794_v52 = vld [vmem:[#allocation2 + $0x38] sm:$0xff]  }
  0x20   : > { %v677_v44 = vrot.slane %v675_v38, 1  ;;  %v682_v47 = vrot.slane %v680_v41, 1  ;;  %v716_v50 = vshrl.u32 %v4792_v40, 16  ;;  %v708_v51 = vshrl.u32 %v4791_v39, 16  ;;  %v4795_v56 = vld [vmem:[#allocation2 + $0x40] sm:$0xff]   ;;  %s5038_s29 = smov 4  }
  0x21   : > { %v694_v43 = vor.u32 %v692_v30, %v690_v35  ;;  %v702_v45 = vor.u32 %v700_v34, %v698_v36  ;;  %v706_v55 = vrot.slane %v704_v46, 1  ;;  %v714_v58 = vrot.slane %v712_v49, 1  ;;  %v4796_v63 = vld [vmem:[#allocation2 + $0x48] sm:$0xff]   ;;  %v4797_v8 = vld [vmem:[#allocation2 + $0x50] sm:$0xff]   ;;  %v4798_v11 = vld [vmem:[#allocation2 + $0x58] sm:$0xff]   ;;  %s5039_s30 = smov 8  }
  0x22   : > { %v678_v54 = vor.u32 %v677_v44, %v673_v37  ;;  %v686_v57 = vor.u32 %v684_v42, %v682_v47  ;;  %v720_v59 = vshll.u32 %v4793_v48, 16  ;;  %v728_v62 = vshll.u32 %v4794_v52, 16  ;;  %v4799_v19 = vld [vmem:[#allocation2 + $0x60] sm:$0xff]   ;;  %v4800_v21 = vld [vmem:[#allocation2 + $0x68] sm:$0xff]   ;;  %v4801_v24 = vld [vmem:[#allocation2 + $0x70] sm:$0xff]   ;;  %s5040_s5 = smov 12  }
  0x23   : > { %v699_v53 = vsel %vm671_vm0, %v694_v43, %v698_v36  ;;  %v707_v61 = vsel %vm671_vm0, %v702_v45, %v706_v55  ;;  %v718_v0 = vor.u32 %v716_v50, %v714_v58  ;;  %v710_v2 = vor.u32 %v708_v51, %v706_v55  ;;  %v4802_v37 = vld [vmem:[#allocation2 + $0x78] sm:$0xff]   ;;  %v4804_v39 = vld [vmem:[#allocation2 + $0x88] sm:$0xff]   ;;  %v4803_v42 = vld [vmem:[#allocation2 + $0x80] sm:$0xff]   ;;  %s5041_s6 = smov 16   ;;  %s5042_s7 = smov 20  }
  0x24   : > { %872 = vrot.lane.b32.xlu1 %v699_v53, %s5038_s29  ;;  %v683_v60 = vsel %vm671_vm0, %v678_v54, %v682_v47  ;;  %v722_v1 = vrot.slane %v720_v59, 1  ;;  %v732_v3 = vshrl.u32 %v4794_v52, 16  ;;  %v691_v4 = vsel %vm671_vm0, %v686_v57, %v690_v35  ;;  %v4805_v47 = vld [vmem:[#allocation2 + $0x90] sm:$0xff]   ;;  %v4806_v51 = vld [vmem:[#allocation2 + $0x98] sm:$0xff]   ;;  %v4807_v57 = vld [vmem:[#allocation2 + $0xa0] sm:$0xff]   ;;  %s5043_s8 = smov 24  }
  0x25   : > { %868 = vrot.lane.b32.xlu0 %v683_v60, %s5038_s29  ;;  %v730_v5 = vrot.slane %v728_v62, 1  ;;  %v736_v6 = vshll.u32 %v4795_v56, 16  ;;  %v724_v7 = vshrl.u32 %v4793_v48, 16  ;;  %v744_v9 = vshll.u32 %v4796_v63, 16  ;;  %s5044_s9 = smov 28   ;;  %s5045_s10 = smov 32  }
  0x26   : > { %v748_v10 = vshrl.u32 %v4796_v63, 16  ;;  %v723_v12 = vsel %vm671_vm0, %v718_v0, %v722_v1  ;;  %v752_v15 = vshll.u32 %v4797_v8, 16  ;;  %v740_v18 = vshrl.u32 %v4795_v56, 16 }
  0x27   : > { %v734_v13 = vor.u32 %v732_v3, %v730_v5  ;;  %v738_v14 = vrot.slane %v736_v6, 1  ;;  %v726_v16 = vor.u32 %v724_v7, %v722_v1  ;;  %v746_v17 = vrot.slane %v744_v9, 1  ;;  %v4808_v3 = vld [vmem:[#allocation2 + $0xa8] sm:$0xff]  }
  0x28   : > { %874 = vrot.lane.b32.xlu1 %v707_v61, %s5038_s29  ;;  %v760_v20 = vshll.u32 %v4798_v11, 16  ;;  %v715_v22 = vsel %vm671_vm0, %v710_v2, %v714_v58  ;;  %v764_v23 = vshrl.u32 %v4798_v11, 16  ;;  %v754_v25 = vrot.slane %v752_v15, 1  ;;  %v4810_v15 = vld [vmem:[#allocation2 + $0xb8] sm:$0xff]  }
  0x29   : > { %870 = vrot.lane.b32.xlu0 %v691_v4, %s5038_s29  ;;  %v768_v26 = vshll.u32 %v4799_v19, 16  ;;  %v739_v27 = vsel %vm671_vm0, %v734_v13, %v738_v14  ;;  %v750_v28 = vor.u32 %v748_v10, %v746_v17  ;;  %v776_v30 = vshll.u32 %v4800_v21, 16 }
  0x2a   : > { %v762_v29 = vrot.slane %v760_v20, 1  ;;  %v731_v31 = vsel %vm671_vm0, %v726_v16, %v730_v5  ;;  %v756_v32 = vshrl.u32 %v4797_v8, 16  ;;  %v742_v33 = vor.u32 %v740_v18, %v738_v14  ;;  %v4809_v8 = vld [vmem:[#allocation2 + $0xb0] sm:$0xff]  }
  0x2b   : > { %v770_v34 = vrot.slane %v768_v26, 1  ;;  %v780_v35 = vshrl.u32 %v4800_v21, 16  ;;  %v784_v36 = vshll.u32 %v4801_v24, 16  ;;  %v778_v38 = vrot.slane %v776_v30, 1 }
  0x2c   : > { %878 = vrot.lane.b32.xlu1 %v723_v12, %s5038_s29  ;;  %v755_v40 = vsel %vm671_vm0, %v750_v28, %v754_v25  ;;  %v766_v41 = vor.u32 %v764_v23, %v762_v29  ;;  %v792_v43 = vshll.u32 %v4802_v37, 16  ;;  %v758_v44 = vor.u32 %v756_v32, %v754_v25  ;;  %v4811_v21 = vld [vmem:[#allocation2 + $0xc0] ss:$0 sps:$4 sm:$0x11]  }
  0x2d   : > { %876 = vrot.lane.b32.xlu0 %v715_v22, %s5038_s29  ;;  %v747_v45 = vsel %vm671_vm0, %v742_v33, %v746_v17  ;;  %v772_v46 = vshrl.u32 %v4799_v19, 16  ;;  %v786_v48 = vrot.slane %v784_v36, 1  ;;  %v796_v49 = vshrl.u32 %v4802_v37, 16 }
  0x2e   : > { %v808_v50 = vshll.u32 %v4804_v39, 16  ;;  %v771_v52 = vsel %vm671_vm0, %v766_v41, %v770_v34  ;;  %v782_v53 = vor.u32 %v780_v35, %v778_v38  ;;  %v794_v54 = vrot.slane %v792_v43, 1  ;;  %v4813_v43 = vld [vmem:[#allocation2 + $0x68] sm:$0xff]  }
  0x2f   : > { %v800_v55 = vshll.u32 %v4803_v42, 16  ;;  %v763_v56 = vsel %vm671_vm0, %v758_v44, %v762_v29  ;;  %v774_v58 = vor.u32 %v772_v46, %v770_v34  ;;  %v788_v59 = vshrl.u32 %v4801_v24, 16  ;;  %v4815_v44 = vld [vmem:[#allocation2 + $0x8] sm:$0xff]  }
  0x30   : > { %882 = vrot.lane.b32.xlu1 %v739_v27, %s5038_s29  ;;  %v812_v60 = vshrl.u32 %v4804_v39, 16  ;;  %v816_v61 = vshll.u32 %v4805_v47, 16  ;;  %v810_v62 = vrot.slane %v808_v50, 1  ;;  %v824_v63 = vshll.u32 %v4806_v51, 16  ;;  %v5166_v39 = vld [vmem:[#allocation2 + $0x60] sm:$0xff]  }
  0x31   : > { %880 = vrot.lane.b32.xlu0 %v731_v31, %s5038_s29  ;;  %v787_v0 = vsel %vm671_vm0, %v782_v53, %v786_v48  ;;  %v798_v1 = vor.u32 %v796_v49, %v794_v54  ;;  %v802_v2 = vrot.slane %v800_v55, 1  ;;  %v832_v4 = vshll.u32 %v4807_v57, 16 }
  0x32   : > { %v779_v5 = vsel %vm671_vm0, %v774_v58, %v778_v38  ;;  %v790_v6 = vor.u32 %v788_v59, %v786_v48  ;;  %v804_v7 = vshrl.u32 %v4803_v42, 16  ;;  %v814_v9 = vor.u32 %v812_v60, %v810_v62  ;;  %v4822_v58 = vld [vmem:[#allocation2 + $0x6c] sm:$0xff]  }
  0x33   : > { %v818_v10 = vrot.slane %v816_v61, 1  ;;  %v826_v11 = vrot.slane %v824_v63, 1  ;;  %v828_v12 = vshrl.u32 %v4806_v51, 16  ;;  %v803_v13 = vsel %vm671_vm0, %v798_v1, %v802_v2  ;;  %v5174_v51 = vld [vmem:[#allocation2 + $0x70] sm:$0xff]  }
  0x34   : > { %886 = vrot.lane.b32.xlu1 %v755_v40, %s5038_s29  ;;  %v840_v14 = vshll.u32 %v4808_v3, 16  ;;  %v834_v16 = vrot.slane %v832_v4, 1  ;;  %v820_v17 = vshrl.u32 %v4805_v47, 16  ;;  %v795_v18 = vsel %vm671_vm0, %v790_v6, %v794_v54  ;;  %v5177_v54 = vld [vmem:[#allocation2 + $0x10] sm:$0xff]   ;;  %v5197_v6 = vld [vmem:[#allocation2 + $0x7c] sm:$0xff]  }
  0x35   : > { %884 = vrot.lane.b32.xlu0 %v747_v45, %s5038_s29  ;;  %v806_v19 = vor.u32 %v804_v7, %v802_v2  ;;  %v848_v20 = vshll.u32 %v4809_v8, 16  ;;  %v819_v22 = vsel %vm671_vm0, %v814_v9, %v818_v10  ;;  %v830_v23 = vor.u32 %v828_v12, %v826_v11  ;;  %v4814_v45 = vld [vmem:[#allocation2] sm:$0xfe]   ;;  %v4824_v61 = vld [vmem:[#allocation2 + $0xc] sm:$0xff]   ;;  %v4823_v63 = vld [vmem:[#allocation2 + $0x74] sm:$0xff]  }
  0x36   : > { %v842_v24 = vrot.slane %v840_v14, 1  ;;  %v844_v25 = vshrl.u32 %v4808_v3, 16  ;;  %v856_v26 = vshll.u32 %v4810_v15, 16  ;;  %v822_v28 = vor.u32 %v820_v17, %v818_v10  ;;  %v4818_v1 = vld [vmem:[#allocation2 + $0x6c] sm:$0xff]   ;;  %v4825_v3 = vld [vmem:[#allocation2 + $0x14] sm:$0xff]  }
  0x37   : > { %v811_v27 = vsel %vm671_vm0, %v806_v19, %v810_v62  ;;  %v836_v29 = vshrl.u32 %v4807_v57, 16  ;;  %v850_v30 = vrot.slane %v848_v20, 1  ;;  %v860_v31 = vshrl.u32 %v4810_v15, 16  ;;  %v4819_v9 = vld [vmem:[#allocation2 + $0xc] sm:$0xff]   ;;  %v4820_v14 = vld [vmem:[#allocation2 + $0x74] sm:$0xff]  }
  0x38   : > { %890 = vrot.lane.b32.xlu1 %v771_v52, %s5038_s29  ;;  %v835_v32 = vsel %vm671_vm0, %v830_v23, %v834_v16  ;;  %v846_v33 = vor.u32 %v844_v25, %v842_v24  ;;  %v858_v34 = vrot.slane %v856_v26, 1  ;;  %v864_v35 = vshll.u32 %v4811_v21, 16  ;;  %v4821_v19 = vld [vmem:[#allocation2 + $0x14] sm:$0xff]   ;;  %v5212_v25 = vld [vmem:[#allocation2 + $0x6c] sm:$0xff]  }
  0x39   : > { %888 = vrot.lane.b32.xlu0 %v763_v56, %s5038_s29  ;;  %v827_v36 = vsel %vm671_vm0, %v822_v28, %v826_v11  ;;  %v838_v37 = vor.u32 %v836_v29, %v834_v16  ;;  %v852_v38 = vshrl.u32 %v4809_v8, 16  ;;  %v1161_v48 = vrot.slane %v5166_v39, 1  ;;  %v4829_v26 = vld [vmem:[#allocation2 + $0x74] sm:$0xff]   ;;  %v4830_v29 = vld [vmem:[#allocation2 + $0xc] sm:$0xfe]  }
  0x3a   : > { %v851_v40 = vsel %vm671_vm0, %v846_v33, %v850_v30  ;;  %v862_v41 = vor.u32 %v860_v31, %v858_v34  ;;  %v866_v42 = vrot.slane %v864_v35, 1  ;;  %v1163_v50 = vrot.slane %v4813_v43, 1  ;;  %v4831_v33 = vld [vmem:[#allocation2 + $0x14] sm:$0xff]  }
  0x3b   : > { %v843_v46 = vsel %vm671_vm0, %v838_v37, %v842_v24  ;;  %v854_v47 = vor.u32 %v852_v38, %v850_v30  ;;  %vm1137_vm1 = vcmask 1046528   ;;  %v1138_v52 = vrot.slane %v4814_v45, 1  ;;  %v5223_v37 = vld [vmem:[#allocation2 + $0x7c] sm:$0xff]  }
  0x3c   : > { %894 = vrot.lane.b32.xlu1 %v787_v0, %s5038_s29  ;;  %v867_v49 = vsel %vm671_vm0, %v862_v41, %v866_v42  ;;  %v1139_v53 = vrot.slane %v4815_v44, 1  ;;  %v1164_v56 = vsel %vm1137_vm1, %v1161_v48, %v1163_v50  ;;  %v1165_v57 = vrot.slane %v5174_v51, 1  ;;  %v5228_v42 = vld [vmem:[#allocation2 + $0x1c] sm:$0xff]   ;;  %v4888_v51 = vld [vmem:[#allocation2 + $0x88] sm:$0xff]  }
  0x3d   : > { %892 = vrot.lane.b32.xlu0 %v779_v5, %s5038_s29  ;;  %v859_v55 = vsel %vm671_vm0, %v854_v47, %v858_v34  ;;  %v1141_v60 = vrot.slane %v5177_v54, 1  ;;  %v1817_v0 = vshll.u32 %v4822_v58, 16  ;;  %v1724_v4 = vshll.u32 %v4824_v61, 16  ;;  %v4838_v43 = vld [vmem:[#allocation2 + $0x78] sm:$0xff]  }
  0x3e   : > { %v1140_v59 = vsel %vm1137_vm1, %v1138_v52, %v1139_v53  ;;  %v1166_v62 = vsel %vm1137_vm1, %v1163_v50, %v1165_v57  ;;  %v1821_v5 = vshrl.u32 %v4822_v58, 16  ;;  %v1825_v8 = vshll.u32 %v4823_v63, 16  ;;  %v4840_v50 = vld [vmem:[#allocation2 + $0x18] sm:$0xff]   ;;  %v4857_v58 = vld [vmem:[#allocation2] sm:$0xff]  }
  0x3f   : > { %v1142_v2 = vsel %vm1137_vm1, %v1139_v53, %v1141_v60  ;;  %v5199_v7 = vrot.slane %v1817_v0, 1  ;;  %v1722_v10 = vshrl.u32 %v4824_v61, 16  ;;  %v1726_v11 = vrot.slane %v1724_v4, 1  ;;  %v4856_v53 = vld [vmem:[#allocation2 + $0x10] sm:$0xff]   ;;  %v4860_v4 = vld [vmem:[#allocation2 + $0x18] sm:$0xff]  }
  0x40   : > { %898 = vrot.lane.b32.xlu1 %v803_v13, %s5038_s29  ;;  %v1729_v12 = vshll.u32 %v4825_v3, 16  ;;  %v5202_v13 = vld [vmem:[#allocation2 + $0x1c] sm:$0xff]   ;;  %v1833_v15 = vshll.u32 %v5197_v6, 16  ;;  %v1827_v17 = vrot.slane %v1825_v8, 1  ;;  %v1733_v20 = vshrl.u32 %v4825_v3, 16  ;;  %v4861_v8 = vld [vmem:[#allocation2 + $0x8] sm:$0xff]  }
  0x41   : > { %896 = vrot.lane.b32.xlu0 %v795_v18, %s5038_s29  ;;  %v1823_v16 = vor.u32 %v1821_v5, %v5199_v7  ;;  %v1829_v18 = vshrl.u32 %v4823_v63, 16  ;;  %v1727_v21 = vor.u32 %v1726_v11, %v1722_v10  ;;  %v1737_v23 = vshll.u32 %v5202_v13, 16  ;;  %v5254_v11 = vld [vmem:[#allocation2 + $0x28] sm:$0xff]  }
  0x42   : > { %v5210_v24 = vrot.slane %v1833_v15, 1  ;;  %v2209_v34 = vrot.slane %v5212_v25, 1  ;;  %v2186_v38 = vrot.slane %v4830_v29, 1  ;;  %v2187_v41 = vrot.slane %v4831_v33, 1 }
  0x43   : > { %v1831_v28 = vor.u32 %v1829_v18, %v1827_v17  ;;  %v2213_v45 = vrot.slane %v5223_v37, 1  ;;  %vm474_vm2 = vcmask 31744   ;;  %v2865_v52 = vshll.u32 %v4838_v43, 16 }
  0x44   : > { %902 = vrot.lane.b32.xlu1 %v819_v22, %s5038_s29  ;;  %v1731_v22 = vrot.slane %v1729_v12, 1  ;;  %v2188_v47 = vsel %vm1137_vm1, %v2186_v38, %v2187_v41  ;;  %477 = vst.msk [vmem:[#allocation3 + $0x10] sm:$0xff] %vm474_vm2, %v4856_v53  ;;  %v2772_v0 = vshll.u32 %v4840_v50, 16  ;;  %475 = vst.msk [vmem:[#allocation3] sm:$0xff] %vm474_vm2, %v4857_v58  ;;  %v2770_v10 = vshrl.u32 %v4840_v50, 16  ;;  %v4872_v50 = vld [vmem:[#allocation2 + $0x48] sm:$0xff]  }
  0x45   : > { %900 = vrot.lane.b32.xlu0 %v811_v27, %s5038_s29  ;;  %v1828_v27 = vsel %vm671_vm0, %v1823_v16, %v1827_v17  ;;  %v1836_v35 = vsel %vm671_vm0, %v1831_v28, %v5210_v24  ;;  %v5251_v5 = vrot.slane %v2865_v52, 1  ;;  %478 = vst.msk [vmem:[#allocation3 + $0x18] sm:$0xff] %vm474_vm2, %v4860_v4  ;;  %476 = vst.msk [vmem:[#allocation3 + $0x8] sm:$0xff] %vm474_vm2, %v4861_v8  ;;  %v4864_v16 = vld [vmem:[#allocation2 + $0x28] sm:$0xff]   ;;  %v4845_v28 = vld [vmem:[#allocation2 + $0x80] sm:$0xff]   ;;  %vm940_vm3 = vcmask 64544  }
  0x46   : > { %v1732_v30 = vsel %vm671_vm0, %v1727_v21, %v1731_v22  ;;  %v1735_v31 = vor.u32 %v1733_v20, %v1731_v22  ;;  %v2774_v12 = vrot.slane %v2772_v0, 1  ;;  %v4837_v20 = vld [vmem:[#allocation2 + $0x20] sm:$0xff]   ;;  %v2785_v22 = vshll.u32 %v5254_v11, 16  ;;  %480 = vst.msk [vmem:[#allocation3 + $0x28] sm:$0xff] %vm474_vm2, %v4864_v16  ;;  %v4846_v38 = vld [vmem:[#allocation2 + $0x18] sm:$0xfe]  }
  0x47   : > { %v4873_v52 = vld [vmem:[#allocation2 + $0x40] sm:$0xff]   ;;  %484 = vst.msk [vmem:[#allocation3 + $0x48] sm:$0xff] %vm474_vm2, %v4872_v50  ;;  %492 = vst.msk [vmem:[#allocation3 + $0x88] sm:$0xff] %vm474_vm2, %v4888_v51  ;;  %vm3497_vm4 = vcmask 1041408   ;;  %vm1259_vm5 = vcmask 97344   ;;  %vm1524_vm6 = vcmask 130144  }
  0x48   : > { %906 = vrot.lane.b32.xlu1 %v835_v32, %s5038_s29  ;;  %v5217_v32 = vrot.slane %v1737_v23, 1  ;;  %v5263_v23 = vld [vmem:[#allocation2 + $0x78] sm:$0xff]   ;;  %483 = vst.msk [vmem:[#allocation3 + $0x40] sm:$0xff] %vm474_vm2, %v4873_v52  ;;  %v5342_v52 = vld [vmem:[#allocation2 + $0x2c] sm:$0xff]   ;;  %vm1989_vm7 = vcmask 162944   ;;  %vm2307_vm8 = vcmask 195744  }
  0x49   : > { %904 = vrot.lane.b32.xlu0 %v827_v36, %s5038_s29  ;;  %v2211_v36 = vrot.slane %v4829_v26, 1  ;;  %v2775_v26 = vor.u32 %v2774_v12, %v2770_v10  ;;  %v4880_v10 = vld [vmem:[#allocation2 + $0x68] sm:$0xff]   ;;  %vm2572_vm9 = vcmask 228544   ;;  %vm3037_vm10 = vcmask 261344  }
  0x4a   : > { %488 = vst.msk [vmem:[#allocation3 + $0x68] sm:$0xff] %vm474_vm2, %v4880_v10  ;;  %v1753_v10 = vshll.u32 %v5342_v52, 16  ;;  %vm3355_vm11 = vcmask 294144   ;;  %vm3424_vm12 = vcmask 293888   ;;  %vm280_vm13 = vcmask 27648  }
  0x4b   : > { %v2212_v44 = vsel %vm1137_vm1, %v2209_v34, %v2211_v36  ;;  %vm4172_vm14 = vcmask 60416  }
  0x4c   : > { %910 = vrot.lane.b32.xlu1 %v851_v40, %s5038_s29  ;;  %v1740_v40 = vsel %vm671_vm0, %v1735_v31, %v5217_v32  ;;  %v4869_v31 = vld [vmem:[#allocation2 + $0x30] sm:$0xff]  }
  0x4d   : > { %908 = vrot.lane.b32.xlu0 %v843_v46, %s5038_s29  ;;  %v4839_v46 = vld [vmem:[#allocation2 + $0x80] sm:$0xff]   ;;  %481 = vst.msk [vmem:[#allocation3 + $0x30] sm:$0xff] %vm474_vm2, %v4869_v31 }
  0x4e   : > { %v2873_v61 = vshll.u32 %v4839_v46, 16  ;;  %v2877_v3 = vshrl.u32 %v4839_v46, 16  ;;  %v3257_v46 = vrot.slane %v5263_v23, 1  ;;  %v4863_v31 = vld [vmem:[#allocation2 + $0x24] sm:$0xff]  }
  0x4f   : > { %v1745_v50 = vshll.u32 %v4863_v31, 16 }
  0x50   : > { %914 = vrot.lane.b32.xlu1 %v867_v49, %s5038_s29  ;;  %v2189_v49 = vrot.slane %v5228_v42, 1  ;;  %v2875_v18 = vrot.slane %v2873_v61, 1  ;;  %v4850_v61 = vld [vmem:[#allocation2 + $0x78] sm:$0xff]  }
  0x51   : > { %912 = vrot.lane.b32.xlu0 %v859_v55, %s5038_s29  ;;  %v2214_v55 = vsel %vm1137_vm1, %v2211_v36, %v2213_v45  ;;  %v5272_v36 = vrot.slane %v2785_v22, 1  ;;  %v4885_v22 = vld [vmem:[#allocation2 + $0x70] sm:$0xff]  }
  0x52   : > { %v2190_v63 = vsel %vm1137_vm1, %v2187_v41, %v2189_v49  ;;  %489 = vst.msk [vmem:[#allocation3 + $0x70] sm:$0xff] %vm474_vm2, %v4885_v22 }
  0x54   : > { %1211 = vrot.lane.b32.xlu1 %v1164_v56, %s5039_s30  ;;  %v2869_v56 = vshrl.u32 %v4838_v43, 16 }
  0x55   : > { %1187 = vrot.lane.b32.xlu0 %v1140_v59, %s5039_s30  ;;  %v4834_v59 = vld [vmem:[#allocation2 + $0x78] sm:$0xff]  }
  0x56   : > { %v2871_v17 = vor.u32 %v2869_v56, %v5251_v5  ;;  %v5284_v56 = vld [vmem:[#allocation2 + $0x28] sm:$0xff]  }
  0x57   : > { %v3237_v8 = vrot.slane %v5284_v56, 1 }
  0x58   : > { %1213 = vrot.lane.b32.xlu1 %v1166_v62, %s5039_s30  ;;  %v4841_v62 = vld [vmem:[#allocation2 + $0x20] sm:$0xff]   ;;  %v2876_v33 = vsel %vm671_vm0, %v2871_v17, %v2875_v18 }
  0x59   : > { %1189 = vrot.lane.b32.xlu0 %v1142_v2, %s5039_s30  ;;  %v4835_v2 = vld [vmem:[#allocation2 + $0x18] sm:$0xff]   ;;  %v2781_v21 = vshrl.u32 %v4841_v62, 16 }
  0x5c   : > { %1476 = vrot.lane.b32.xlu1 %v4818_v1, %s5040_s5  ;;  %v5247_v1 = vld [vmem:[#allocation2 + $0x88] sm:$0xff]  }
  0x5d   : > { %1452 = vrot.lane.b32.xlu0 %v4819_v9, %s5040_s5  ;;  %v4836_v9 = vld [vmem:[#allocation2 + $0x80] sm:$0xff]   ;;  %v2881_v15 = vshll.u32 %v5247_v1, 16 }
  0x5f   : > { %v5268_v29 = vrot.slane %v2881_v15, 1  ;;  %v4881_v15 = vld [vmem:[#allocation2 + $0x60] sm:$0xff]  }
  0x60   : > { %1478 = vrot.lane.b32.xlu1 %v4820_v14, %s5040_s5  ;;  %v2777_v14 = vshll.u32 %v4841_v62, 16  ;;  %v4876_v62 = vld [vmem:[#allocation2 + $0x58] sm:$0xff]   ;;  %487 = vst.msk [vmem:[#allocation3 + $0x60] sm:$0xff] %vm474_vm2, %v4881_v15 }
  0x61   : > { %1454 = vrot.lane.b32.xlu0 %v4821_v19, %s5040_s5  ;;  %v4865_v19 = vld [vmem:[#allocation2 + $0x20] sm:$0xff]   ;;  %486 = vst.msk [vmem:[#allocation3 + $0x58] sm:$0xff] %vm474_vm2, %v4876_v62  ;;  %v4896_v62 = vld [vmem:[#allocation2 + $0xa8] sm:$0xff]  }
  0x62   : > { %479 = vst.msk [vmem:[#allocation3 + $0x20] sm:$0xff] %vm474_vm2, %v4865_v19  ;;  %v4884_v19 = vld [vmem:[#allocation2 + $0x78] sm:$0xff]   ;;  %496 = vst.msk [vmem:[#allocation3 + $0xa8] sm:$0xff] %vm474_vm2, %v4896_v62  ;;  %v2885_v62 = vshrl.u32 %v5247_v1, 16 }
  0x63   : > { %490 = vst.msk [vmem:[#allocation3 + $0x78] sm:$0xff] %vm474_vm2, %v4884_v19  ;;  %v4901_v19 = vld [vmem:[#allocation2 + $0xb0] sm:$0xff]  }
  0x64   : > { %1941 = vrot.lane.b32.xlu1 %v1828_v27, %s5041_s6  ;;  %v2779_v27 = vrot.slane %v2777_v14, 1  ;;  %v1167_v14 = vrot.slane %v4850_v61, 1  ;;  %497 = vst.msk [vmem:[#allocation3 + $0xb0] sm:$0xff] %vm474_vm2, %v4901_v19  ;;  %v2887_v1 = vor.u32 %v2885_v62, %v5268_v29 }
  0x65   : > { %1917 = vrot.lane.b32.xlu0 %v1732_v30, %s5041_s6  ;;  %v4868_v30 = vld [vmem:[#allocation2 + $0x38] sm:$0xff]  }
  0x66   : > { %482 = vst.msk [vmem:[#allocation3 + $0x38] sm:$0xff] %vm474_vm2, %v4868_v30  ;;  %v2780_v41 = vsel %vm671_vm0, %v2775_v26, %v2779_v27  ;;  %v2783_v43 = vor.u32 %v2781_v21, %v2779_v27  ;;  %v4889_v30 = vld [vmem:[#allocation2 + $0x80] sm:$0xff]  }
  0x67   : > { %491 = vst.msk [vmem:[#allocation3 + $0x80] sm:$0xff] %vm474_vm2, %v4889_v30 }
  0x68   : > { %1943 = vrot.lane.b32.xlu1 %v1836_v35, %s5041_s6  ;;  %v2879_v35 = vor.u32 %v2877_v3, %v2875_v18  ;;  %v2788_v58 = vsel %vm671_vm0, %v2783_v43, %v5272_v36  ;;  %v4851_v3 = vld [vmem:[#allocation2 + $0x18] sm:$0xff]   ;;  %v5311_v18 = vld [vmem:[#allocation2 + $0x20] sm:$0xff]  }
  0x69   : > { %1919 = vrot.lane.b32.xlu0 %v1740_v40, %s5041_s6  ;;  %v4847_v40 = vld [vmem:[#allocation2 + $0x20] sm:$0xff]   ;;  %v1143_v17 = vrot.slane %v4851_v3, 1  ;;  %v1145_v27 = vrot.slane %v5311_v18, 1 }
  0x6a   : > { %v2884_v53 = vsel %vm671_vm0, %v2879_v35, %v5268_v29  ;;  %v4858_v43 = vld [vmem:[#allocation2 + $0x84] sm:$0xff]  }
  0x6b   : > { %v1144_v26 = vsel %vm1137_vm1, %v1141_v60, %v1143_v17  ;;  %v1146_v54 = vsel %vm1137_vm1, %v1143_v17, %v1145_v27  ;;  %v4854_v60 = vld [vmem:[#allocation2 + $0x7c] sm:$0xff]  }
  0x6c   : > { %2259 = vrot.lane.b32.xlu1 %v2212_v44, %s5042_s7  ;;  %v5277_v44 = vld [vmem:[#allocation2 + $0x88] sm:$0xff]   ;;  %v4900_v17 = vld [vmem:[#allocation2 + $0xb8] sm:$0xff]  }
  0x6d   : > { %2235 = vrot.lane.b32.xlu0 %v2188_v47, %s5042_s7  ;;  %v3259_v47 = vrot.slane %v4845_v28, 1  ;;  %v3261_v0 = vrot.slane %v5277_v44, 1  ;;  %v4862_v28 = vld [vmem:[#allocation2 + $0x84] sm:$0xff]   ;;  %498 = vst.msk [vmem:[#allocation3 + $0xb8] sm:$0xff] %vm474_vm2, %v4900_v17 }
  0x6e   : > { %v1841_v35 = vshll.u32 %v4862_v28, 16 }
  0x6f   : > { %v3262_v12 = vsel %vm1137_vm1, %v3259_v47, %v3261_v0 }
  0x70   : > { %2261 = vrot.lane.b32.xlu1 %v2214_v55, %s5042_s7  ;;  %v3234_v55 = vrot.slane %v4846_v38, 1  ;;  %v5337_v38 = vld [vmem:[#allocation2 + $0x8c] sm:$0xff]  }
  0x71   : > { %2237 = vrot.lane.b32.xlu0 %v2190_v63, %s5042_s7  ;;  %v3260_v63 = vsel %vm1137_vm1, %v3257_v46, %v3259_v47  ;;  %v1741_v47 = vshrl.u32 %v5202_v13, 16  ;;  %v1849_v61 = vshll.u32 %v5337_v38, 16 }
  0x73   : > { %v1743_v3 = vor.u32 %v1741_v47, %v5217_v32 }
  0x74   : > { %2524 = vrot.lane.b32.xlu1 %v4834_v59, %s5043_s8  ;;  %v3235_v59 = vrot.slane %v4847_v40, 1  ;;  %v1837_v40 = vshrl.u32 %v5197_v6, 16 }
  0x75   : > { %2500 = vrot.lane.b32.xlu0 %v4835_v2, %s5043_s8  ;;  %v4877_v2 = vld [vmem:[#allocation2 + $0x50] sm:$0xff]  }
  0x76   : > { %v3236_v4 = vsel %vm1137_vm1, %v3234_v55, %v3235_v59  ;;  %485 = vst.msk [vmem:[#allocation3 + $0x50] sm:$0xff] %vm474_vm2, %v4877_v2  ;;  %v3238_v16 = vsel %vm1137_vm1, %v3235_v59, %v3237_v8  ;;  %v4859_v55 = vld [vmem:[#allocation2 + $0x24] sm:$0xff]   ;;  %v1845_v59 = vshrl.u32 %v4862_v28, 16  ;;  %v1839_v6 = vor.u32 %v1837_v40, %v5210_v24 }
  0x77   : > { %v4897_v2 = vld [vmem:[#allocation2 + $0xa0] sm:$0xff]  }
  0x78   : > { %2526 = vrot.lane.b32.xlu1 %v4836_v9, %s5043_s8  ;;  %v5299_v9 = vld [vmem:[#allocation2 + $0x80] sm:$0xff]   ;;  %495 = vst.msk [vmem:[#allocation3 + $0xa0] sm:$0xff] %vm474_vm2, %v4897_v2  ;;  %v4879_v2 = vld [vmem:[#allocation2 + $0x28] sm:$0xff]  }
  0x79   : > { %2502 = vrot.lane.b32.xlu0 %v4837_v20, %s5043_s8  ;;  %v1168_v20 = vsel %vm1137_vm1, %v1165_v57, %v1167_v14  ;;  %v1169_v21 = vrot.slane %v5299_v9, 1  ;;  %v4870_v24 = vld [vmem:[#allocation2 + $0x84] sm:$0xff]  }
  0x7a   : > { %v4871_v28 = vld [vmem:[#allocation2 + $0x24] sm:$0xff]   ;;  %v2215_v30 = vrot.slane %v4870_v24, 1  ;;  %v4882_v24 = vld [vmem:[#allocation2 + $0x90] sm:$0xff]  }
  0x7b   : > { %v1170_v57 = vsel %vm1137_vm1, %v1167_v14, %v1169_v21 }
  0x7c   : > { %2989 = vrot.lane.b32.xlu1 %v2876_v33, %s5044_s9  ;;  %v4855_v33 = vld [vmem:[#allocation2 + $0x1c] sm:$0xff]  }
  0x7d   : > { %2965 = vrot.lane.b32.xlu0 %v2780_v41, %s5044_s9  ;;  %v4892_v41 = vld [vmem:[#allocation2 + $0x98] sm:$0xff]  }
  0x7e   : > { %494 = vst.msk [vmem:[#allocation3 + $0x98] sm:$0xff] %vm474_vm2, %v4892_v41  ;;  %v2216_v41 = vsel %vm1137_vm1, %v2213_v45, %v2215_v30 }
  0x80   : > { %2991 = vrot.lane.b32.xlu1 %v2884_v53, %s5044_s9  ;;  %v4893_v53 = vld [vmem:[#allocation2 + $0x90] sm:$0xff]  }
  0x81   : > { %2967 = vrot.lane.b32.xlu0 %v2788_v58, %s5044_s9  ;;  %v1843_v58 = vrot.slane %v1841_v35, 1  ;;  %493 = vst.msk [vmem:[#allocation3 + $0x90] sm:$0xff] %vm474_vm2, %v4893_v53  ;;  %v5377_v35 = vld [vmem:[#allocation2 + $0x2c] sm:$0xff]  }
  0x82   : > { %v2193_v53 = vrot.slane %v5377_v35, 1 }
  0x83   : > { %v1844_v14 = vsel %vm671_vm0, %v1839_v6, %v1843_v58  ;;  %v1847_v15 = vor.u32 %v1845_v59, %v1843_v58  ;;  %v4886_v58 = vld [vmem:[#allocation2 + $0x90] sm:$0xff]   ;;  %v4878_v6 = vld [vmem:[#allocation2 + $0x88] sm:$0xff]  }
  0x84   : > { %3307 = vrot.lane.b32.xlu1 %v3260_v63, %s5045_s10  ;;  %v1747_v63 = vrot.slane %v1745_v50, 1  ;;  %v4887_v59 = vld [vmem:[#allocation2 + $0x30] sm:$0xff]  }
  0x85   : > { %3283 = vrot.lane.b32.xlu0 %v3236_v4, %s5045_s10  ;;  %v1749_v4 = vshrl.u32 %v4863_v31, 16  ;;  %v5371_v31 = vld [vmem:[#allocation2 + $0x8c] sm:$0xff]  }
  0x87   : > { %v1751_v22 = vor.u32 %v1749_v4, %v1747_v63  ;;  %v2793_v4 = vshll.u32 %v4887_v59, 16 }
  0x88   : > { %3309 = vrot.lane.b32.xlu1 %v3262_v12, %s5045_s10 }
  0x89   : > { %3285 = vrot.lane.b32.xlu0 %v3238_v16, %s5045_s10  ;;  %v5358_v16 = vrot.slane %v1849_v61, 1  ;;  %v2889_v61 = vshll.u32 %v4886_v58, 16  ;;  %v2795_v19 = vrot.slane %v2793_v4, 1  ;;  %v4931_v4 = vld [vmem:[%s6326_s1 + $0x8] sm:$0xff]  }
  0x8c   : > { %1215 = vrot.lane.b32.xlu1 %v1168_v20, %s5039_s30  ;;  %v1748_v20 = vsel %vm671_vm0, %v1743_v3, %v1747_v63  ;;  %v2789_v3 = vshrl.u32 %v5254_v11, 16 }
  0x8d   : > { %1191 = vrot.lane.b32.xlu0 %v1144_v26, %s5039_s30  ;;  %v5363_v26 = vrot.slane %v1753_v10, 1  ;;  %v5408_v10 = vld [vmem:[#allocation2 + $0x38] sm:$0xff]  }
  0x90   : > { %1217 = vrot.lane.b32.xlu1 %v1170_v57, %s5039_s30  ;;  %v1852_v57 = vsel %vm671_vm0, %v1847_v15, %v5358_v16  ;;  %v2893_v15 = vshrl.u32 %v4886_v58, 16  ;;  %v5433_v58 = vld [vmem:[#allocation2 + $0x98] sm:$0xff]  }
  0x91   : > { %1193 = vrot.lane.b32.xlu0 %v1146_v54, %s5039_s30 }
  0x94   : > { %1480 = vrot.lane.b32.xlu1 %v4854_v60, %s5040_s5  ;;  %v1756_v60 = vsel %vm671_vm0, %v1751_v22, %v5363_v26  ;;  %v2797_v22 = vshrl.u32 %v4887_v59, 16 }
  0x95   : > { %1456 = vrot.lane.b32.xlu0 %v4855_v33, %s5040_s5  ;;  %v2191_v33 = vrot.slane %v4871_v28, 1  ;;  %v2801_v28 = vshll.u32 %v5408_v10, 16 }
  0x96   : > { %v873_v13 = vpop.permute.xlu1 %872 }
  0x97   : > { %943 = vst.msk [vmem:[#allocation3 + $0x10] sm:$0xff] %vm940_vm3, %v873_v13  ;;  %v869_v12 = vpop.permute.xlu0 %868  ;;  %v2192_v50 = vsel %vm1137_vm1, %v2189_v49, %v2191_v33  ;;  %v2194_v42 = vsel %vm1137_vm1, %v2191_v33, %v2193_v53  ;;  %v5404_v13 = vld [vmem:[#allocation2 + $0x98] sm:$0xff]   ;;  %v2799_v33 = vor.u32 %v2797_v22, %v2795_v19 }
  0x98   : > { %1482 = vrot.lane.b32.xlu1 %v4858_v43, %s5040_s5  ;;  %941 = vst.msk [vmem:[#allocation3] sm:$0xff] %vm940_vm3, %v869_v12  ;;  %v2217_v43 = vrot.slane %v5371_v31, 1  ;;  %v2897_v17 = vshll.u32 %v5404_v13, 16 }
  0x99   : > { %1458 = vrot.lane.b32.xlu0 %v4859_v55, %s5040_s5 }
  0x9a   : > { %v875_v32 = vpop.permute.xlu1 %874  ;;  %v2218_v37 = vsel %vm1137_vm1, %v2215_v30, %v2217_v43  ;;  %v5422_v30 = vrot.slane %v2897_v17, 1 }
  0x9b   : > { %944 = vst.msk [vmem:[#allocation3 + $0x18] sm:$0xff] %vm940_vm3, %v875_v32  ;;  %v871_v51 = vpop.permute.xlu0 %870  ;;  %v4883_v32 = vld [vmem:[#allocation2 + $0x30] sm:$0xff]  }
  0x9c   : > { %1945 = vrot.lane.b32.xlu1 %v1844_v14, %s5041_s6  ;;  %942 = vst.msk [vmem:[#allocation3 + $0x8] sm:$0xff] %vm940_vm3, %v871_v51  ;;  %v2891_v14 = vrot.slane %v2889_v61, 1 }
  0x9d   : > { %1921 = vrot.lane.b32.xlu0 %v1748_v20, %s5041_s6  ;;  %v2791_v20 = vor.u32 %v2789_v3, %v5272_v36 }
  0x9e   : > { %v879_v54 = vpop.permute.xlu1 %878  ;;  %v2892_v29 = vsel %vm671_vm0, %v2887_v1, %v2891_v14 }
  0x9f   : > { %946 = vst.msk [vmem:[#allocation3 + $0x28] sm:$0xff] %vm940_vm3, %v879_v54  ;;  %v877_v40 = vpop.permute.xlu0 %876  ;;  %v4894_v54 = vld [vmem:[#allocation2 + $0x90] sm:$0xff]   ;;  %v2796_v36 = vsel %vm671_vm0, %v2791_v20, %v2795_v19 }
  0xa0   : > { %1947 = vrot.lane.b32.xlu1 %v1852_v57, %s5041_s6  ;;  %945 = vst.msk [vmem:[#allocation3 + $0x20] sm:$0xff] %vm940_vm3, %v877_v40  ;;  %v2895_v57 = vor.u32 %v2893_v15, %v2891_v14  ;;  %v5427_v40 = vrot.slane %v2801_v28, 1 }
  0xa1   : > { %1923 = vrot.lane.b32.xlu0 %v1756_v60, %s5041_s6 }
  0xa2   : > { %v883_v47 = vpop.permute.xlu1 %882  ;;  %v2804_v59 = vsel %vm671_vm0, %v2799_v33, %v5427_v40  ;;  %v1853_v33 = vshrl.u32 %v5337_v38, 16 }
  0xa3   : > { %948 = vst.msk [vmem:[#allocation3 + $0x38] sm:$0xff] %vm940_vm3, %v883_v47  ;;  %v881_v55 = vpop.permute.xlu0 %880 }
  0xa4   : > { %2263 = vrot.lane.b32.xlu1 %v2216_v41, %s5042_s7  ;;  %947 = vst.msk [vmem:[#allocation3 + $0x30] sm:$0xff] %vm940_vm3, %v881_v55  ;;  %v4895_v41 = vld [vmem:[#allocation2 + $0x30] sm:$0xff]   ;;  %v3263_v55 = vrot.slane %v4894_v54, 1  ;;  %v1855_v38 = vor.u32 %v1853_v33, %v5358_v16 }
  0xa5   : > { %2239 = vrot.lane.b32.xlu0 %v2192_v50, %s5042_s7  ;;  %v2900_v50 = vsel %vm671_vm0, %v2895_v57, %v5422_v30 }
  0xa6   : > { %v887_v45 = vpop.permute.xlu1 %886  ;;  %v3264_v62 = vsel %vm1137_vm1, %v3261_v0, %v3263_v55 }
  0xa7   : > { %950 = vst.msk [vmem:[#allocation3 + $0x48] sm:$0xff] %vm940_vm3, %v887_v45  ;;  %v885_v49 = vpop.permute.xlu0 %884  ;;  %v5436_v45 = vld [vmem:[#allocation2 + $0x38] sm:$0xff]  }
  0xa8   : > { %2265 = vrot.lane.b32.xlu1 %v2218_v37, %s5042_s7  ;;  %949 = vst.msk [vmem:[#allocation3 + $0x40] sm:$0xff] %vm940_vm3, %v885_v49  ;;  %v4902_v49 = vld [vmem:[#allocation2 + $0x88] sm:$0xff]   ;;  %v3241_v0 = vrot.slane %v5436_v45, 1 }
  0xa9   : > { %2241 = vrot.lane.b32.xlu0 %v2194_v42, %s5042_s7  ;;  %v3239_v42 = vrot.slane %v4895_v41, 1  ;;  %v1171_v14 = vrot.slane %v4902_v49, 1 }
  0xaa   : > { %v891_v63 = vpop.permute.xlu1 %890 }
  0xab   : > { %952 = vst.msk [vmem:[#allocation3 + $0x58] sm:$0xff] %vm940_vm3, %v891_v63  ;;  %v889_v12 = vpop.permute.xlu0 %888  ;;  %v3265_v63 = vrot.slane %v5433_v58, 1  ;;  %v3240_v44 = vsel %vm1137_vm1, %v3237_v8, %v3239_v42  ;;  %v5467_v8 = vld [vmem:[#allocation2 + $0x90] sm:$0xff]   ;;  %v3242_v17 = vsel %vm1137_vm1, %v3239_v42, %v3241_v0  ;;  %v1172_v20 = vsel %vm1137_vm1, %v1169_v21, %v1171_v14 }
  0xac   : > { %2528 = vrot.lane.b32.xlu1 %v4878_v6, %s5043_s8  ;;  %951 = vst.msk [vmem:[#allocation3 + $0x50] sm:$0xff] %vm940_vm3, %v889_v12  ;;  %v4928_v6 = vld [vmem:[%s6326_s1] sm:$0xff]   ;;  %v1173_v22 = vrot.slane %v5467_v8, 1  ;;  %v4910_v21 = vld [vmem:[#allocation2 + $0x94] sm:$0xff]  }
  0xad   : > { %2504 = vrot.lane.b32.xlu0 %v4879_v2, %s5043_s8  ;;  %v4903_v2 = vld [vmem:[#allocation2 + $0x28] sm:$0xff]   ;;  %4691 = vmatprep.subr.bf16.mxu0 %v4928_v6  ;;  %v3266_v56 = vsel %vm1137_vm1, %v3263_v55, %v3265_v63  ;;  %v1857_v41 = vshll.u32 %v4910_v21, 16  ;;  %v1861_v49 = vshrl.u32 %v4910_v21, 16 }
  0xae   : > { %v895_v11 = vpop.permute.xlu1 %894  ;;  %4745 = vmatprep.subr.bf16.mxu1 %v4928_v6  ;;  %4692 = vmatpush3.bf16.msra.mxu0 %v4928_v6  ;;  %v1147_v15 = vrot.slane %v4903_v2, 1  ;;  %v1174_v9 = vsel %vm1137_vm1, %v1171_v14, %v1173_v22  ;;  %v4907_v55 = vld [vmem:[#allocation2 + $0x2c] sm:$0xff]  }
  0xaf   : > { %954 = vst.msk [vmem:[#allocation3 + $0x68] sm:$0xff] %vm940_vm3, %v895_v11  ;;  %v893_v51 = vpop.permute.xlu0 %892  ;;  %4748 = vmatpush3.bf16.msra.mxu1 %v4928_v6  ;;  %4693 = vmatprep.subr.bf16.mxu0 %v4931_v4  ;;  %v5474_v11 = vld [vmem:[#allocation2 + $0x30] sm:$0xff]   ;;  %v5509_v6 = vld [vmem:[#allocation2 + $0x3c] sm:$0xff]  }
  0xb0   : > { %2530 = vrot.lane.b32.xlu1 %v4882_v24, %s5043_s8  ;;  %953 = vst.msk [vmem:[#allocation3 + $0x60] sm:$0xff] %vm940_vm3, %v893_v51  ;;  %v4934_v24 = vld [vmem:[%s6326_s1 + $0x10] ss:$0 sps:$4 sm:$0x33]   ;;  %4746 = vmatprep.subr.bf16.mxu1 %v4931_v4  ;;  %v1148_v51 = vsel %vm1137_vm1, %v1145_v27, %v1147_v15  ;;  %v4911_v27 = vld [vmem:[#allocation2 + $0x34] sm:$0xff]  }
  0xb1   : > { %2506 = vrot.lane.b32.xlu0 %v4883_v32, %s5043_s8  ;;  %v3499_v32 = vsel %vm3497_vm4, %v4934_v24, 0  ;;  %v1761_v42 = vshll.u32 %v4911_v27, 16 }
  0xb2   : > { %v899_v60 = vpop.permute.xlu1 %898  ;;  %4694 = vmatpush3.bf16.msra.mxu0 %v4931_v4 }
  0xb3   : > { %956 = vst.msk [vmem:[#allocation3 + $0x78] sm:$0xff] %vm940_vm3, %v899_v60  ;;  %v897_v47 = vpop.permute.xlu0 %896  ;;  %4749 = vmatpush3.bf16.msra.mxu1 %v4931_v4  ;;  %4751 = vmatprep.subr.msk.bf16.mxu0 %vm3497_vm4, %v4934_v24  ;;  %v1765_v4 = vshrl.u32 %v4911_v27, 16  ;;  %v5539_v27 = vld [vmem:[#allocation2 + $0x3c] sm:$0xff]  }
  0xb4   : > { %2993 = vrot.lane.b32.xlu1 %v2892_v29, %s5044_s9  ;;  %955 = vst.msk [vmem:[#allocation3 + $0x70] sm:$0xff] %vm940_vm3, %v897_v47  ;;  %4752 = vmatprep.subr.msk.bf16.mxu1 %vm3497_vm4, %v4934_v24  ;;  %v1149_v29 = vrot.slane %v5474_v11, 1  ;;  %v5504_v47 = vld [vmem:[#allocation2 + $0x9c] sm:$0xff]   ;;  %v1769_v24 = vshll.u32 %v5509_v6, 16 }
  0xb5   : > { %2969 = vrot.lane.b32.xlu0 %v2796_v36, %s5044_s9  ;;  %v4906_v36 = vld [vmem:[#allocation2 + $0x8c] sm:$0xff]   ;;  %v1865_v2 = vshll.u32 %v5504_v47, 16  ;;  %v4937_v11 = vld [vmem:[#allocation2 + $0x9c] sm:$0xff]  }
  0xb6   : > { %v903_v37 = vpop.permute.xlu1 %902  ;;  %4696 = vmatpush3.bf16.msra.mxu0 %v3499_v32  ;;  %v1150_v18 = vsel %vm1137_vm1, %v1147_v15, %v1149_v29  ;;  %v4914_v15 = vld [vmem:[#allocation2 + $0x94] sm:$0xff]  }
  0xb7   : > { %958 = vst.msk [vmem:[#allocation3 + $0x88] sm:$0xff] %vm940_vm3, %v903_v37  ;;  %v901_v61 = vpop.permute.xlu0 %900  ;;  %4750 = vmatpush3.bf16.msra.mxu1 %v3499_v32  ;;  %v1757_v37 = vshrl.u32 %v5342_v52, 16 }
  0xb8   : > { %2995 = vrot.lane.b32.xlu1 %v2900_v50, %s5044_s9  ;;  %957 = vst.msk [vmem:[#allocation3 + $0x80] sm:$0xff] %vm940_vm3, %v901_v61 }
  0xb9   : > { %2971 = vrot.lane.b32.xlu0 %v2804_v59, %s5044_s9  ;;  %v4908_v59 = vld [vmem:[#allocation2 + $0x94] sm:$0xff]  }
  0xba   : > { %v907_v3 = vpop.permute.xlu1 %906 }
  0xbb   : > { %960 = vst.msk [vmem:[#allocation3 + $0x98] sm:$0xff] %vm940_vm3, %v907_v3  ;;  %v905_v12 = vpop.permute.xlu0 %904  ;;  %v4909_v3 = vld [vmem:[#allocation2 + $0x34] sm:$0xff]  }
  0xbc   : > { %3311 = vrot.lane.b32.xlu1 %v3264_v62, %s5045_s10  ;;  %959 = vst.msk [vmem:[#allocation3 + $0x90] sm:$0xff] %vm940_vm3, %v905_v12  ;;  %v1859_v62 = vrot.slane %v1857_v41, 1  ;;  %v1763_v12 = vrot.slane %v1761_v42, 1 }
  0xbd   : > { %3287 = vrot.lane.b32.xlu0 %v3240_v44, %s5045_s10  ;;  %v1759_v44 = vor.u32 %v1757_v37, %v5363_v26 }
  0xbe   : > { %v911_v1 = vpop.permute.xlu1 %910  ;;  %v1860_v16 = vsel %vm671_vm0, %v1855_v38, %v1859_v62  ;;  %v1863_v14 = vor.u32 %v1861_v49, %v1859_v62  ;;  %v1767_v32 = vor.u32 %v1765_v4, %v1763_v12  ;;  %v4918_v49 = vld [vmem:[#allocation2 + $0x98] sm:$0xff]   ;;  %v5566_v62 = vld [vmem:[#allocation2 + $0xa8] sm:$0xff]  }
  0xbf   : > { %962 = vst.msk [vmem:[#allocation3 + $0xa8] sm:$0xff] %vm940_vm3, %v911_v1  ;;  %v909_v19 = vpop.permute.xlu0 %908  ;;  %v5522_v1 = vrot.slane %v1865_v2, 1  ;;  %v1764_v26 = vsel %vm671_vm0, %v1759_v44, %v1763_v12  ;;  %v5571_v44 = vld [vmem:[#allocation2 + $0x48] sm:$0xff]  }
  0xc0   : > { %3313 = vrot.lane.b32.xlu1 %v3266_v56, %s5045_s10  ;;  %961 = vst.msk [vmem:[#allocation3 + $0xa0] sm:$0xff] %vm940_vm3, %v909_v19  ;;  %v5527_v19 = vrot.slane %v1769_v24, 1 }
  0xc1   : > { %3289 = vrot.lane.b32.xlu0 %v3242_v17, %s5045_s10 }
  0xc2   : > { %v915_v28 = vpop.permute.xlu1 %914 }
  0xc3   : > { %964 = vst.msk [vmem:[#allocation3 + $0xb8] sm:$0xff] %vm940_vm3, %v915_v28  ;;  %v913_v57 = vpop.permute.xlu0 %912 }
  0xc4   : > { %1219 = vrot.lane.b32.xlu1 %v1172_v20, %s5039_s30  ;;  %963 = vst.msk [vmem:[#allocation3 + $0xb0] sm:$0xff] %vm940_vm3, %v913_v57  ;;  %v4915_v20 = vld [vmem:[#allocation2 + $0x34] sm:$0xff]   ;;  %v1868_v57 = vsel %vm671_vm0, %v1863_v14, %v5522_v1  ;;  %v2913_v14 = vshll.u32 %v5566_v62, 16 }
  0xc5   : > { %1195 = vrot.lane.b32.xlu0 %v1148_v51, %s5039_s30  ;;  %v5530_v51 = vld [vmem:[#allocation2 + $0x9c] sm:$0xff]  }
  0xc6   : > { %v1212_v54 = vpop.permute.xlu1 %1211 }
  0xc7   : > { %1272 = vst.msk [vmem:[#allocation3 + $0x60] sm:$0xff] %vm1259_vm5, %v1212_v54  ;;  %v1188_v60 = vpop.permute.xlu0 %1187  ;;  %v1772_v54 = vsel %vm671_vm0, %v1767_v32, %v5527_v19 }
  0xc8   : > { %1221 = vrot.lane.b32.xlu1 %v1174_v9, %s5039_s30  ;;  %1260 = vst.msk [vmem:[#allocation3] sm:$0xff] %vm1259_vm5, %v1188_v60  ;;  %v2219_v9 = vrot.slane %v4914_v15, 1  ;;  %v4921_v15 = vld [vmem:[#allocation2 + $0x40] sm:$0xff]  }
  0xc9   : > { %1197 = vrot.lane.b32.xlu0 %v1150_v18, %s5039_s30  ;;  %v2195_v18 = vrot.slane %v4915_v20, 1  ;;  %v2817_v20 = vshll.u32 %v5571_v44, 16 }
  0xca   : > { %v1214_v50 = vpop.permute.xlu1 %1213  ;;  %v2220_v33 = vsel %vm1137_vm1, %v2217_v43, %v2219_v9  ;;  %v4922_v43 = vld [vmem:[#allocation2 + $0xa0] sm:$0xff]  }
  0xcb   : > { %1273 = vst.msk [vmem:[#allocation3 + $0x68] sm:$0xff] %vm1259_vm5, %v1214_v50  ;;  %v1190_v61 = vpop.permute.xlu0 %1189  ;;  %v2196_v50 = vsel %vm1137_vm1, %v2193_v53, %v2195_v18  ;;  %v4923_v53 = vld [vmem:[#allocation2 + $0x40] sm:$0xff]   ;;  %v2905_v38 = vshll.u32 %v4922_v43, 16  ;;  %v2909_v24 = vshrl.u32 %v4922_v43, 16 }
  0xcc   : > { %1484 = vrot.lane.b32.xlu1 %v4906_v36, %s5040_s5  ;;  %1261 = vst.msk [vmem:[#allocation3 + $0x8] sm:$0xff] %vm1259_vm5, %v1190_v61  ;;  %v2221_v36 = vrot.slane %v5530_v51, 1  ;;  %v2901_v61 = vshrl.u32 %v5404_v13, 16  ;;  %v2809_v4 = vshll.u32 %v4923_v53, 16  ;;  %v4920_v13 = vld [vmem:[#allocation2 + $0xa0] sm:$0xff]  }
  0xcd   : > { %1460 = vrot.lane.b32.xlu0 %v4907_v55, %s5040_s5  ;;  %v2197_v55 = vrot.slane %v5539_v27, 1 }
  0xce   : > { %v1477_v52 = vpop.permute.xlu1 %1476  ;;  %v2222_v31 = vsel %vm1137_vm1, %v2219_v9, %v2221_v36  ;;  %v2811_v32 = vrot.slane %v2809_v4, 1  ;;  %v5584_v9 = vrot.slane %v2913_v14, 1 }
  0xcf   : > { %1537 = vst.msk [vmem:[#allocation3 + $0x60] sm:$0xff] %vm1524_vm6, %v1477_v52  ;;  %v1453_v56 = vpop.permute.xlu0 %1452  ;;  %v2198_v35 = vsel %vm1137_vm1, %v2195_v18, %v2197_v55  ;;  %v4919_v52 = vld [vmem:[#allocation2 + $0x38] sm:$0xff]  }
  0xd0   : > { %1486 = vrot.lane.b32.xlu1 %v4908_v59, %s5040_s5  ;;  %1525 = vst.msk [vmem:[#allocation3] sm:$0xff] %vm1524_vm6, %v1453_v56  ;;  %v2903_v56 = vor.u32 %v2901_v61, %v5422_v30 }
  0xd1   : > { %1462 = vrot.lane.b32.xlu0 %v4909_v3, %s5040_s5  ;;  %v2805_v3 = vshrl.u32 %v5408_v10, 16 }
  0xd2   : > { %v1479_v17 = vpop.permute.xlu1 %1478 }
  0xd3   : > { %1538 = vst.msk [vmem:[#allocation3 + $0x68] sm:$0xff] %vm1524_vm6, %v1479_v17  ;;  %v1455_v28 = vpop.permute.xlu0 %1454  ;;  %v2813_v17 = vshrl.u32 %v4923_v53, 16  ;;  %v5601_v53 = vld [vmem:[#allocation2 + $0x48] sm:$0xff]  }
  0xd4   : > { %1949 = vrot.lane.b32.xlu1 %v1860_v16, %s5041_s6  ;;  %1526 = vst.msk [vmem:[#allocation3 + $0x8] sm:$0xff] %vm1524_vm6, %v1455_v28  ;;  %v2907_v16 = vrot.slane %v2905_v38, 1  ;;  %v4932_v38 = vld [vmem:[#allocation2 + $0x98] sm:$0xff]   ;;  %v3245_v4 = vrot.slane %v5601_v53, 1 }
  0xd5   : > { %1925 = vrot.lane.b32.xlu0 %v1764_v26, %s5041_s6  ;;  %v2807_v26 = vor.u32 %v2805_v3, %v5427_v40  ;;  %v2815_v18 = vor.u32 %v2813_v17, %v2811_v32 }
  0xd6   : > { %v1942_v21 = vpop.permute.xlu1 %1941  ;;  %v2908_v30 = vsel %vm671_vm0, %v2903_v56, %v2907_v16 }
  0xd7   : > { %2002 = vst.msk [vmem:[#allocation3 + $0x60] sm:$0xff] %vm1989_vm7, %v1942_v21  ;;  %v1918_v60 = vpop.permute.xlu0 %1917  ;;  %v4926_v21 = vld [vmem:[#allocation2 + $0xa0] sm:$0xff]   ;;  %v2812_v40 = vsel %vm671_vm0, %v2807_v26, %v2811_v32 }
  0xd8   : > { %1951 = vrot.lane.b32.xlu1 %v1868_v57, %s5041_s6  ;;  %1990 = vst.msk [vmem:[#allocation3] sm:$0xff] %vm1989_vm7, %v1918_v60  ;;  %v2911_v57 = vor.u32 %v2909_v24, %v2907_v16  ;;  %v5589_v60 = vrot.slane %v2817_v20, 1 }
  0xd9   : > { %1927 = vrot.lane.b32.xlu0 %v1772_v54, %s5041_s6 }
  0xda   : > { %v1944_v41 = vpop.permute.xlu1 %1943 }
  0xdb   : > { %2003 = vst.msk [vmem:[#allocation3 + $0x68] sm:$0xff] %vm1989_vm7, %v1944_v41  ;;  %v1920_v37 = vpop.permute.xlu0 %1919 }
  0xdc   : > { %2267 = vrot.lane.b32.xlu1 %v2220_v33, %s5042_s7  ;;  %1991 = vst.msk [vmem:[#allocation3 + $0x8] sm:$0xff] %vm1989_vm7, %v1920_v37  ;;  %v4927_v33 = vld [vmem:[#allocation2 + $0x40] sm:$0xff]   ;;  %v3267_v37 = vrot.slane %v4926_v21, 1 }
  0xdd   : > { %2243 = vrot.lane.b32.xlu0 %v2196_v50, %s5042_s7  ;;  %v2916_v50 = vsel %vm671_vm0, %v2911_v57, %v5584_v9  ;;  %v5652_v57 = vld [vmem:[#allocation2 + $0xac] sm:$0xff]  }
  0xde   : > { %v2260_v59 = vpop.permute.xlu1 %2259 }
  0xdf   : > { %2320 = vst.msk [vmem:[#allocation3 + $0x60] sm:$0xff] %vm2307_vm8, %v2260_v59  ;;  %v2236_v42 = vpop.permute.xlu0 %2235  ;;  %v2820_v59 = vsel %vm671_vm0, %v2815_v18, %v5589_v60  ;;  %v1869_v18 = vshrl.u32 %v5504_v47, 16 }
  0xe0   : > { %2269 = vrot.lane.b32.xlu1 %v2222_v31, %s5042_s7  ;;  %2308 = vst.msk [vmem:[#allocation3] sm:$0xff] %vm2307_vm8, %v2236_v42  ;;  %v5595_v31 = vld [vmem:[#allocation2 + $0xa8] sm:$0xff]  }
  0xe1   : > { %2245 = vrot.lane.b32.xlu0 %v2198_v35, %s5042_s7  ;;  %v3243_v35 = vrot.slane %v4927_v33, 1  ;;  %v3269_v61 = vrot.slane %v5595_v31, 1 }
  0xe2   : > { %v2262_v2 = vpop.permute.xlu1 %2261 }
  0xe3   : > { %2321 = vst.msk [vmem:[#allocation3 + $0x68] sm:$0xff] %vm2307_vm8, %v2262_v2  ;;  %v2238_v12 = vpop.permute.xlu0 %2237  ;;  %v3244_v3 = vsel %vm1137_vm1, %v3241_v0, %v3243_v35  ;;  %v3270_v58 = vsel %vm1137_vm1, %v3267_v37, %v3269_v61  ;;  %v5623_v0 = vld [vmem:[#allocation2 + $0x40] sm:$0xff]   ;;  %v3246_v56 = vsel %vm1137_vm1, %v3243_v35, %v3245_v4  ;;  %v1773_v35 = vshrl.u32 %v5509_v6, 16 }
  0xe4   : > { %2532 = vrot.lane.b32.xlu1 %v4918_v49, %s5043_s8  ;;  %2309 = vst.msk [vmem:[#allocation3 + $0x8] sm:$0xff] %vm2307_vm8, %v2238_v12  ;;  %v3268_v49 = vsel %vm1137_vm1, %v3265_v63, %v3267_v37  ;;  %v1175_v63 = vrot.slane %v4932_v38, 1  ;;  %v1153_v26 = vrot.slane %v5623_v0, 1  ;;  %v4938_v37 = vld [vmem:[#allocation2 + $0x3c] sm:$0xff]   ;;  %v4940_v6 = vld [vmem:[#allocation2 + $0x44] sm:$0xff]  }
  0xe5   : > { %2508 = vrot.lane.b32.xlu0 %v4919_v52, %s5043_s8  ;;  %v4933_v52 = vld [vmem:[#allocation2 + $0x38] sm:$0xff]  }
  0xe6   : > { %v2525_v10 = vpop.permute.xlu1 %2524  ;;  %v1151_v24 = vrot.slane %v4933_v52, 1  ;;  %v1176_v14 = vsel %vm1137_vm1, %v1173_v22, %v1175_v63  ;;  %v4941_v22 = vld [vmem:[#allocation2 + $0xa4] sm:$0xff]  }
  0xe7   : > { %2585 = vst.msk [vmem:[#allocation3 + $0x60] sm:$0xff] %vm2572_vm9, %v2525_v10  ;;  %v2501_v28 = vpop.permute.xlu0 %2500  ;;  %v1873_v33 = vshll.u32 %v4941_v22, 16 }
  0xe8   : > { %2534 = vrot.lane.b32.xlu1 %v4920_v13, %s5043_s8  ;;  %2573 = vst.msk [vmem:[#allocation3] sm:$0xff] %vm2572_vm9, %v2501_v28  ;;  %v5620_v13 = vld [vmem:[#allocation2 + $0xa0] sm:$0xff]   ;;  %v1152_v17 = vsel %vm1137_vm1, %v1149_v29, %v1151_v24  ;;  %v1154_v29 = vsel %vm1137_vm1, %v1151_v24, %v1153_v26 }
  0xe9   : > { %2510 = vrot.lane.b32.xlu0 %v4921_v15, %s5043_s8  ;;  %v1177_v10 = vrot.slane %v5620_v13, 1  ;;  %v1875_v52 = vrot.slane %v1873_v33, 1  ;;  %v4945_v24 = vld [vmem:[#allocation2 + $0xa4] sm:$0xff]  }
  0xea   : > { %v2527_v54 = vpop.permute.xlu1 %2526 }
  0xeb   : > { %2586 = vst.msk [vmem:[#allocation3 + $0x68] sm:$0xff] %vm2572_vm9, %v2527_v54  ;;  %v2503_v41 = vpop.permute.xlu0 %2502  ;;  %v1178_v8 = vsel %vm1137_vm1, %v1175_v63, %v1177_v10 }
  0xec   : > { %2997 = vrot.lane.b32.xlu1 %v2908_v30, %s5044_s9  ;;  %2574 = vst.msk [vmem:[#allocation3 + $0x8] sm:$0xff] %vm2572_vm9, %v2503_v41  ;;  %v4942_v30 = vld [vmem:[#allocation2 + $0x44] sm:$0xff]  }
  0xed   : > { %2973 = vrot.lane.b32.xlu0 %v2812_v40, %s5044_s9  ;;  %v5655_v40 = vld [vmem:[#allocation2 + $0x4c] sm:$0xff]   ;;  %v1781_v63 = vshrl.u32 %v4942_v30, 16 }
  0xee   : > { %v2990_v43 = vpop.permute.xlu1 %2989  ;;  %v1785_v47 = vshll.u32 %v5655_v40, 16 }
  0xef   : > { %3050 = vst.msk [vmem:[#allocation3 + $0x60] sm:$0xff] %vm3037_vm10, %v2990_v43  ;;  %v2966_v42 = vpop.permute.xlu0 %2965  ;;  %v1777_v43 = vshll.u32 %v4942_v30, 16  ;;  %v5687_v30 = vld [vmem:[#allocation2 + $0xac] sm:$0xff]  }
  0xf0   : > { %2999 = vrot.lane.b32.xlu1 %v2916_v50, %s5044_s9  ;;  %3038 = vst.msk [vmem:[#allocation3] sm:$0xff] %vm3037_vm10, %v2966_v42  ;;  %v1881_v42 = vshll.u32 %v5652_v57, 16 }
  0xf1   : > { %2975 = vrot.lane.b32.xlu0 %v2820_v59, %s5044_s9  ;;  %v4939_v59 = vld [vmem:[#allocation2 + $0xa4] sm:$0xff]  }
  0xf2   : > { %v2992_v2 = vpop.permute.xlu1 %2991 }
  0xf3   : > { %3051 = vst.msk [vmem:[#allocation3 + $0x68] sm:$0xff] %vm3037_vm10, %v2992_v2  ;;  %v2968_v12 = vpop.permute.xlu0 %2967  ;;  %v1871_v2 = vor.u32 %v1869_v18, %v5522_v1  ;;  %v5693_v18 = vld [vmem:[#allocation2 + $0x4c] sm:$0xff]  }
  0xf4   : > { %3315 = vrot.lane.b32.xlu1 %v3268_v49, %s5045_s10  ;;  %3039 = vst.msk [vmem:[#allocation3 + $0x8] sm:$0xff] %vm3037_vm10, %v2968_v12 }
  0xf5   : > { %3291 = vrot.lane.b32.xlu0 %v3244_v3, %s5045_s10  ;;  %v1877_v3 = vshrl.u32 %v4941_v22, 16  ;;  %v1876_v1 = vsel %vm671_vm0, %v1871_v2, %v1875_v52 }
  0xf6   : > { %v3308_v45 = vpop.permute.xlu1 %3307 }
  0xf7   : > { %3368 = vst.msk [vmem:[#allocation3 + $0x60] sm:$0xff] %vm3355_vm11, %v3308_v45  ;;  %v3284_v16 = vpop.permute.xlu0 %3283  ;;  %v1775_v45 = vor.u32 %v1773_v35, %v5527_v19 }
  0xf8   : > { %3317 = vrot.lane.b32.xlu1 %v3270_v58, %s5045_s10  ;;  %3356 = vst.msk [vmem:[#allocation3] sm:$0xff] %vm3355_vm11, %v3284_v16  ;;  %v1779_v58 = vrot.slane %v1777_v43, 1  ;;  %v5674_v16 = vrot.slane %v1881_v42, 1 }
  0xf9   : > { %3293 = vrot.lane.b32.xlu0 %v3246_v56, %s5045_s10 }
  0xfa   : > { %v3310_v15 = vpop.permute.xlu1 %3309  ;;  %v1780_v19 = vsel %vm671_vm0, %v1775_v45, %v1779_v58 }
  0xfb   : > { %3369 = vst.msk [vmem:[#allocation3 + $0x68] sm:$0xff] %vm3355_vm11, %v3310_v15  ;;  %v3286_v32 = vpop.permute.xlu0 %3285  ;;  %v1879_v15 = vor.u32 %v1877_v3, %v1875_v52  ;;  %v5720_v52 = vld [vmem:[#allocation2 + $0xb8] sm:$0xff]  }
  0xfc   : > { %1223 = vrot.lane.b32.xlu1 %v1176_v14, %s5039_s30  ;;  %3357 = vst.msk [vmem:[#allocation3 + $0x8] sm:$0xff] %vm3355_vm11, %v3286_v32  ;;  %v5676_v14 = vrot.slane %v1785_v47, 1  ;;  %v2917_v47 = vshrl.u32 %v5566_v62, 16 }
  0xfd   : > { %1199 = vrot.lane.b32.xlu0 %v1152_v17, %s5039_s30  ;;  %v4946_v17 = vld [vmem:[#allocation2 + $0x44] sm:$0xff]  }
  0xfe   : > { %v1216_v20 = vpop.permute.xlu1 %1215  ;;  %v3392_v28 = vld [vmem:[#allocation3 + $0x60] sm:$0xff]  ;;  %v2919_v62 = vor.u32 %v2917_v47, %v5584_v9 }
  0xff   : > { %1274 = vst.msk [vmem:[#allocation3 + $0x70] sm:$0xff] %vm1259_vm5, %v1216_v20  ;;  %4721 = vmatprep.mubr.msk.bf16.mxu1 %vm3424_vm12, %v3392_v28  ;;  %v1192_v21 = vpop.permute.xlu0 %1191  ;;  %v3380_v54 = vld [vmem:[#allocation3] sm:$0xff]  ;;  %v5046_v20 = vmov 0   ;;  %v1884_v28 = vsel %vm671_vm0, %v1879_v15, %v5674_v16  ;;  %v2929_v15 = vshll.u32 %v5720_v52, 16 }
 0x100   : > { %1225 = vrot.lane.b32.xlu1 %v1178_v8, %s5039_s30  ;;  %1262 = vst.msk [vmem:[#allocation3 + $0x10] sm:$0xff] %vm1259_vm5, %v1192_v21  ;;  %4697 = vmatprep.mubr.msk.bf16.mxu0 %vm3424_vm12, %v3380_v54  ;;  %v1783_v8 = vor.u32 %v1781_v63, %v1779_v58  ;;  %v2199_v54 = vrot.slane %v4946_v17, 1  ;;  %v5725_v63 = vld [vmem:[#allocation2 + $0x58] sm:$0xff]  }
 0x101   : > { %1201 = vrot.lane.b32.xlu0 %v1154_v29, %s5039_s30  ;;  %281 = vst.msk [vmem:[#allocation2 + $0xd8] sm:$0xf] %vm280_vm13, %v5046_v20 }
 0x102   : > { %v1218_v41 = vpop.permute.xlu1 %1217  ;;  %v3393_v50 = vld [vmem:[#allocation3 + $0x68] sm:$0xff]  ;;  %v1788_v21 = vsel %vm671_vm0, %v1783_v8, %v5676_v14  ;;  %v2200_v43 = vsel %vm1137_vm1, %v2197_v55, %v2199_v54  ;;  %v4954_v55 = vld [vmem:[#allocation2 + $0x50] sm:$0xff]  }
 0x103   : > { %1275 = vst.msk [vmem:[#allocation3 + $0x78] sm:$0xff] %vm1259_vm5, %v1218_v41  ;;  %4722 = vmatmul.mubr.msk.bf16.vlgmr.msra.gmra.mrb[0].mxu1 %vm3424_vm12, %v3393_v50  ;;  %v1194_v49 = vpop.permute.xlu0 %1193  ;;  %v3381_v38 = vld [vmem:[#allocation3 + $0x8] sm:$0xff]  ;;  %v2225_v50 = vrot.slane %v5687_v30, 1  ;;  %v2825_v58 = vshll.u32 %v4954_v55, 16  ;;  %v2829_v8 = vshrl.u32 %v4954_v55, 16  ;;  %v5755_v55 = vld [vmem:[#allocation2 + $0x58] sm:$0xff]  }
 0x104   : > { %1488 = vrot.lane.b32.xlu1 %v4937_v11, %s5040_s5  ;;  %1263 = vst.msk [vmem:[#allocation3 + $0x18] sm:$0xff] %vm1259_vm5, %v1194_v49  ;;  %4698 = vmatmul.mubr.msk.bf16.vlgmr.msra.gmra.mrb[0].mxu0 %vm3424_vm12, %v3381_v38  ;;  %v2223_v11 = vrot.slane %v4945_v24, 1  ;;  %v4949_v38 = vld [vmem:[#allocation2 + $0xa8] sm:$0xff]   ;;  %v4951_v24 = vld [vmem:[#allocation2 + $0xb0] sm:$0xff]  }
 0x105   : > { %1464 = vrot.lane.b32.xlu0 %v4938_v37, %s5040_s5 }
 0x106   : > { %v1481_v12 = vpop.permute.xlu1 %1480  ;;  %v2224_v41 = vsel %vm1137_vm1, %v2221_v36, %v2223_v11  ;;  %v2226_v51 = vsel %vm1137_vm1, %v2223_v11, %v2225_v50  ;;  %v4953_v36 = vld [vmem:[#allocation2 + $0xb0] sm:$0xff]   ;;  %v5738_v11 = vrot.slane %v2929_v15, 1 }
 0x107   : > { %1539 = vst.msk [vmem:[#allocation3 + $0x70] sm:$0xff] %vm1524_vm6, %v1481_v12  ;;  %v1457_v56 = vpop.permute.xlu0 %1456  ;;  %v2921_v2 = vshll.u32 %v4953_v36, 16  ;;  %v4950_v12 = vld [vmem:[#allocation2 + $0x48] sm:$0xff]  }
 0x108   : > { %1490 = vrot.lane.b32.xlu1 %v4939_v59, %s5040_s5  ;;  %1527 = vst.msk [vmem:[#allocation3 + $0x10] sm:$0xff] %vm1524_vm6, %v1457_v56  ;;  %v2201_v59 = vrot.slane %v5693_v18, 1 }
 0x109   : > { %1466 = vrot.lane.b32.xlu0 %v4940_v6, %s5040_s5  ;;  %v2821_v6 = vshrl.u32 %v5571_v44, 16  ;;  %v2923_v56 = vrot.slane %v2921_v2, 1  ;;  %v4961_v2 = vld [vmem:[#allocation2 + $0xa8] sm:$0xff]  }
 0x10a   : > { %v1483_v32 = vpop.permute.xlu1 %1482  ;;  %v2202_v27 = vsel %vm1137_vm1, %v2199_v54, %v2201_v59 }
 0x10b   : > { %1540 = vst.msk [vmem:[#allocation3 + $0x78] sm:$0xff] %vm1524_vm6, %v1483_v32  ;;  %v1459_v22 = vpop.permute.xlu0 %1458  ;;  %v4952_v32 = vld [vmem:[#allocation2 + $0x50] sm:$0xff]   ;;  %v2823_v44 = vor.u32 %v2821_v6, %v5589_v60  ;;  %v2924_v9 = vsel %vm671_vm0, %v2919_v62, %v2923_v56  ;;  %v3249_v6 = vrot.slane %v5755_v55, 1 }
 0x10c   : > { %1953 = vrot.lane.b32.xlu1 %v1876_v1, %s5041_s6  ;;  %1528 = vst.msk [vmem:[#allocation3 + $0x18] sm:$0xff] %vm1524_vm6, %v1459_v22  ;;  %v2925_v1 = vshrl.u32 %v4953_v36, 16  ;;  %v2833_v22 = vshll.u32 %v5725_v63, 16 }
 0x10d   : > { %1929 = vrot.lane.b32.xlu0 %v1780_v19, %s5041_s6  ;;  %v2827_v19 = vrot.slane %v2825_v58, 1  ;;  %v4962_v58 = vld [vmem:[#allocation2 + $0x48] sm:$0xff]  }
 0x10e   : > { %v1946_v29 = vpop.permute.xlu1 %1945  ;;  %v1155_v62 = vrot.slane %v4962_v58, 1  ;;  %v4968_v58 = vld [vmem:[#allocation2 + $0x54] sm:$0xff]  }
 0x10f   : > { %2004 = vst.msk [vmem:[#allocation3 + $0x70] sm:$0xff] %vm1989_vm7, %v1946_v29  ;;  %v1922_v33 = vpop.permute.xlu0 %1921  ;;  %v4957_v29 = vld [vmem:[#allocation2 + $0xb0] sm:$0xff]   ;;  %v2828_v60 = vsel %vm671_vm0, %v2823_v44, %v2827_v19  ;;  %v2831_v54 = vor.u32 %v2829_v8, %v2827_v19 }
 0x110   : > { %1955 = vrot.lane.b32.xlu1 %v1884_v28, %s5041_s6  ;;  %1992 = vst.msk [vmem:[#allocation3 + $0x10] sm:$0xff] %vm1989_vm7, %v1922_v33  ;;  %v2927_v28 = vor.u32 %v2925_v1, %v2923_v56  ;;  %v5743_v33 = vrot.slane %v2833_v22, 1  ;;  %v5781_v56 = vld [vmem:[#allocation2 + $0x50] sm:$0xff]   ;;  %v1156_v44 = vsel %vm1137_vm1, %v1153_v26, %v1155_v62 }
 0x111   : > { %1931 = vrot.lane.b32.xlu0 %v1788_v21, %s5041_s6  ;;  %v1157_v19 = vrot.slane %v5781_v56, 1  ;;  %v4970_v26 = vld [vmem:[#allocation2 + $0x54] sm:$0xff]  }
 0x112   : > { %v1948_v37 = vpop.permute.xlu1 %1947 }
 0x113   : > { %2005 = vst.msk [vmem:[#allocation3 + $0x78] sm:$0xff] %vm1989_vm7, %v1948_v37  ;;  %v1924_v35 = vpop.permute.xlu0 %1923  ;;  %v1158_v0 = vsel %vm1137_vm1, %v1155_v62, %v1157_v19 }
 0x114   : > { %2271 = vrot.lane.b32.xlu1 %v2224_v41, %s5042_s7  ;;  %1993 = vst.msk [vmem:[#allocation3 + $0x18] sm:$0xff] %vm1989_vm7, %v1924_v35  ;;  %v4958_v41 = vld [vmem:[#allocation2 + $0x50] sm:$0xff]   ;;  %v3271_v35 = vrot.slane %v4957_v29, 1 }
 0x115   : > { %2247 = vrot.lane.b32.xlu0 %v2200_v43, %s5042_s7  ;;  %v2932_v43 = vsel %vm671_vm0, %v2927_v28, %v5738_v11  ;;  %v4965_v29 = vld [vmem:[#allocation2 + $0xac] sm:$0xff]  }
 0x116   : > { %v2264_v42 = vpop.permute.xlu1 %2263 }
 0x117   : > { %2322 = vst.msk [vmem:[#allocation3 + $0x70] sm:$0xff] %vm2307_vm8, %v2264_v42  ;;  %v2240_v49 = vpop.permute.xlu0 %2239  ;;  %v2836_v42 = vsel %vm671_vm0, %v2831_v54, %v5743_v33  ;;  %v5810_v54 = vld [vmem:[#allocation2 + $0xbc] sm:$0xff]  }
 0x118   : > { %2273 = vrot.lane.b32.xlu1 %v2226_v51, %s5042_s7  ;;  %2310 = vst.msk [vmem:[#allocation3 + $0x10] sm:$0xff] %vm2307_vm8, %v2240_v49  ;;  %v5749_v51 = vld [vmem:[#allocation2 + $0xb8] sm:$0xff]  }
 0x119   : > { %2249 = vrot.lane.b32.xlu0 %v2202_v27, %s5042_s7  ;;  %v3247_v27 = vrot.slane %v4958_v41, 1  ;;  %v3273_v47 = vrot.slane %v5749_v51, 1 }
 0x11a   : > { %v2266_v3 = vpop.permute.xlu1 %2265 }
 0x11b   : > { %2323 = vst.msk [vmem:[#allocation3 + $0x78] sm:$0xff] %vm2307_vm8, %v2266_v3  ;;  %v2242_v45 = vpop.permute.xlu0 %2241  ;;  %v3274_v31 = vsel %vm1137_vm1, %v3271_v35, %v3273_v47 }
 0x11c   : > { %2536 = vrot.lane.b32.xlu1 %v4949_v38, %s5043_s8  ;;  %2311 = vst.msk [vmem:[#allocation3 + $0x18] sm:$0xff] %vm2307_vm8, %v2242_v45  ;;  %v3272_v38 = vsel %vm1137_vm1, %v3269_v61, %v3271_v35  ;;  %v1179_v61 = vrot.slane %v4961_v2, 1  ;;  %v1789_v35 = vshrl.u32 %v5655_v40, 16 }
 0x11d   : > { %2512 = vrot.lane.b32.xlu0 %v4950_v12, %s5043_s8  ;;  %v3248_v12 = vsel %vm1137_vm1, %v3245_v4, %v3247_v27  ;;  %v3250_v4 = vsel %vm1137_vm1, %v3247_v27, %v3249_v6 }
 0x11e   : > { %v2529_v17 = vpop.permute.xlu1 %2528  ;;  %v1180_v15 = vsel %vm1137_vm1, %v1177_v10, %v1179_v61  ;;  %v4969_v10 = vld [vmem:[#allocation2 + $0xb4] sm:$0xff]  }
 0x11f   : > { %2587 = vst.msk [vmem:[#allocation3 + $0x70] sm:$0xff] %vm2572_vm9, %v2529_v17  ;;  %v2505_v20 = vpop.permute.xlu0 %2504 }
 0x120   : > { %2538 = vrot.lane.b32.xlu1 %v4951_v24, %s5043_s8  ;;  %2575 = vst.msk [vmem:[#allocation3 + $0x10] sm:$0xff] %vm2572_vm9, %v2505_v20  ;;  %v5774_v24 = vld [vmem:[#allocation2 + $0xb0] sm:$0xff]  }
 0x121   : > { %2514 = vrot.lane.b32.xlu0 %v4952_v32, %s5043_s8  ;;  %v1181_v17 = vrot.slane %v5774_v24, 1  ;;  %v4996_v24 = vld [vmem:[#allocation2 + $0xc4] sm:$0xff]  }
 0x122   : > { %v2531_v21 = vpop.permute.xlu1 %2530 }
 0x123   : > { %2588 = vst.msk [vmem:[#allocation3 + $0x78] sm:$0xff] %vm2572_vm9, %v2531_v21  ;;  %v2507_v37 = vpop.permute.xlu0 %2506  ;;  %v1182_v13 = vsel %vm1137_vm1, %v1179_v61, %v1181_v17  ;;  %v1885_v21 = vshrl.u32 %v5652_v57, 16  ;;  %v4967_v57 = vld [vmem:[#allocation2 + $0xb4] sm:$0xff]   ;;  %v1797_v61 = vshrl.u32 %v4970_v26, 16 }
 0x124   : > { %3001 = vrot.lane.b32.xlu1 %v2924_v9, %s5044_s9  ;;  %2576 = vst.msk [vmem:[#allocation3 + $0x18] sm:$0xff] %vm2572_vm9, %v2507_v37 }
 0x125   : > { %2977 = vrot.lane.b32.xlu0 %v2828_v60, %s5044_s9  ;;  %v1889_v60 = vshll.u32 %v4969_v10, 16 }
 0x126   : > { %v2994_v36 = vpop.permute.xlu1 %2993 }
 0x127   : > { %3052 = vst.msk [vmem:[#allocation3 + $0x70] sm:$0xff] %vm3037_vm10, %v2994_v36  ;;  %v2970_v49 = vpop.permute.xlu0 %2969  ;;  %v1793_v36 = vshll.u32 %v4970_v26, 16  ;;  %v1891_v2 = vrot.slane %v1889_v60, 1 }
 0x128   : > { %3003 = vrot.lane.b32.xlu1 %v2932_v43, %s5044_s9  ;;  %3040 = vst.msk [vmem:[#allocation3 + $0x10] sm:$0xff] %vm3037_vm10, %v2970_v49  ;;  %v4966_v43 = vld [vmem:[#allocation2 + $0x4c] sm:$0xff]  }
 0x129   : > { %2979 = vrot.lane.b32.xlu0 %v2836_v42, %s5044_s9  ;;  %v5816_v42 = vld [vmem:[#allocation2 + $0x5c] sm:$0xff]  }
 0x12a   : > { %v2996_v3 = vpop.permute.xlu1 %2995 }
 0x12b   : > { %3053 = vst.msk [vmem:[#allocation3 + $0x78] sm:$0xff] %vm3037_vm10, %v2996_v3  ;;  %v2972_v45 = vpop.permute.xlu0 %2971  ;;  %v1893_v3 = vshrl.u32 %v4969_v10, 16 }
 0x12c   : > { %3319 = vrot.lane.b32.xlu1 %v3272_v38, %s5045_s10  ;;  %3041 = vst.msk [vmem:[#allocation3 + $0x18] sm:$0xff] %vm3037_vm10, %v2972_v45  ;;  %v1887_v38 = vor.u32 %v1885_v21, %v5674_v16  ;;  %v1791_v45 = vor.u32 %v1789_v35, %v5676_v14 }
 0x12d   : > { %3295 = vrot.lane.b32.xlu0 %v3248_v12, %s5045_s10  ;;  %v1897_v12 = vshll.u32 %v5810_v54, 16  ;;  %v1895_v62 = vor.u32 %v1893_v3, %v1891_v2  ;;  %v5874_v3 = vld [vmem:[#allocation2 + $0xc8] sm:$0xff]  }
 0x12e   : > { %v3312_v53 = vpop.permute.xlu1 %3311  ;;  %v1892_v16 = vsel %vm671_vm0, %v1887_v38, %v1891_v2  ;;  %v2933_v38 = vshrl.u32 %v5720_v52, 16 }
 0x12f   : > { %3370 = vst.msk [vmem:[#allocation3 + $0x70] sm:$0xff] %vm3355_vm11, %v3312_v53  ;;  %v3288_v1 = vpop.permute.xlu0 %3287  ;;  %v1801_v53 = vshll.u32 %v5816_v42, 16 }
 0x130   : > { %3321 = vrot.lane.b32.xlu1 %v3274_v31, %s5045_s10  ;;  %3358 = vst.msk [vmem:[#allocation3 + $0x10] sm:$0xff] %vm3355_vm11, %v3288_v1  ;;  %v1795_v31 = vrot.slane %v1793_v36, 1  ;;  %v5830_v1 = vrot.slane %v1897_v12, 1  ;;  %v2935_v52 = vor.u32 %v2933_v38, %v5738_v11 }
 0x131   : > { %3297 = vrot.lane.b32.xlu0 %v3250_v4, %s5045_s10 }
 0x132   : > { %v3314_v32 = vpop.permute.xlu1 %3313  ;;  %v1796_v14 = vsel %vm671_vm0, %v1791_v45, %v1795_v31 }
 0x133   : > { %3371 = vst.msk [vmem:[#allocation3 + $0x78] sm:$0xff] %vm3355_vm11, %v3314_v32  ;;  %v3290_v8 = vpop.permute.xlu0 %3289 }
 0x134   : > { %1227 = vrot.lane.b32.xlu1 %v1180_v15, %s5039_s30  ;;  %3359 = vst.msk [vmem:[#allocation3 + $0x18] sm:$0xff] %vm3355_vm11, %v3290_v8  ;;  %v4973_v15 = vld [vmem:[#allocation2 + $0xb4] sm:$0xff]   ;;  %v5835_v8 = vrot.slane %v1801_v53, 1  ;;  %v4979_v53 = vld [vmem:[#allocation2 + $0xc0] sm:$0xff]  }
 0x135   : > { %1203 = vrot.lane.b32.xlu0 %v1156_v44, %s5039_s30  ;;  %v1799_v44 = vor.u32 %v1797_v61, %v1795_v31  ;;  %v5879_v31 = vld [vmem:[#allocation2 + $0x68] sm:$0xff]  }
 0x136   : > { %v1220_v22 = vpop.permute.xlu1 %1219  ;;  %v3394_v20 = vld [vmem:[#allocation3 + $0x70] sm:$0xff]  ;;  %v2853_v25 = vshrl.u32 %v5879_v31, 16 }
 0x137   : > { %1276 = vst.msk [vmem:[#allocation3 + $0x80] sm:$0xff] %vm1259_vm5, %v1220_v22  ;;  %4725 = vmatprep.mubr.msk.bf16.mxu1 %vm3424_vm12, %v3394_v20  ;;  %v1196_v9 = vpop.permute.xlu0 %1195  ;;  %v3382_v28 = vld [vmem:[#allocation3 + $0x10] sm:$0xff]  ;;  %v1900_v22 = vsel %vm671_vm0, %v1895_v62, %v5830_v1  ;;  %v2227_v20 = vrot.slane %v4973_v15, 1  ;;  %v2945_v62 = vshll.u32 %v5874_v3, 16 }
 0x138   : > { %1229 = vrot.lane.b32.xlu1 %v1182_v13, %s5039_s30  ;;  %1264 = vst.msk [vmem:[#allocation3 + $0x20] sm:$0xff] %vm1259_vm5, %v1196_v9  ;;  %4701 = vmatprep.mubr.msk.bf16.mxu0 %vm3424_vm12, %v3382_v28  ;;  %v4974_v13 = vld [vmem:[#allocation2 + $0x54] sm:$0xff]   ;;  %v1804_v9 = vsel %vm671_vm0, %v1799_v44, %v5835_v8 }
 0x139   : > { %1205 = vrot.lane.b32.xlu0 %v1158_v0, %s5039_s30  ;;  %v5841_v0 = vld [vmem:[#allocation2 + $0xbc] sm:$0xff]   ;;  %v2203_v28 = vrot.slane %v4974_v13, 1  ;;  %v2228_v60 = vsel %vm1137_vm1, %v2225_v50, %v2227_v20  ;;  %v2849_v13 = vshll.u32 %v5879_v31, 16 }
 0x13a   : > { %v1222_v41 = vpop.permute.xlu1 %1221  ;;  %v3395_v37 = vld [vmem:[#allocation3 + $0x78] sm:$0xff]  ;;  %v4981_v50 = vld [vmem:[#allocation2 + $0xc0] sm:$0xff]  }
 0x13b   : > { %1277 = vst.msk [vmem:[#allocation3 + $0x88] sm:$0xff] %vm1259_vm5, %v1222_v41  ;;  %4726 = vmatmul.mubr.msk.bf16.gmra.mrb[4].mxu1 %vm3424_vm12, %v3395_v37  ;;  %v1198_v27 = vpop.permute.xlu0 %1197  ;;  %v3383_v49 = vld [vmem:[#allocation3 + $0x18] sm:$0xff]  ;;  %v2229_v41 = vrot.slane %v5841_v0, 1  ;;  %v2937_v2 = vshll.u32 %v4981_v50, 16 }
 0x13c   : > { %1492 = vrot.lane.b32.xlu1 %v4965_v29, %s5040_s5  ;;  %1265 = vst.msk [vmem:[#allocation3 + $0x28] sm:$0xff] %vm1259_vm5, %v1198_v27  ;;  %4702 = vmatmul.mubr.msk.bf16.gmra.mrb[4].mxu0 %vm3424_vm12, %v3383_v49  ;;  %v5847_v29 = vld [vmem:[#allocation2 + $0x5c] sm:$0xff]   ;;  %v5006_v0 = vld [vmem:[#allocation2 + $0xd0] sm:$0xff]  }
 0x13d   : > { %1468 = vrot.lane.b32.xlu0 %v4966_v43, %s5040_s5  ;;  %v2204_v43 = vsel %vm1137_vm1, %v2201_v59, %v2203_v28  ;;  %v2205_v35 = vrot.slane %v5847_v29, 1  ;;  %v2230_v30 = vsel %vm1137_vm1, %v2227_v20, %v2229_v41  ;;  %v4982_v59 = vld [vmem:[#allocation2 + $0x60] sm:$0xff]   ;;  %v5892_v20 = vrot.slane %v2945_v62, 1  ;;  %v5007_v29 = vld [vmem:[#allocation2 + $0x70] sm:$0xff]  }
 0x13e   : > { %v1485_v40 = vpop.permute.xlu1 %1484  ;;  %v2841_v45 = vshll.u32 %v4982_v59, 16  ;;  %v2845_v44 = vshrl.u32 %v4982_v59, 16  ;;  %v5909_v59 = vld [vmem:[#allocation2 + $0x68] sm:$0xff]  }
 0x13f   : > { %1541 = vst.msk [vmem:[#allocation3 + $0x80] sm:$0xff] %vm1524_vm6, %v1485_v40  ;;  %v1461_v4 = vpop.permute.xlu0 %1460  ;;  %v2206_v18 = vsel %vm1137_vm1, %v2203_v28, %v2205_v35  ;;  %v4978_v40 = vld [vmem:[#allocation2 + $0x58] sm:$0xff]  }
 0x140   : > { %1494 = vrot.lane.b32.xlu1 %v4967_v57, %s5040_s5  ;;  %1529 = vst.msk [vmem:[#allocation3 + $0x20] sm:$0xff] %vm1524_vm6, %v1461_v4  ;;  %v4977_v57 = vld [vmem:[#allocation2 + $0xb8] sm:$0xff]   ;;  %v2939_v4 = vrot.slane %v2937_v2, 1 }
 0x141   : > { %1470 = vrot.lane.b32.xlu0 %v4968_v58, %s5040_s5  ;;  %v2837_v58 = vshrl.u32 %v5725_v63, 16  ;;  %v4989_v2 = vld [vmem:[#allocation2 + $0xb8] sm:$0xff]  }
 0x142   : > { %v1487_v32 = vpop.permute.xlu1 %1486  ;;  %v2940_v11 = vsel %vm671_vm0, %v2935_v52, %v2939_v4 }
 0x143   : > { %1542 = vst.msk [vmem:[#allocation3 + $0x88] sm:$0xff] %vm1524_vm6, %v1487_v32  ;;  %v1463_v10 = vpop.permute.xlu0 %1462  ;;  %v4980_v32 = vld [vmem:[#allocation2 + $0x60] sm:$0xff]   ;;  %v2839_v63 = vor.u32 %v2837_v58, %v5743_v33  ;;  %v3253_v58 = vrot.slane %v5909_v59, 1 }
 0x144   : > { %1957 = vrot.lane.b32.xlu1 %v1892_v16, %s5041_s6  ;;  %1530 = vst.msk [vmem:[#allocation3 + $0x28] sm:$0xff] %vm1524_vm6, %v1463_v10  ;;  %v2941_v16 = vshrl.u32 %v4981_v50, 16 }
 0x145   : > { %1933 = vrot.lane.b32.xlu0 %v1796_v14, %s5041_s6  ;;  %v2843_v14 = vrot.slane %v2841_v45, 1  ;;  %v4990_v45 = vld [vmem:[#allocation2 + $0x58] sm:$0xff]  }
 0x146   : > { %v1950_v26 = vpop.permute.xlu1 %1949 }
 0x147   : > { %2006 = vst.msk [vmem:[#allocation3 + $0x80] sm:$0xff] %vm1989_vm7, %v1950_v26  ;;  %v1926_v21 = vpop.permute.xlu0 %1925  ;;  %v4985_v26 = vld [vmem:[#allocation2 + $0xc0] sm:$0xff]   ;;  %v2844_v33 = vsel %vm671_vm0, %v2839_v63, %v2843_v14  ;;  %v2847_v28 = vor.u32 %v2845_v44, %v2843_v14 }
 0x148   : > { %1959 = vrot.lane.b32.xlu1 %v1900_v22, %s5041_s6  ;;  %1994 = vst.msk [vmem:[#allocation3 + $0x20] sm:$0xff] %vm1989_vm7, %v1926_v21  ;;  %v2943_v22 = vor.u32 %v2941_v16, %v2939_v4  ;;  %v5897_v21 = vrot.slane %v2849_v13, 1 }
 0x149   : > { %1935 = vrot.lane.b32.xlu0 %v1804_v9, %s5041_s6 }
 0x14a   : > { %v1952_v37 = vpop.permute.xlu1 %1951  ;;  %v2855_v31 = vor.u32 %v2853_v25, %v5897_v21 }
 0x14b   : > { %2007 = vst.msk [vmem:[#allocation3 + $0x88] sm:$0xff] %vm1989_vm7, %v1952_v37  ;;  %v1928_v36 = vpop.permute.xlu0 %1927 }
 0x14c   : > { %2275 = vrot.lane.b32.xlu1 %v2228_v60, %s5042_s7  ;;  %1995 = vst.msk [vmem:[#allocation3 + $0x28] sm:$0xff] %vm1989_vm7, %v1928_v36  ;;  %v4986_v60 = vld [vmem:[#allocation2 + $0x60] sm:$0xff]   ;;  %v3275_v36 = vrot.slane %v4985_v26, 1  ;;  %v1905_v26 = vshll.u32 %v4996_v24, 16 }
 0x14d   : > { %2251 = vrot.lane.b32.xlu0 %v2204_v43, %s5042_s7  ;;  %v2948_v43 = vsel %vm671_vm0, %v2943_v22, %v5892_v20  ;;  %v1901_v22 = vshrl.u32 %v5810_v54, 16 }
 0x14e   : > { %v2268_v27 = vpop.permute.xlu1 %2267 }
 0x14f   : > { %2324 = vst.msk [vmem:[#allocation3 + $0x80] sm:$0xff] %vm2307_vm8, %v2268_v27  ;;  %v2244_v49 = vpop.permute.xlu0 %2243  ;;  %v2852_v27 = vsel %vm671_vm0, %v2847_v28, %v5897_v21  ;;  %v4993_v28 = vld [vmem:[#allocation2 + $0x5c] sm:$0xff]   ;;  %v1903_v54 = vor.u32 %v1901_v22, %v5830_v1  ;;  %v5008_v22 = vld [vmem:[#allocation2 + $0xd8] ss:$0 sps:$4 sm:$0x11]  }
 0x150   : > { %2277 = vrot.lane.b32.xlu1 %v2230_v30, %s5042_s7  ;;  %2312 = vst.msk [vmem:[#allocation3 + $0x20] sm:$0xff] %vm2307_vm8, %v2244_v49  ;;  %v5903_v30 = vld [vmem:[#allocation2 + $0xc8] sm:$0xff]  }
 0x151   : > { %2253 = vrot.lane.b32.xlu0 %v2206_v18, %s5042_s7  ;;  %v3251_v18 = vrot.slane %v4986_v60, 1  ;;  %v3277_v38 = vrot.slane %v5903_v30, 1 }
 0x152   : > { %v2270_v12 = vpop.permute.xlu1 %2269 }
 0x153   : > { %2325 = vst.msk [vmem:[#allocation3 + $0x88] sm:$0xff] %vm2307_vm8, %v2270_v12  ;;  %v2246_v61 = vpop.permute.xlu0 %2245  ;;  %v3278_v51 = vsel %vm1137_vm1, %v3275_v36, %v3277_v38  ;;  %v3254_v55 = vsel %vm1137_vm1, %v3251_v18, %v3253_v58 }
 0x154   : > { %2540 = vrot.lane.b32.xlu1 %v4977_v57, %s5043_s8  ;;  %2313 = vst.msk [vmem:[#allocation3 + $0x28] sm:$0xff] %vm2307_vm8, %v2246_v61  ;;  %v3276_v57 = vsel %vm1137_vm1, %v3273_v47, %v3275_v36  ;;  %v1183_v47 = vrot.slane %v4989_v2, 1  ;;  %v4994_v36 = vld [vmem:[#allocation2 + $0xc4] sm:$0xff]  }
 0x155   : > { %2516 = vrot.lane.b32.xlu0 %v4978_v40, %s5043_s8  ;;  %v3252_v40 = vsel %vm1137_vm1, %v3249_v6, %v3251_v18  ;;  %v1159_v6 = vrot.slane %v4990_v45, 1 }
 0x156   : > { %v2533_v15 = vpop.permute.xlu1 %2532  ;;  %v1184_v16 = vsel %vm1137_vm1, %v1181_v17, %v1183_v47 }
 0x157   : > { %2589 = vst.msk [vmem:[#allocation3 + $0x80] sm:$0xff] %vm2572_vm9, %v2533_v15  ;;  %v2509_v10 = vpop.permute.xlu0 %2508  ;;  %v1162_v56 = vsel %vm1137_vm1, %v1159_v6, %v1161_v48  ;;  %v1805_v48 = vshrl.u32 %v5816_v42, 16 }
 0x158   : > { %2542 = vrot.lane.b32.xlu1 %v4979_v53, %s5043_s8  ;;  %2577 = vst.msk [vmem:[#allocation3 + $0x20] sm:$0xff] %vm2572_vm9, %v2509_v10  ;;  %v4991_v53 = vld [vmem:[#allocation2 + $0xc0] ss:$0 sps:$4 sm:$0x11]  }
 0x159   : > { %2518 = vrot.lane.b32.xlu0 %v4980_v32, %s5043_s8  ;;  %v1185_v62 = vrot.slane %v4991_v53, 1  ;;  %v1160_v32 = vsel %vm1137_vm1, %v1157_v19, %v1159_v6  ;;  %v4997_v19 = vld [vmem:[#allocation2 + $0x64] sm:$0xff]   ;;  %v1807_v42 = vor.u32 %v1805_v48, %v5835_v8  ;;  %v2957_v48 = vshrl.u32 %v5006_v0, 16 }
 0x15a   : > { %v2535_v9 = vpop.permute.xlu1 %2534  ;;  %v1809_v60 = vshll.u32 %v4997_v19, 16 }
 0x15b   : > { %2590 = vst.msk [vmem:[#allocation3 + $0x88] sm:$0xff] %vm2572_vm9, %v2535_v9  ;;  %v2511_v37 = vpop.permute.xlu0 %2510  ;;  %v1186_v14 = vsel %vm1137_vm1, %v1183_v47, %v1185_v62  ;;  %v4998_v9 = vld [vmem:[#allocation2 + $0xcc] ss:$0 sps:$4 sm:$0x11]  }
 0x15c   : > { %3005 = vrot.lane.b32.xlu1 %v2940_v11, %s5044_s9  ;;  %2578 = vst.msk [vmem:[#allocation3 + $0x28] sm:$0xff] %vm2572_vm9, %v2511_v37  ;;  %v4992_v11 = vld [vmem:[#allocation2 + $0xbc] sm:$0xff]   ;;  %v1913_v18 = vshll.u32 %v4998_v9, 16  ;;  %v1811_v2 = vrot.slane %v1809_v60, 1  ;;  %v5003_v9 = vld [vmem:[#allocation2 + $0x68] sm:$0xff]   ;;  %v2961_v60 = vshll.u32 %v5008_v22, 16 }
 0x15d   : > { %2981 = vrot.lane.b32.xlu0 %v2844_v33, %s5044_s9 }
 0x15e   : > { %v2998_v50 = vpop.permute.xlu1 %2997  ;;  %v1812_v53 = vsel %vm671_vm0, %v1807_v42, %v1811_v2 }
 0x15f   : > { %3054 = vst.msk [vmem:[#allocation3 + $0x80] sm:$0xff] %vm3037_vm10, %v2998_v50  ;;  %v2974_v49 = vpop.permute.xlu0 %2973  ;;  %v1907_v50 = vrot.slane %v1905_v26, 1 }
 0x160   : > { %3007 = vrot.lane.b32.xlu1 %v2948_v43, %s5044_s9  ;;  %3042 = vst.msk [vmem:[#allocation3 + $0x20] sm:$0xff] %vm3037_vm10, %v2974_v49 }
 0x161   : > { %2983 = vrot.lane.b32.xlu0 %v2852_v27, %s5044_s9  ;;  %v1909_v27 = vshrl.u32 %v4996_v24, 16  ;;  %v1908_v1 = vsel %vm671_vm0, %v1903_v54, %v1907_v50  ;;  %v2861_v54 = vshrl.u32 %v5007_v29, 16 }
 0x162   : > { %v3000_v12 = vpop.permute.xlu1 %2999 }
 0x163   : > { %3055 = vst.msk [vmem:[#allocation3 + $0x88] sm:$0xff] %vm3037_vm10, %v3000_v12  ;;  %v2976_v61 = vpop.permute.xlu0 %2975  ;;  %v1813_v12 = vshrl.u32 %v4997_v19, 16  ;;  %v1911_v45 = vor.u32 %v1909_v27, %v1907_v50 }
 0x164   : > { %3323 = vrot.lane.b32.xlu1 %v3276_v57, %s5045_s10  ;;  %3043 = vst.msk [vmem:[#allocation3 + $0x28] sm:$0xff] %vm3037_vm10, %v2976_v61  ;;  %v4995_v57 = vld [vmem:[#allocation2 + $0x64] sm:$0xff]   ;;  %v1915_v61 = vrot.slane %v1913_v18, 1  ;;  %v2963_v18 = vrot.slane %v2961_v60, 1  ;;  %v6082_v60 = vld [vmem:[%s6328_s3] ss:$0 sm:$0xff] }
 0x165   : > { %3299 = vrot.lane.b32.xlu0 %v3252_v40, %s5045_s10  ;;  %v1815_v8 = vor.u32 %v1813_v12, %v1811_v2  ;;  %v5009_v2 = vld [vmem:[#allocation2 + $0x70] sm:$0xff]  }
 0x166   : > { %v3316_v52 = vpop.permute.xlu1 %3315  ;;  %v1916_v6 = vsel %vm671_vm0, %v1911_v45, %v1915_v61  ;;  %v5011_v45 = vld [vmem:[#allocation2 + $0xd8] ss:$0 sps:$4 sm:$0x11]  }
 0x167   : > { %3372 = vst.msk [vmem:[#allocation3 + $0x80] sm:$0xff] %vm3355_vm11, %v3316_v52  ;;  %v3292_v4 = vpop.permute.xlu0 %3291  ;;  %v5000_v52 = vld [vmem:[#allocation2 + $0x64] sm:$0xff]  }
 0x168   : > { %3325 = vrot.lane.b32.xlu1 %v3278_v51, %s5045_s10  ;;  %3360 = vst.msk [vmem:[#allocation3 + $0x20] sm:$0xff] %vm3355_vm11, %v3292_v4  ;;  %v4999_v51 = vld [vmem:[#allocation2 + $0xc4] sm:$0xff]  }
 0x169   : > { %3301 = vrot.lane.b32.xlu0 %v3254_v55, %s5045_s10  ;;  %v2231_v4 = vrot.slane %v4999_v51, 1 }
 0x16a   : > { %v3318_v15 = vpop.permute.xlu1 %3317 }
 0x16b   : > { %3373 = vst.msk [vmem:[#allocation3 + $0x88] sm:$0xff] %vm3355_vm11, %v3318_v15  ;;  %v3294_v63 = vpop.permute.xlu0 %3293  ;;  %v1820_v15 = vsel %vm671_vm0, %v1815_v8, %v5199_v7 }
 0x16c   : > { %1231 = vrot.lane.b32.xlu1 %v1184_v16, %s5039_s30  ;;  %3361 = vst.msk [vmem:[#allocation3 + $0x28] sm:$0xff] %vm3355_vm11, %v3294_v63  ;;  %v5001_v16 = vld [vmem:[#allocation2 + $0xcc] ss:$0 sps:$4 sm:$0x11]  }
 0x16d   : > { %1207 = vrot.lane.b32.xlu0 %v1160_v32, %s5039_s30  ;;  %v2207_v32 = vrot.slane %v5000_v52, 1  ;;  %v2233_v24 = vrot.slane %v5001_v16, 1  ;;  %v3281_v52 = vrot.slane %v5011_v45, 1 }
 0x16e   : > { %v1224_v17 = vpop.permute.xlu1 %1223  ;;  %v3396_v44 = vld [vmem:[#allocation3 + $0x80] sm:$0xff] }
 0x16f   : > { %1278 = vst.msk [vmem:[#allocation3 + $0x90] sm:$0xff] %vm1259_vm5, %v1224_v17  ;;  %4729 = vmatprep.mubr.msk.bf16.mxu1 %vm3424_vm12, %v3396_v44  ;;  %v1200_v13 = vpop.permute.xlu0 %1199  ;;  %v3384_v10 = vld [vmem:[#allocation3 + $0x20] sm:$0xff]  ;;  %v2208_v7 = vsel %vm1137_vm1, %v2205_v35, %v2207_v32  ;;  %v2210_v19 = vsel %vm1137_vm1, %v2207_v32, %v2209_v34  ;;  %v5002_v35 = vld [vmem:[#allocation2 + $0xc8] sm:$0xff]   ;;  %v2857_v34 = vshll.u32 %v5007_v29, 16 }
 0x170   : > { %1233 = vrot.lane.b32.xlu1 %v1186_v14, %s5039_s30  ;;  %1266 = vst.msk [vmem:[#allocation3 + $0x30] sm:$0xff] %vm1259_vm5, %v1200_v13  ;;  %4705 = vmatprep.mubr.msk.bf16.mxu0 %vm3424_vm12, %v3384_v10  ;;  %v2232_v14 = vsel %vm1137_vm1, %v2229_v41, %v2231_v4  ;;  %v2949_v10 = vshrl.u32 %v5874_v3, 16 }
 0x171   : > { %1209 = vrot.lane.b32.xlu0 %v1162_v56, %s5039_s30  ;;  %v2234_v56 = vsel %vm1137_vm1, %v2231_v4, %v2233_v24 }
 0x172   : > { %v1226_v33 = vpop.permute.xlu1 %1225  ;;  %v3397_v39 = vld [vmem:[#allocation3 + $0x88] sm:$0xff] }
 0x173   : > { %1279 = vst.msk [vmem:[#allocation3 + $0x98] sm:$0xff] %vm1259_vm5, %v1226_v33  ;;  %4730 = vmatmul.mubr.msk.bf16.gmra.mrb[8].mxu1 %vm3424_vm12, %v3397_v39  ;;  %v1202_v37 = vpop.permute.xlu0 %1201  ;;  %v3385_v43 = vld [vmem:[#allocation3 + $0x28] sm:$0xff]  ;;  %v5004_v39 = vld [vmem:[#allocation2 + $0xd0] sm:$0xff]  }
 0x174   : > { %1496 = vrot.lane.b32.xlu1 %v4992_v11, %s5040_s5  ;;  %1267 = vst.msk [vmem:[#allocation3 + $0x38] sm:$0xff] %vm1259_vm5, %v1202_v37  ;;  %4706 = vmatmul.mubr.msk.bf16.gmra.mrb[8].mxu0 %vm3424_vm12, %v3385_v43  ;;  %v2953_v11 = vshll.u32 %v5006_v0, 16  ;;  %v5005_v43 = vld [vmem:[#allocation2 + $0x70] sm:$0xff]  }
 0x175   : > { %1472 = vrot.lane.b32.xlu0 %v4993_v28, %s5040_s5  ;;  %v2951_v28 = vor.u32 %v2949_v10, %v5892_v20 }
 0x176   : > { %v1489_v49 = vpop.permute.xlu1 %1488  ;;  %v2955_v3 = vrot.slane %v2953_v11, 1 }
 0x177   : > { %1543 = vst.msk [vmem:[#allocation3 + $0x90] sm:$0xff] %vm1524_vm6, %v1489_v49  ;;  %v1465_v40 = vpop.permute.xlu0 %1464  ;;  %v5010_v49 = vld [vmem:[#allocation2 + $0xd0] sm:$0xff]  }
 0x178   : > { %1498 = vrot.lane.b32.xlu1 %v4994_v36, %s5040_s5  ;;  %1531 = vst.msk [vmem:[#allocation3 + $0x30] sm:$0xff] %vm1524_vm6, %v1465_v40  ;;  %v2859_v36 = vrot.slane %v2857_v34, 1  ;;  %v2956_v20 = vsel %vm671_vm0, %v2951_v28, %v2955_v3  ;;  %v2959_v27 = vor.u32 %v2957_v48, %v2955_v3  ;;  %v6076_v3 = vld [vmem:[%s6327_s2] ss:$0 sm:$0xff] }
 0x179   : > { %1474 = vrot.lane.b32.xlu0 %v4995_v57, %s5040_s5 }
 0x17a   : > { %v1491_v47 = vpop.permute.xlu1 %1490  ;;  %v2860_v42 = vsel %vm671_vm0, %v2855_v31, %v2859_v36  ;;  %v2863_v21 = vor.u32 %v2861_v54, %v2859_v36  ;;  %v2964_v40 = vsel %vm671_vm0, %v2959_v27, %v2963_v18 }
 0x17b   : > { %1544 = vst.msk [vmem:[#allocation3 + $0x98] sm:$0xff] %vm1524_vm6, %v1491_v47  ;;  %v1467_v55 = vpop.permute.xlu0 %1466  ;;  %v3255_v47 = vrot.slane %v5009_v2, 1 }
 0x17c   : > { %1961 = vrot.lane.b32.xlu1 %v1908_v1, %s5041_s6  ;;  %1532 = vst.msk [vmem:[#allocation3 + $0x38] sm:$0xff] %vm1524_vm6, %v1467_v55  ;;  %v3279_v1 = vrot.slane %v5010_v49, 1  ;;  %v2868_v51 = vsel %vm671_vm0, %v2863_v21, %v5251_v5 }
 0x17d   : > { %1937 = vrot.lane.b32.xlu0 %v1812_v53, %s5041_s6  ;;  %v3256_v5 = vsel %vm1137_vm1, %v3253_v58, %v3255_v47 }
 0x17e   : > { %v1954_v62 = vpop.permute.xlu1 %1953  ;;  %v3280_v8 = vsel %vm1137_vm1, %v3277_v38, %v3279_v1  ;;  %v3282_v4 = vsel %vm1137_vm1, %v3279_v1, %v3281_v52  ;;  %v3258_v38 = vsel %vm1137_vm1, %v3255_v47, %v3257_v46 }
 0x17f   : > { %2008 = vst.msk [vmem:[#allocation3 + $0x90] sm:$0xff] %vm1989_vm7, %v1954_v62  ;;  %v1930_v63 = vpop.permute.xlu0 %1929 }
 0x180   : > { %1963 = vrot.lane.b32.xlu1 %v1916_v6, %s5041_s6  ;;  %1996 = vst.msk [vmem:[#allocation3 + $0x30] sm:$0xff] %vm1989_vm7, %v1930_v63 }
 0x181   : > { %1939 = vrot.lane.b32.xlu0 %v1820_v15, %s5041_s6 }
 0x182   : > { %v1956_v17 = vpop.permute.xlu1 %1955 }
 0x183   : > { %2009 = vst.msk [vmem:[#allocation3 + $0x98] sm:$0xff] %vm1989_vm7, %v1956_v17  ;;  %v1932_v44 = vpop.permute.xlu0 %1931 }
 0x184   : > { %2279 = vrot.lane.b32.xlu1 %v2232_v14, %s5042_s7  ;;  %1997 = vst.msk [vmem:[#allocation3 + $0x38] sm:$0xff] %vm1989_vm7, %v1932_v44 }
 0x185   : > { %2255 = vrot.lane.b32.xlu0 %v2208_v7, %s5042_s7 }
 0x186   : > { %v2272_v41 = vpop.permute.xlu1 %2271 }
 0x187   : > { %2326 = vst.msk [vmem:[#allocation3 + $0x90] sm:$0xff] %vm2307_vm8, %v2272_v41  ;;  %v2248_v13 = vpop.permute.xlu0 %2247 }
 0x188   : > { %2281 = vrot.lane.b32.xlu1 %v2234_v56, %s5042_s7  ;;  %2314 = vst.msk [vmem:[#allocation3 + $0x30] sm:$0xff] %vm2307_vm8, %v2248_v13 }
 0x189   : > { %2257 = vrot.lane.b32.xlu0 %v2210_v19, %s5042_s7 }
 0x18a   : > { %v2274_v26 = vpop.permute.xlu1 %2273 }
 0x18b   : > { %2327 = vst.msk [vmem:[#allocation3 + $0x98] sm:$0xff] %vm2307_vm8, %v2274_v26  ;;  %v2250_v33 = vpop.permute.xlu0 %2249 }
 0x18c   : > { %2544 = vrot.lane.b32.xlu1 %v5002_v35, %s5043_s8  ;;  %2315 = vst.msk [vmem:[#allocation3 + $0x38] sm:$0xff] %vm2307_vm8, %v2250_v33 }
 0x18d   : > { %2520 = vrot.lane.b32.xlu0 %v5003_v9, %s5043_s8 }
 0x18e   : > { %v2537_v37 = vpop.permute.xlu1 %2536 }
 0x18f   : > { %2591 = vst.msk [vmem:[#allocation3 + $0x90] sm:$0xff] %vm2572_vm9, %v2537_v37  ;;  %v2513_v50 = vpop.permute.xlu0 %2512 }
 0x190   : > { %2546 = vrot.lane.b32.xlu1 %v5004_v39, %s5043_s8  ;;  %2579 = vst.msk [vmem:[#allocation3 + $0x30] sm:$0xff] %vm2572_vm9, %v2513_v50 }
 0x191   : > { %2522 = vrot.lane.b32.xlu0 %v5005_v43, %s5043_s8 }
 0x192   : > { %v2539_v57 = vpop.permute.xlu1 %2538 }
 0x193   : > { %2592 = vst.msk [vmem:[#allocation3 + $0x98] sm:$0xff] %vm2572_vm9, %v2539_v57  ;;  %v2515_v12 = vpop.permute.xlu0 %2514 }
 0x194   : > { %3009 = vrot.lane.b32.xlu1 %v2956_v20, %s5044_s9  ;;  %2580 = vst.msk [vmem:[#allocation3 + $0x38] sm:$0xff] %vm2572_vm9, %v2515_v12 }
 0x195   : > { %2985 = vrot.lane.b32.xlu0 %v2860_v42, %s5044_s9 }
 0x196   : > { %v3002_v61 = vpop.permute.xlu1 %3001 }
 0x197   : > { %3056 = vst.msk [vmem:[#allocation3 + $0x90] sm:$0xff] %vm3037_vm10, %v3002_v61  ;;  %v2978_v53 = vpop.permute.xlu0 %2977 }
 0x198   : > { %3011 = vrot.lane.b32.xlu1 %v2964_v40, %s5044_s9  ;;  %3044 = vst.msk [vmem:[#allocation3 + $0x30] sm:$0xff] %vm3037_vm10, %v2978_v53 }
 0x199   : > { %2987 = vrot.lane.b32.xlu0 %v2868_v51, %s5044_s9 }
 0x19a   : > { %v3004_v55 = vpop.permute.xlu1 %3003 }
 0x19b   : > { %3057 = vst.msk [vmem:[#allocation3 + $0x98] sm:$0xff] %vm3037_vm10, %v3004_v55  ;;  %v2980_v6 = vpop.permute.xlu0 %2979 }
 0x19c   : > { %3327 = vrot.lane.b32.xlu1 %v3280_v8, %s5045_s10  ;;  %3045 = vst.msk [vmem:[#allocation3 + $0x38] sm:$0xff] %vm3037_vm10, %v2980_v6 }
 0x19d   : > { %3303 = vrot.lane.b32.xlu0 %v3256_v5, %s5045_s10 }
 0x19e   : > { %v3320_v30 = vpop.permute.xlu1 %3319 }
 0x19f   : > { %3374 = vst.msk [vmem:[#allocation3 + $0x90] sm:$0xff] %vm3355_vm11, %v3320_v30  ;;  %v3296_v16 = vpop.permute.xlu0 %3295 }
 0x1a0   : > { %3329 = vrot.lane.b32.xlu1 %v3282_v4, %s5045_s10  ;;  %3362 = vst.msk [vmem:[#allocation3 + $0x30] sm:$0xff] %vm3355_vm11, %v3296_v16 }
 0x1a1   : > { %3305 = vrot.lane.b32.xlu0 %v3258_v38, %s5045_s10 }
 0x1a2   : > { %v3322_v59 = vpop.permute.xlu1 %3321 }
 0x1a3   : > { %3375 = vst.msk [vmem:[#allocation3 + $0x98] sm:$0xff] %vm3355_vm11, %v3322_v59  ;;  %v3298_v58 = vpop.permute.xlu0 %3297 }
 0x1a4   : > { %3363 = vst.msk [vmem:[#allocation3 + $0x38] sm:$0xff] %vm3355_vm11, %v3298_v58 }
 0x1a6   : > { %v1228_v62 = vpop.permute.xlu1 %1227  ;;  %v3398_v15 = vld [vmem:[#allocation3 + $0x90] sm:$0xff] }
 0x1a7   : > { %1280 = vst.msk [vmem:[#allocation3 + $0xa0] sm:$0xff] %vm1259_vm5, %v1228_v62  ;;  %4733 = vmatprep.mubr.msk.bf16.mxu1 %vm3424_vm12, %v3398_v15  ;;  %v1204_v23 = vpop.permute.xlu0 %1203  ;;  %v3386_v46 = vld [vmem:[#allocation3 + $0x30] sm:$0xff] }
 0x1a8   : > { %1268 = vst.msk [vmem:[#allocation3 + $0x40] sm:$0xff] %vm1259_vm5, %v1204_v23  ;;  %4709 = vmatprep.mubr.msk.bf16.mxu0 %vm3424_vm12, %v3386_v46 }
 0x1aa   : > { %v1230_v32 = vpop.permute.xlu1 %1229  ;;  %v3399_v63 = vld [vmem:[#allocation3 + $0x98] sm:$0xff] }
 0x1ab   : > { %1281 = vst.msk [vmem:[#allocation3 + $0xa8] sm:$0xff] %vm1259_vm5, %v1230_v32  ;;  %4734 = vmatmul.mubr.msk.bf16.gmra.mrb[12].mxu1 %vm3424_vm12, %v3399_v63  ;;  %v1206_v14 = vpop.permute.xlu0 %1205  ;;  %v3387_v24 = vld [vmem:[#allocation3 + $0x38] sm:$0xff] }
 0x1ac   : > { %1269 = vst.msk [vmem:[#allocation3 + $0x48] sm:$0xff] %vm1259_vm5, %v1206_v14  ;;  %4710 = vmatmul.mubr.msk.bf16.gmra.mrb[12].mxu0 %vm3424_vm12, %v3387_v24 }
 0x1ae   : > { %v1493_v17 = vpop.permute.xlu1 %1492 }
 0x1af   : > { %1545 = vst.msk [vmem:[#allocation3 + $0xa0] sm:$0xff] %vm1524_vm6, %v1493_v17  ;;  %v1469_v7 = vpop.permute.xlu0 %1468 }
 0x1b0   : > { %1533 = vst.msk [vmem:[#allocation3 + $0x40] sm:$0xff] %vm1524_vm6, %v1469_v7 }
 0x1b2   : > { %v1495_v44 = vpop.permute.xlu1 %1494 }
 0x1b3   : > { %1546 = vst.msk [vmem:[#allocation3 + $0xa8] sm:$0xff] %vm1524_vm6, %v1495_v44  ;;  %v1471_v56 = vpop.permute.xlu0 %1470 }
 0x1b4   : > { %1534 = vst.msk [vmem:[#allocation3 + $0x48] sm:$0xff] %vm1524_vm6, %v1471_v56 }
 0x1b6   : > { %v1958_v0 = vpop.permute.xlu1 %1957 }
 0x1b7   : > { %2010 = vst.msk [vmem:[#allocation3 + $0xa0] sm:$0xff] %vm1989_vm7, %v1958_v0  ;;  %v1934_v41 = vpop.permute.xlu0 %1933 }
 0x1b8   : > { %1998 = vst.msk [vmem:[#allocation3 + $0x40] sm:$0xff] %vm1989_vm7, %v1934_v41 }
 0x1ba   : > { %v1960_v19 = vpop.permute.xlu1 %1959 }
 0x1bb   : > { %2011 = vst.msk [vmem:[#allocation3 + $0xa8] sm:$0xff] %vm1989_vm7, %v1960_v19  ;;  %v1936_v29 = vpop.permute.xlu0 %1935 }
 0x1bc   : > { %1999 = vst.msk [vmem:[#allocation3 + $0x48] sm:$0xff] %vm1989_vm7, %v1936_v29 }
 0x1be   : > { %v2276_v13 = vpop.permute.xlu1 %2275 }
 0x1bf   : > { %2328 = vst.msk [vmem:[#allocation3 + $0xa0] sm:$0xff] %vm2307_vm8, %v2276_v13  ;;  %v2252_v35 = vpop.permute.xlu0 %2251 }
 0x1c0   : > { %2316 = vst.msk [vmem:[#allocation3 + $0x40] sm:$0xff] %vm2307_vm8, %v2252_v35 }
 0x1c2   : > { %v2278_v10 = vpop.permute.xlu1 %2277 }
 0x1c3   : > { %2329 = vst.msk [vmem:[#allocation3 + $0xa8] sm:$0xff] %vm2307_vm8, %v2278_v10  ;;  %v2254_v11 = vpop.permute.xlu0 %2253 }
 0x1c4   : > { %2317 = vst.msk [vmem:[#allocation3 + $0x48] sm:$0xff] %vm2307_vm8, %v2254_v11 }
 0x1c6   : > { %v2541_v22 = vpop.permute.xlu1 %2540 }
 0x1c7   : > { %2593 = vst.msk [vmem:[#allocation3 + $0xa0] sm:$0xff] %vm2572_vm9, %v2541_v22  ;;  %v2517_v26 = vpop.permute.xlu0 %2516 }
 0x1c8   : > { %2581 = vst.msk [vmem:[#allocation3 + $0x40] sm:$0xff] %vm2572_vm9, %v2517_v26 }
 0x1ca   : > { %v2543_v9 = vpop.permute.xlu1 %2542 }
 0x1cb   : > { %2594 = vst.msk [vmem:[#allocation3 + $0xa8] sm:$0xff] %vm2572_vm9, %v2543_v9  ;;  %v2519_v25 = vpop.permute.xlu0 %2518 }
 0x1cc   : > { %2582 = vst.msk [vmem:[#allocation3 + $0x48] sm:$0xff] %vm2572_vm9, %v2519_v25 }
 0x1ce   : > { %v3006_v34 = vpop.permute.xlu1 %3005 }
 0x1cf   : > { %3058 = vst.msk [vmem:[#allocation3 + $0xa0] sm:$0xff] %vm3037_vm10, %v3006_v34  ;;  %v2982_v33 = vpop.permute.xlu0 %2981 }
 0x1d0   : > { %3046 = vst.msk [vmem:[#allocation3 + $0x40] sm:$0xff] %vm3037_vm10, %v2982_v33 }
 0x1d2   : > { %v3008_v39 = vpop.permute.xlu1 %3007 }
 0x1d3   : > { %3059 = vst.msk [vmem:[#allocation3 + $0xa8] sm:$0xff] %vm3037_vm10, %v3008_v39  ;;  %v2984_v28 = vpop.permute.xlu0 %2983 }
 0x1d4   : > { %3047 = vst.msk [vmem:[#allocation3 + $0x48] sm:$0xff] %vm3037_vm10, %v2984_v28 }
 0x1d6   : > { %v3324_v48 = vpop.permute.xlu1 %3323  ;;  %v4723_v37 = vpop.f32.mrb[0].mxu1 }
 0x1d7   : > { %3376 = vst.msk [vmem:[#allocation3 + $0xa0] sm:$0xff] %vm3355_vm11, %v3324_v48  ;;  %v3759_v43 = vmul.f32 %v4723_v37, %v6076_v3  ;;  %v3631_v31 = vpop.f32.mrb[1].mxu1  ;;  %v3300_v36 = vpop.permute.xlu0 %3299 }
 0x1d8   : > { %v4699_v54 = vpop.f32.mrb[0].mxu0  ;;  %v3757_v50 = vmul.f32 %v6076_v3, %v3631_v31  ;;  %3364 = vst.msk [vmem:[#allocation3 + $0x40] sm:$0xff] %vm3355_vm11, %v3300_v36  ;;  %v4724_v49 = vpop.f32.mrb[2].mxu1 }
 0x1d9   : > { %v3735_v20 = vmul.f32 %v4699_v54, %v6076_v3  ;;  %v3814_v27 = vadd.f32 %v6082_v60, %v3759_v43  ;;  %v3535_v18 = vpop.f32.mrb[1].mxu0  ;;  %v3760_v2 = vmul.f32 %v4724_v49, %v6076_v3  ;;  %v3634_v12 = vpop.f32.mrb[3].mxu1 }
 0x1da   : > { %v3733_v57 = vmul.f32 %v6076_v3, %v3535_v18  ;;  %v3812_v42 = vadd.f32 %v6082_v60, %v3757_v50  ;;  %v4700_v21 = vpop.f32.mrb[2].mxu0  ;;  %v3326_v51 = vpop.permute.xlu1 %3325  ;;  %v3758_v44 = vmul.f32 %v6076_v3, %v3634_v12 }
 0x1db   : > { %v3790_v40 = vadd.f32 %v6082_v60, %v3735_v20  ;;  %vm3862_vm15 = vcmp.ge.f32.partialorder %v3814_v27, 0.0  ;;  %v3910_v1 = vmul.f32 0.01, %v3814_v27  ;;  %v3736_v45 = vmul.f32 %v4700_v21, %v6076_v3  ;;  %v3538_v61 = vpop.f32.mrb[3].mxu0  ;;  %3377 = vst.msk [vmem:[#allocation3 + $0xa8] sm:$0xff] %vm3355_vm11, %v3326_v51  ;;  %v3302_v52 = vpop.permute.xlu0 %3301 }
 0x1dc   : > { %v3788_v47 = vadd.f32 %v6082_v60, %v3733_v57  ;;  %vm3860_vm0 = vcmp.ge.f32.partialorder %v3812_v42, 0.0  ;;  %v3908_v53 = vmul.f32 0.01, %v3812_v42  ;;  %v3815_v8 = vadd.f32 %v6082_v60, %v3760_v2  ;;  %3365 = vst.msk [vmem:[#allocation3 + $0x48] sm:$0xff] %vm3355_vm11, %v3302_v52 }
 0x1dd   : > { %vm3838_vm1 = vcmp.ge.f32.partialorder %v3790_v40, 0.0  ;;  %v3886_v55 = vmul.f32 0.01, %v3790_v40  ;;  %v3958_v5 = vsel %vm3862_vm15, %v3814_v27, %v3910_v1  ;;  %v3791_v6 = vadd.f32 %v6082_v60, %v3736_v45 }
 0x1de   : > { %v4642_v4 = vpack.c.bf16 %v3958_v5, %v3958_v5  ;;  %vm3836_vm2 = vcmp.ge.f32.partialorder %v3788_v47, 0.0  ;;  %v3884_v30 = vmul.f32 0.01, %v3788_v47  ;;  %v3956_v38 = vsel %vm3860_vm0, %v3812_v42, %v3908_v53  ;;  %v3400_v16 = vld [vmem:[#allocation3 + $0xa0] sm:$0xff]  ;;  %v1232_v15 = vpop.permute.xlu1 %1231 }
 0x1df   : > { %v3934_v59 = vsel %vm3838_vm1, %v3790_v40, %v3886_v55  ;;  %v4640_v58 = vpack.c.bf16 %v3956_v38, %v3956_v38  ;;  %vm3839_vm3 = vcmp.ge.f32.partialorder %v3791_v6, 0.0  ;;  %v3887_v62 = vmul.f32 0.01, %v3791_v6  ;;  %4737 = vmatprep.mubr.msk.bf16.mxu1 %vm3424_vm12, %v3400_v16  ;;  %1282 = vst.msk [vmem:[#allocation3 + $0xb0] sm:$0xff] %vm1259_vm5, %v1232_v15  ;;  %v1208_v63 = vpop.permute.xlu0 %1207  ;;  %v3388_v14 = vld [vmem:[#allocation3 + $0x40] sm:$0xff] }
 0x1e0   : > { %v4618_v23 = vpack.c.bf16 %v3934_v59, %v3934_v59  ;;  %4199 = vst.msk [vmem:[%s5098_s28 + $0x68] sm:$0xf] %vm4172_vm14, %v4642_v4  ;;  %v3932_v46 = vsel %vm3836_vm2, %v3788_v47, %v3884_v30  ;;  %vm3863_vm4 = vcmp.ge.f32.partialorder %v3815_v8, 0.0  ;;  %v3911_v32 = vmul.f32 0.01, %v3815_v8  ;;  %4713 = vmatprep.mubr.msk.bf16.mxu0 %vm3424_vm12, %v3388_v14 }
 0x1e1   : > { %v4616_v24 = vpack.c.bf16 %v3932_v46, %v3932_v46  ;;  %4197 = vst.msk [vmem:[%s5098_s28 + $0x60] sm:$0xf] %vm4172_vm14, %v4640_v58  ;;  %v3935_v17 = vsel %vm3839_vm3, %v3791_v6, %v3887_v62  ;;  %v3734_v7 = vmul.f32 %v6076_v3, %v3538_v61  ;;  %v3813_v29 = vadd.f32 %v6082_v60, %v3758_v44 }
 0x1e2   : > { %1270 = vst.msk [vmem:[#allocation3 + $0x50] sm:$0xff] %vm1259_vm5, %v1208_v63  ;;  %v4619_v56 = vpack.c.bf16 %v3935_v17, %v3935_v17  ;;  %v3959_v0 = vsel %vm3863_vm4, %v3815_v8, %v3911_v32  ;;  %v1234_v13 = vpop.permute.xlu1 %1233  ;;  %v3401_v35 = vld [vmem:[#allocation3 + $0xa8] sm:$0xff] }
 0x1e3   : > { %4175 = vst.msk [vmem:[%s5098_s28 + $0x8] sm:$0xf] %vm4172_vm14, %v4618_v23  ;;  %4173 = vst.msk [vmem:[%s5098_s28] sm:$0xf] %vm4172_vm14, %v4616_v24  ;;  %v4643_v41 = vpack.c.bf16 %v3959_v0, %v3959_v0  ;;  %v3789_v19 = vadd.f32 %v6082_v60, %v3734_v7  ;;  %v1210_v10 = vpop.permute.xlu0 %1209  ;;  %v3389_v11 = vld [vmem:[#allocation3 + $0x48] sm:$0xff]  ;;  %4738 = vmatmul.mubr.msk.bf16.gmra.mrb[16].mxu1 %vm3424_vm12, %v3401_v35  ;;  %vm3861_vm15 = vcmp.ge.f32.partialorder %v3813_v29, 0.0 }
 0x1e4   : > { %4176 = vst.msk [vmem:[%s5098_s28 + $0xc] sm:$0xf] %vm4172_vm14, %v4619_v56  ;;  %v3909_v26 = vmul.f32 0.01, %v3813_v29  ;;  %4714 = vmatmul.mubr.msk.bf16.gmra.mrb[16].mxu0 %vm3424_vm12, %v3389_v11 }
 0x1e5   : > { %1283 = vst.msk [vmem:[#allocation3 + $0xb8] sm:$0xff] %vm1259_vm5, %v1234_v13  ;;  %vm3837_vm13 = vcmp.ge.f32.partialorder %v3789_v19, 0.0  ;;  %v3885_v22 = vmul.f32 0.01, %v3789_v19  ;;  %1271 = vst.msk [vmem:[#allocation3 + $0x58] sm:$0xff] %vm1259_vm5, %v1210_v10 }
 0x1e6   : > { %4200 = vst.msk [vmem:[%s5098_s28 + $0x6c] sm:$0xf] %vm4172_vm14, %v4643_v41  ;;  %v3957_v25 = vsel %vm3861_vm15, %v3813_v29, %v3909_v26  ;;  %v1497_v34 = vpop.permute.xlu1 %1496 }
 0x1e7   : > { %v3933_v9 = vsel %vm3837_vm13, %v3789_v19, %v3885_v22  ;;  %v4641_v39 = vpack.c.bf16 %v3957_v25, %v3957_v25  ;;  %1547 = vst.msk [vmem:[#allocation3 + $0xb0] sm:$0xff] %vm1524_vm6, %v1497_v34  ;;  %v1473_v28 = vpop.permute.xlu0 %1472 }
 0x1e8   : > { %v4617_v33 = vpack.c.bf16 %v3933_v9, %v3933_v9  ;;  %1535 = vst.msk [vmem:[#allocation3 + $0x50] sm:$0xff] %vm1524_vm6, %v1473_v28 }
 0x1e9   : > { %4198 = vst.msk [vmem:[%s5098_s28 + $0x64] sm:$0xf] %vm4172_vm14, %v4641_v39 }
 0x1ea   : > { %4174 = vst.msk [vmem:[%s5098_s28 + $0x4] sm:$0xf] %vm4172_vm14, %v4617_v33  ;;  %v1499_v48 = vpop.permute.xlu1 %1498 }
 0x1eb   : > { %1548 = vst.msk [vmem:[#allocation3 + $0xb8] sm:$0xff] %vm1524_vm6, %v1499_v48  ;;  %v1475_v37 = vpop.permute.xlu0 %1474 }
 0x1ec   : > { %1536 = vst.msk [vmem:[#allocation3 + $0x58] sm:$0xff] %vm1524_vm6, %v1475_v37 }
 0x1ee   : > { %v1962_v43 = vpop.permute.xlu1 %1961 }
 0x1ef   : > { %2012 = vst.msk [vmem:[#allocation3 + $0xb0] sm:$0xff] %vm1989_vm7, %v1962_v43  ;;  %v1938_v31 = vpop.permute.xlu0 %1937 }
 0x1f0   : > { %2000 = vst.msk [vmem:[#allocation3 + $0x50] sm:$0xff] %vm1989_vm7, %v1938_v31 }
 0x1f2   : > { %v1964_v36 = vpop.permute.xlu1 %1963 }
 0x1f3   : > { %2013 = vst.msk [vmem:[#allocation3 + $0xb8] sm:$0xff] %vm1989_vm7, %v1964_v36  ;;  %v1940_v54 = vpop.permute.xlu0 %1939 }
 0x1f4   : > { %2001 = vst.msk [vmem:[#allocation3 + $0x58] sm:$0xff] %vm1989_vm7, %v1940_v54 }
 0x1f6   : > { %v2280_v50 = vpop.permute.xlu1 %2279 }
 0x1f7   : > { %2330 = vst.msk [vmem:[#allocation3 + $0xb0] sm:$0xff] %vm2307_vm8, %v2280_v50  ;;  %v2256_v20 = vpop.permute.xlu0 %2255 }
 0x1f8   : > { %2318 = vst.msk [vmem:[#allocation3 + $0x50] sm:$0xff] %vm2307_vm8, %v2256_v20 }
 0x1fa   : > { %v2282_v27 = vpop.permute.xlu1 %2281 }
 0x1fb   : > { %2331 = vst.msk [vmem:[#allocation3 + $0xb8] sm:$0xff] %vm2307_vm8, %v2282_v27  ;;  %v2258_v18 = vpop.permute.xlu0 %2257 }
 0x1fc   : > { %2319 = vst.msk [vmem:[#allocation3 + $0x58] sm:$0xff] %vm2307_vm8, %v2258_v18 }
 0x1fe   : > { %v2545_v49 = vpop.permute.xlu1 %2544 }
 0x1ff   : > { %2595 = vst.msk [vmem:[#allocation3 + $0xb0] sm:$0xff] %vm2572_vm9, %v2545_v49  ;;  %v2521_v57 = vpop.permute.xlu0 %2520 }
 0x200   : > { %2583 = vst.msk [vmem:[#allocation3 + $0x50] sm:$0xff] %vm2572_vm9, %v2521_v57 }
 0x202   : > { %v2547_v42 = vpop.permute.xlu1 %2546 }
 0x203   : > { %2596 = vst.msk [vmem:[#allocation3 + $0xb8] sm:$0xff] %vm2572_vm9, %v2547_v42  ;;  %v2523_v21 = vpop.permute.xlu0 %2522 }
 0x204   : > { %2584 = vst.msk [vmem:[#allocation3 + $0x58] sm:$0xff] %vm2572_vm9, %v2523_v21 }
 0x206   : > { %v3010_v2 = vpop.permute.xlu1 %3009 }
 0x207   : > { %3060 = vst.msk [vmem:[#allocation3 + $0xb0] sm:$0xff] %vm3037_vm10, %v3010_v2  ;;  %v2986_v12 = vpop.permute.xlu0 %2985 }
 0x208   : > { %3048 = vst.msk [vmem:[#allocation3 + $0x50] sm:$0xff] %vm3037_vm10, %v2986_v12 }
 0x20a   : > { %v3012_v40 = vpop.permute.xlu1 %3011 }
 0x20b   : > { %v2988_v1 = vpop.permute.xlu0 %2987  ;;  %3061 = vst.msk [vmem:[#allocation3 + $0xb8] sm:$0xff] %vm3037_vm10, %v3012_v40 }
 0x20c   : > { %3049 = vst.msk [vmem:[#allocation3 + $0x58] sm:$0xff] %vm3037_vm10, %v2988_v1 }
 0x20e   : > { %v4727_v45 = vpop.f32.mrb[4].mxu1  ;;  %v3328_v51 = vpop.permute.xlu1 %3327 }
 0x20f   : > { %v3763_v61 = vmul.f32 %v4727_v45, %v6076_v3  ;;  %v3647_v47 = vpop.f32.mrb[5].mxu1  ;;  %v3304_v53 = vpop.permute.xlu0 %3303  ;;  %3378 = vst.msk [vmem:[#allocation3 + $0xb0] sm:$0xff] %vm3355_vm11, %v3328_v51 }
 0x210   : > { %v4703_v8 = vpop.f32.mrb[4].mxu0  ;;  %v3761_v52 = vmul.f32 %v6076_v3, %v3647_v47  ;;  %3366 = vst.msk [vmem:[#allocation3 + $0x50] sm:$0xff] %vm3355_vm11, %v3304_v53  ;;  %v4728_v4 = vpop.f32.mrb[6].mxu1 }
 0x211   : > { %v3739_v55 = vmul.f32 %v4703_v8, %v6076_v3  ;;  %v3818_v5 = vadd.f32 %v6082_v60, %v3763_v61  ;;  %v3551_v6 = vpop.f32.mrb[5].mxu0  ;;  %v3764_v59 = vmul.f32 %v4728_v4, %v6076_v3  ;;  %v3650_v58 = vpop.f32.mrb[7].mxu1 }
 0x212   : > { %v3737_v30 = vmul.f32 %v6076_v3, %v3551_v6  ;;  %v3816_v38 = vadd.f32 %v6082_v60, %v3761_v52  ;;  %v4704_v16 = vpop.f32.mrb[6].mxu0  ;;  %v3330_v32 = vpop.permute.xlu1 %3329  ;;  %v3762_v39 = vmul.f32 %v6076_v3, %v3650_v58 }
 0x213   : > { %v3794_v62 = vadd.f32 %v6082_v60, %v3739_v55  ;;  %vm3866_vm5 = vcmp.ge.f32.partialorder %v3818_v5, 0.0  ;;  %v3914_v15 = vmul.f32 0.01, %v3818_v5  ;;  %v3740_v23 = vmul.f32 %v4704_v16, %v6076_v3  ;;  %v3554_v46 = vpop.f32.mrb[7].mxu0  ;;  %v3306_v17 = vpop.permute.xlu0 %3305  ;;  %3379 = vst.msk [vmem:[#allocation3 + $0xb8] sm:$0xff] %vm3355_vm11, %v3330_v32 }
 0x214   : > { %v3792_v63 = vadd.f32 %v6082_v60, %v3737_v30  ;;  %vm3864_vm6 = vcmp.ge.f32.partialorder %v3816_v38, 0.0  ;;  %v3912_v14 = vmul.f32 0.01, %v3816_v38  ;;  %v3819_v24 = vadd.f32 %v6082_v60, %v3764_v59  ;;  %3367 = vst.msk [vmem:[#allocation3 + $0x58] sm:$0xff] %vm3355_vm11, %v3306_v17 }
 0x215   : > { %vm3842_vm7 = vcmp.ge.f32.partialorder %v3794_v62, 0.0  ;;  %v3890_v7 = vmul.f32 0.01, %v3794_v62  ;;  %v3962_v44 = vsel %vm3866_vm5, %v3818_v5, %v3914_v15  ;;  %v3795_v56 = vadd.f32 %v6082_v60, %v3740_v23 }
 0x216   : > { %v4646_v0 = vpack.c.bf16 %v3962_v44, %v3962_v44  ;;  %vm3840_vm8 = vcmp.ge.f32.partialorder %v3792_v63, 0.0  ;;  %v3888_v41 = vmul.f32 0.01, %v3792_v63  ;;  %v3960_v19 = vsel %vm3864_vm6, %v3816_v38, %v3912_v14  ;;  %v3402_v10 = vld [vmem:[#allocation3 + $0xb0] sm:$0xff] }
 0x217   : > { %v3938_v29 = vsel %vm3842_vm7, %v3794_v62, %v3890_v7  ;;  %v4644_v13 = vpack.c.bf16 %v3960_v19, %v3960_v19  ;;  %vm3843_vm9 = vcmp.ge.f32.partialorder %v3795_v56, 0.0  ;;  %v3891_v35 = vmul.f32 0.01, %v3795_v56  ;;  %v3390_v9 = vld [vmem:[#allocation3 + $0x50] sm:$0xff]  ;;  %4741 = vmatprep.mubr.msk.bf16.mxu1 %vm3424_vm12, %v3402_v10 }
 0x218   : > { %v4622_v11 = vpack.c.bf16 %v3938_v29, %v3938_v29  ;;  %4203 = vst.msk [vmem:[%s5098_s28 + $0x78] sm:$0xf] %vm4172_vm14, %v4646_v0  ;;  %v3936_v22 = vsel %vm3840_vm8, %v3792_v63, %v3888_v41  ;;  %vm3867_vm10 = vcmp.ge.f32.partialorder %v3819_v24, 0.0  ;;  %v3915_v26 = vmul.f32 0.01, %v3819_v24  ;;  %4717 = vmatprep.mubr.msk.bf16.mxu0 %vm3424_vm12, %v3390_v9 }
 0x219   : > { %v4620_v25 = vpack.c.bf16 %v3936_v22, %v3936_v22  ;;  %4201 = vst.msk [vmem:[%s5098_s28 + $0x70] sm:$0xf] %vm4172_vm14, %v4644_v13  ;;  %v3939_v34 = vsel %vm3843_vm9, %v3795_v56, %v3891_v35  ;;  %v3738_v33 = vmul.f32 %v6076_v3, %v3554_v46  ;;  %v3817_v31 = vadd.f32 %v6082_v60, %v3762_v39 }
 0x21a   : > { %4179 = vst.msk [vmem:[%s5098_s28 + $0x18] sm:$0xf] %vm4172_vm14, %v4622_v11  ;;  %v4623_v28 = vpack.c.bf16 %v3939_v34, %v3939_v34  ;;  %v3963_v48 = vsel %vm3867_vm10, %v3819_v24, %v3915_v26  ;;  %v3403_v36 = vld [vmem:[#allocation3 + $0xb8] sm:$0xff] }
 0x21b   : > { %4177 = vst.msk [vmem:[%s5098_s28 + $0x10] sm:$0xf] %vm4172_vm14, %v4620_v25  ;;  %v4647_v37 = vpack.c.bf16 %v3963_v48, %v3963_v48  ;;  %v3793_v43 = vadd.f32 %v6082_v60, %v3738_v33  ;;  %v3391_v54 = vld [vmem:[#allocation3 + $0x58] sm:$0xff]  ;;  %4742 = vmatmul.mubr.msk.bf16.gmra.mrb[20].mxu1 %vm3424_vm12, %v3403_v36  ;;  %vm3865_vm0 = vcmp.ge.f32.partialorder %v3817_v31, 0.0  ;;  %v3913_v20 = vmul.f32 0.01, %v3817_v31 }
 0x21c   : > { %4180 = vst.msk [vmem:[%s5098_s28 + $0x1c] sm:$0xf] %vm4172_vm14, %v4623_v28  ;;  %4718 = vmatmul.mubr.msk.bf16.gmra.mrb[20].mxu0 %vm3424_vm12, %v3391_v54 }
 0x21d   : > { %4204 = vst.msk [vmem:[%s5098_s28 + $0x7c] sm:$0xf] %vm4172_vm14, %v4647_v37  ;;  %vm3841_vm11 = vcmp.ge.f32.partialorder %v3793_v43, 0.0  ;;  %v3889_v50 = vmul.f32 0.01, %v3793_v43  ;;  %v3961_v18 = vsel %vm3865_vm0, %v3817_v31, %v3913_v20 }
 0x21e   : > { %v4645_v57 = vpack.c.bf16 %v3961_v18, %v3961_v18 }
 0x21f   : > { %v3937_v27 = vsel %vm3841_vm11, %v3793_v43, %v3889_v50 }
 0x220   : > { %v4621_v49 = vpack.c.bf16 %v3937_v27, %v3937_v27  ;;  %4202 = vst.msk [vmem:[%s5098_s28 + $0x74] sm:$0xf] %vm4172_vm14, %v4645_v57 }
 0x222   : > { %4178 = vst.msk [vmem:[%s5098_s28 + $0x14] sm:$0xf] %vm4172_vm14, %v4621_v49 }
 0x246   : > { %v4731_v42 = vpop.f32.mrb[8].mxu1 }
 0x247   : > { %v3767_v21 = vmul.f32 %v4731_v42, %v6076_v3  ;;  %v3663_v2 = vpop.f32.mrb[9].mxu1  ;;  %v4707_v12 = vpop.f32.mrb[8].mxu0 }
 0x248   : > { %v3765_v40 = vmul.f32 %v6076_v3, %v3663_v2  ;;  %v4732_v1 = vpop.f32.mrb[10].mxu1  ;;  %v3743_v45 = vmul.f32 %v4707_v12, %v6076_v3  ;;  %v3567_v51 = vpop.f32.mrb[9].mxu0 }
 0x249   : > { %v3822_v61 = vadd.f32 %v6082_v60, %v3767_v21  ;;  %v3768_v47 = vmul.f32 %v4732_v1, %v6076_v3  ;;  %v3666_v53 = vpop.f32.mrb[11].mxu1  ;;  %v3741_v8 = vmul.f32 %v6076_v3, %v3567_v51  ;;  %v4708_v55 = vpop.f32.mrb[10].mxu0 }
 0x24a   : > { %v3820_v52 = vadd.f32 %v6082_v60, %v3765_v40  ;;  %v3766_v5 = vmul.f32 %v6076_v3, %v3666_v53  ;;  %v3798_v6 = vadd.f32 %v6082_v60, %v3743_v45  ;;  %v3744_v30 = vmul.f32 %v4708_v55, %v6076_v3  ;;  %v3570_v38 = vpop.f32.mrb[11].mxu0 }
 0x24b   : > { %vm3870_vm12 = vcmp.ge.f32.partialorder %v3822_v61, 0.0  ;;  %v3918_v4 = vmul.f32 0.01, %v3822_v61  ;;  %v3796_v16 = vadd.f32 %v6082_v60, %v3741_v8  ;;  %v3823_v58 = vadd.f32 %v6082_v60, %v3768_v47 }
 0x24c   : > { %vm3868_vm1 = vcmp.ge.f32.partialorder %v3820_v52, 0.0  ;;  %v3916_v59 = vmul.f32 0.01, %v3820_v52  ;;  %vm3846_vm2 = vcmp.ge.f32.partialorder %v3798_v6, 0.0  ;;  %v3894_v62 = vmul.f32 0.01, %v3798_v6 }
 0x24d   : > { %v3966_v15 = vsel %vm3870_vm12, %v3822_v61, %v3918_v4  ;;  %v3799_v23 = vadd.f32 %v6082_v60, %v3744_v30  ;;  %vm3844_vm3 = vcmp.ge.f32.partialorder %v3796_v16, 0.0  ;;  %v3892_v32 = vmul.f32 0.01, %v3796_v16 }
 0x24e   : > { %v4650_v46 = vpack.c.bf16 %v3966_v15, %v3966_v15  ;;  %v3964_v63 = vsel %vm3868_vm1, %v3820_v52, %v3916_v59  ;;  %v3942_v14 = vsel %vm3846_vm2, %v3798_v6, %v3894_v62  ;;  %vm3871_vm13 = vcmp.ge.f32.partialorder %v3823_v58, 0.0 }
 0x24f   : > { %v4648_v24 = vpack.c.bf16 %v3964_v63, %v3964_v63  ;;  %vm3847_vm4 = vcmp.ge.f32.partialorder %v3799_v23, 0.0  ;;  %v3895_v17 = vmul.f32 0.01, %v3799_v23  ;;  %v4626_v7 = vpack.c.bf16 %v3942_v14, %v3942_v14 }
 0x250   : > { %4207 = vst.msk [vmem:[%s5098_s28 + $0x88] sm:$0xf] %vm4172_vm14, %v4650_v46  ;;  %v3940_v44 = vsel %vm3844_vm3, %v3796_v16, %v3892_v32  ;;  %v3919_v56 = vmul.f32 0.01, %v3823_v58  ;;  %v3742_v19 = vmul.f32 %v6076_v3, %v3570_v38  ;;  %v3821_v29 = vadd.f32 %v6082_v60, %v3766_v5 }
 0x251   : > { %v4624_v0 = vpack.c.bf16 %v3940_v44, %v3940_v44  ;;  %4205 = vst.msk [vmem:[%s5098_s28 + $0x80] sm:$0xf] %vm4172_vm14, %v4648_v24  ;;  %v3943_v41 = vsel %vm3847_vm4, %v3799_v23, %v3895_v17  ;;  %4183 = vst.msk [vmem:[%s5098_s28 + $0x28] sm:$0xf] %vm4172_vm14, %v4626_v7 }
 0x252   : > { %v4627_v13 = vpack.c.bf16 %v3943_v41, %v3943_v41  ;;  %v3967_v35 = vsel %vm3871_vm13, %v3823_v58, %v3919_v56  ;;  %v3797_v11 = vadd.f32 %v6082_v60, %v3742_v19  ;;  %vm3869_vm15 = vcmp.ge.f32.partialorder %v3821_v29, 0.0 }
 0x253   : > { %4181 = vst.msk [vmem:[%s5098_s28 + $0x20] sm:$0xf] %vm4172_vm14, %v4624_v0  ;;  %v4651_v10 = vpack.c.bf16 %v3967_v35, %v3967_v35  ;;  %v3917_v22 = vmul.f32 0.01, %v3821_v29 }
 0x254   : > { %4184 = vst.msk [vmem:[%s5098_s28 + $0x2c] sm:$0xf] %vm4172_vm14, %v4627_v13  ;;  %vm3845_vm5 = vcmp.ge.f32.partialorder %v3797_v11, 0.0  ;;  %v3893_v26 = vmul.f32 0.01, %v3797_v11 }
 0x255   : > { %4208 = vst.msk [vmem:[%s5098_s28 + $0x8c] sm:$0xf] %vm4172_vm14, %v4651_v10  ;;  %v3965_v9 = vsel %vm3869_vm15, %v3821_v29, %v3917_v22 }
 0x256   : > { %v4649_v25 = vpack.c.bf16 %v3965_v9, %v3965_v9  ;;  %v3941_v34 = vsel %vm3845_vm5, %v3797_v11, %v3893_v26 }
 0x257   : > { %v4625_v33 = vpack.c.bf16 %v3941_v34, %v3941_v34 }
 0x258   : > { %4206 = vst.msk [vmem:[%s5098_s28 + $0x84] sm:$0xf] %vm4172_vm14, %v4649_v25 }
 0x259   : > { %4182 = vst.msk [vmem:[%s5098_s28 + $0x24] sm:$0xf] %vm4172_vm14, %v4625_v33 }
 0x27e   : > { %v4735_v39 = vpop.f32.mrb[12].mxu1 }
 0x27f   : > { %v3771_v28 = vmul.f32 %v4735_v39, %v6076_v3  ;;  %v3679_v48 = vpop.f32.mrb[13].mxu1  ;;  %v4711_v37 = vpop.f32.mrb[12].mxu0 }
 0x280   : > { %v3769_v43 = vmul.f32 %v6076_v3, %v3679_v48  ;;  %v4736_v31 = vpop.f32.mrb[14].mxu1  ;;  %v3747_v36 = vmul.f32 %v4711_v37, %v6076_v3  ;;  %v3583_v50 = vpop.f32.mrb[13].mxu0 }
 0x281   : > { %v3826_v54 = vadd.f32 %v6082_v60, %v3771_v28  ;;  %v3772_v20 = vmul.f32 %v4736_v31, %v6076_v3  ;;  %v3682_v27 = vpop.f32.mrb[15].mxu1  ;;  %v3745_v18 = vmul.f32 %v6076_v3, %v3583_v50  ;;  %v4712_v57 = vpop.f32.mrb[14].mxu0 }
 0x282   : > { %v3824_v49 = vadd.f32 %v6082_v60, %v3769_v43  ;;  %v3770_v42 = vmul.f32 %v6076_v3, %v3682_v27  ;;  %v3802_v21 = vadd.f32 %v6082_v60, %v3747_v36  ;;  %v3748_v12 = vmul.f32 %v4712_v57, %v6076_v3  ;;  %v3586_v40 = vpop.f32.mrb[15].mxu0 }
 0x283   : > { %vm3874_vm6 = vcmp.ge.f32.partialorder %v3826_v54, 0.0  ;;  %v3922_v2 = vmul.f32 0.01, %v3826_v54  ;;  %v3800_v1 = vadd.f32 %v6082_v60, %v3745_v18  ;;  %v3827_v61 = vadd.f32 %v6082_v60, %v3772_v20 }
 0x284   : > { %vm3872_vm7 = vcmp.ge.f32.partialorder %v3824_v49, 0.0  ;;  %v3920_v45 = vmul.f32 0.01, %v3824_v49  ;;  %vm3850_vm8 = vcmp.ge.f32.partialorder %v3802_v21, 0.0  ;;  %v3898_v51 = vmul.f32 0.01, %v3802_v21 }
 0x285   : > { %v3970_v47 = vsel %vm3874_vm6, %v3826_v54, %v3922_v2  ;;  %v3803_v53 = vadd.f32 %v6082_v60, %v3748_v12  ;;  %vm3848_vm9 = vcmp.ge.f32.partialorder %v3800_v1, 0.0  ;;  %v3896_v52 = vmul.f32 0.01, %v3800_v1 }
 0x286   : > { %v4654_v8 = vpack.c.bf16 %v3970_v47, %v3970_v47  ;;  %v3968_v55 = vsel %vm3872_vm7, %v3824_v49, %v3920_v45  ;;  %v3946_v5 = vsel %vm3850_vm8, %v3802_v21, %v3898_v51  ;;  %vm3875_vm11 = vcmp.ge.f32.partialorder %v3827_v61, 0.0 }
 0x287   : > { %v4652_v6 = vpack.c.bf16 %v3968_v55, %v3968_v55  ;;  %vm3851_vm10 = vcmp.ge.f32.partialorder %v3803_v53, 0.0  ;;  %v3899_v4 = vmul.f32 0.01, %v3803_v53  ;;  %v4630_v30 = vpack.c.bf16 %v3946_v5, %v3946_v5 }
 0x288   : > { %4211 = vst.msk [vmem:[%s5098_s28 + $0x98] sm:$0xf] %vm4172_vm14, %v4654_v8  ;;  %v3944_v38 = vsel %vm3848_vm9, %v3800_v1, %v3896_v52  ;;  %v3923_v16 = vmul.f32 0.01, %v3827_v61  ;;  %v3746_v62 = vmul.f32 %v6076_v3, %v3586_v40  ;;  %v3825_v15 = vadd.f32 %v6082_v60, %v3770_v42 }
 0x289   : > { %v4628_v59 = vpack.c.bf16 %v3944_v38, %v3944_v38  ;;  %4209 = vst.msk [vmem:[%s5098_s28 + $0x90] sm:$0xf] %vm4172_vm14, %v4652_v6  ;;  %v3947_v58 = vsel %vm3851_vm10, %v3803_v53, %v3899_v4  ;;  %4187 = vst.msk [vmem:[%s5098_s28 + $0x38] sm:$0xf] %vm4172_vm14, %v4630_v30 }
 0x28a   : > { %v4631_v23 = vpack.c.bf16 %v3947_v58, %v3947_v58  ;;  %v3971_v46 = vsel %vm3875_vm11, %v3827_v61, %v3923_v16  ;;  %v3801_v63 = vadd.f32 %v6082_v60, %v3746_v62  ;;  %vm3873_vm0 = vcmp.ge.f32.partialorder %v3825_v15, 0.0 }
 0x28b   : > { %4185 = vst.msk [vmem:[%s5098_s28 + $0x30] sm:$0xf] %vm4172_vm14, %v4628_v59  ;;  %v4655_v32 = vpack.c.bf16 %v3971_v46, %v3971_v46  ;;  %v3921_v14 = vmul.f32 0.01, %v3825_v15 }
 0x28c   : > { %4188 = vst.msk [vmem:[%s5098_s28 + $0x3c] sm:$0xf] %vm4172_vm14, %v4631_v23  ;;  %vm3849_vm12 = vcmp.ge.f32.partialorder %v3801_v63, 0.0  ;;  %v3897_v24 = vmul.f32 0.01, %v3801_v63 }
 0x28d   : > { %4212 = vst.msk [vmem:[%s5098_s28 + $0x9c] sm:$0xf] %vm4172_vm14, %v4655_v32  ;;  %v3969_v17 = vsel %vm3873_vm0, %v3825_v15, %v3921_v14 }
 0x28e   : > { %v4653_v7 = vpack.c.bf16 %v3969_v17, %v3969_v17  ;;  %v3945_v44 = vsel %vm3849_vm12, %v3801_v63, %v3897_v24 }
 0x28f   : > { %v4629_v56 = vpack.c.bf16 %v3945_v44, %v3945_v44 }
 0x290   : > { %4210 = vst.msk [vmem:[%s5098_s28 + $0x94] sm:$0xf] %vm4172_vm14, %v4653_v7 }
 0x291   : > { %4186 = vst.msk [vmem:[%s5098_s28 + $0x34] sm:$0xf] %vm4172_vm14, %v4629_v56 }
 0x2b6   : > { %v4739_v0 = vpop.f32.mrb[16].mxu1 }
 0x2b7   : > { %v4715_v41 = vpop.f32.mrb[16].mxu0  ;;  %v3775_v19 = vmul.f32 %v4739_v0, %v6076_v3  ;;  %v3695_v29 = vpop.f32.mrb[17].mxu1 }
 0x2b8   : > { %v3751_v13 = vmul.f32 %v4715_v41, %v6076_v3  ;;  %v3599_v35 = vpop.f32.mrb[17].mxu0  ;;  %v3773_v10 = vmul.f32 %v6076_v3, %v3695_v29  ;;  %v4740_v11 = vpop.f32.mrb[18].mxu1 }
 0x2b9   : > { %v3830_v22 = vadd.f32 %v6082_v60, %v3775_v19  ;;  %v3749_v26 = vmul.f32 %v6076_v3, %v3599_v35  ;;  %v4716_v9 = vpop.f32.mrb[18].mxu0  ;;  %v3776_v25 = vmul.f32 %v4740_v11, %v6076_v3  ;;  %v3698_v34 = vpop.f32.mrb[19].mxu1 }
 0x2ba   : > { %v3806_v33 = vadd.f32 %v6082_v60, %v3751_v13  ;;  %v3828_v39 = vadd.f32 %v6082_v60, %v3773_v10  ;;  %v3752_v28 = vmul.f32 %v4716_v9, %v6076_v3  ;;  %v3602_v48 = vpop.f32.mrb[19].mxu0  ;;  %v3774_v37 = vmul.f32 %v6076_v3, %v3698_v34 }
 0x2bb   : > { %vm3878_vm1 = vcmp.ge.f32.partialorder %v3830_v22, 0.0  ;;  %v3926_v43 = vmul.f32 0.01, %v3830_v22  ;;  %v3804_v31 = vadd.f32 %v6082_v60, %v3749_v26  ;;  %v3831_v36 = vadd.f32 %v6082_v60, %v3776_v25 }
 0x2bc   : > { %vm3854_vm2 = vcmp.ge.f32.partialorder %v3806_v33, 0.0  ;;  %v3902_v54 = vmul.f32 0.01, %v3806_v33  ;;  %vm3876_vm3 = vcmp.ge.f32.partialorder %v3828_v39, 0.0  ;;  %v3924_v50 = vmul.f32 0.01, %v3828_v39 }
 0x2bd   : > { %v3974_v20 = vsel %vm3878_vm1, %v3830_v22, %v3926_v43  ;;  %vm3852_vm4 = vcmp.ge.f32.partialorder %v3804_v31, 0.0  ;;  %v3900_v27 = vmul.f32 0.01, %v3804_v31  ;;  %v3807_v18 = vadd.f32 %v6082_v60, %v3752_v28 }
 0x2be   : > { %v3950_v49 = vsel %vm3854_vm2, %v3806_v33, %v3902_v54  ;;  %v4658_v57 = vpack.c.bf16 %v3974_v20, %v3974_v20  ;;  %v3972_v42 = vsel %vm3876_vm3, %v3828_v39, %v3924_v50  ;;  %vm3879_vm13 = vcmp.ge.f32.partialorder %v3831_v36, 0.0 }
 0x2bf   : > { %v4634_v21 = vpack.c.bf16 %v3950_v49, %v3950_v49  ;;  %v3948_v2 = vsel %vm3852_vm4, %v3804_v31, %v3900_v27  ;;  %v4656_v12 = vpack.c.bf16 %v3972_v42, %v3972_v42  ;;  %vm3855_vm15 = vcmp.ge.f32.partialorder %v3807_v18, 0.0 }
 0x2c0   : > { %4215 = vst.msk [vmem:[%s5098_s28 + $0xa8] sm:$0xf] %vm4172_vm14, %v4658_v57  ;;  %v4632_v40 = vpack.c.bf16 %v3948_v2, %v3948_v2  ;;  %v3903_v1 = vmul.f32 0.01, %v3807_v18  ;;  %v3927_v45 = vmul.f32 0.01, %v3831_v36  ;;  %v3750_v61 = vmul.f32 %v6076_v3, %v3602_v48 }
 0x2c1   : > { %4191 = vst.msk [vmem:[%s5098_s28 + $0x48] sm:$0xf] %vm4172_vm14, %v4634_v21  ;;  %4213 = vst.msk [vmem:[%s5098_s28 + $0xa0] sm:$0xf] %vm4172_vm14, %v4656_v12  ;;  %v3829_v51 = vadd.f32 %v6082_v60, %v3774_v37 }
 0x2c2   : > { %4189 = vst.msk [vmem:[%s5098_s28 + $0x40] sm:$0xf] %vm4172_vm14, %v4632_v40  ;;  %v3951_v47 = vsel %vm3855_vm15, %v3807_v18, %v3903_v1  ;;  %v3975_v53 = vsel %vm3879_vm13, %v3831_v36, %v3927_v45  ;;  %v3805_v8 = vadd.f32 %v6082_v60, %v3750_v61 }
 0x2c3   : > { %v4635_v52 = vpack.c.bf16 %v3951_v47, %v3951_v47  ;;  %v4659_v55 = vpack.c.bf16 %v3975_v53, %v3975_v53  ;;  %vm3877_vm5 = vcmp.ge.f32.partialorder %v3829_v51, 0.0  ;;  %v3925_v5 = vmul.f32 0.01, %v3829_v51 }
 0x2c4   : > { %vm3853_vm6 = vcmp.ge.f32.partialorder %v3805_v8, 0.0  ;;  %v3901_v6 = vmul.f32 0.01, %v3805_v8 }
 0x2c5   : > { %4192 = vst.msk [vmem:[%s5098_s28 + $0x4c] sm:$0xf] %vm4172_vm14, %v4635_v52  ;;  %4216 = vst.msk [vmem:[%s5098_s28 + $0xac] sm:$0xf] %vm4172_vm14, %v4659_v55  ;;  %v3973_v4 = vsel %vm3877_vm5, %v3829_v51, %v3925_v5 }
 0x2c6   : > { %v3949_v30 = vsel %vm3853_vm6, %v3805_v8, %v3901_v6  ;;  %v4657_v38 = vpack.c.bf16 %v3973_v4, %v3973_v4 }
 0x2c7   : > { %v4633_v16 = vpack.c.bf16 %v3949_v30, %v3949_v30 }
 0x2c8   : > { %4214 = vst.msk [vmem:[%s5098_s28 + $0xa4] sm:$0xf] %vm4172_vm14, %v4657_v38 }
 0x2c9   : > { %4190 = vst.msk [vmem:[%s5098_s28 + $0x44] sm:$0xf] %vm4172_vm14, %v4633_v16 }
 0x2ee   : > { %v4743_v59 = vpop.f32.mrb[20].mxu1 }
 0x2ef   : > { %v4719_v58 = vpop.f32.mrb[20].mxu0  ;;  %v3779_v62 = vmul.f32 %v4743_v59, %v6076_v3  ;;  %v3711_v15 = vpop.f32.mrb[21].mxu1 }
 0x2f0   : > { %v3755_v23 = vmul.f32 %v4719_v58, %v6076_v3  ;;  %v3615_v46 = vpop.f32.mrb[21].mxu0  ;;  %v3777_v32 = vmul.f32 %v6076_v3, %v3711_v15  ;;  %v4744_v63 = vpop.f32.mrb[22].mxu1 }
 0x2f1   : > { %v3834_v14 = vadd.f32 %v6082_v60, %v3779_v62  ;;  %v3753_v24 = vmul.f32 %v6076_v3, %v3615_v46  ;;  %v4720_v17 = vpop.f32.mrb[22].mxu0  ;;  %v3780_v7 = vmul.f32 %v4744_v63, %v6076_v3  ;;  %v3714_v44 = vpop.f32.mrb[23].mxu1 }
 0x2f2   : > { %v3810_v56 = vadd.f32 %v6082_v60, %v3755_v23  ;;  %v3832_v0 = vadd.f32 %v6082_v60, %v3777_v32  ;;  %v3756_v41 = vmul.f32 %v4720_v17, %v6076_v3  ;;  %v3618_v19 = vpop.f32.mrb[23].mxu0  ;;  %v3778_v29 = vmul.f32 %v6076_v3, %v3714_v44 }
 0x2f3   : > { %vm3882_vm7 = vcmp.ge.f32.partialorder %v3834_v14, 0.0  ;;  %v3930_v13 = vmul.f32 0.01, %v3834_v14  ;;  %v3808_v35 = vadd.f32 %v6082_v60, %v3753_v24  ;;  %v3835_v10 = vadd.f32 %v6082_v60, %v3780_v7 }
 0x2f4   : > { %vm3858_vm8 = vcmp.ge.f32.partialorder %v3810_v56, 0.0  ;;  %v3906_v11 = vmul.f32 0.01, %v3810_v56  ;;  %vm3880_vm9 = vcmp.ge.f32.partialorder %v3832_v0, 0.0  ;;  %v3928_v22 = vmul.f32 0.01, %v3832_v0 }
 0x2f5   : > { %v3978_v26 = vsel %vm3882_vm7, %v3834_v14, %v3930_v13  ;;  %vm3856_vm10 = vcmp.ge.f32.partialorder %v3808_v35, 0.0  ;;  %v3904_v9 = vmul.f32 0.01, %v3808_v35  ;;  %v3811_v25 = vadd.f32 %v6082_v60, %v3756_v41 }
 0x2f6   : > { %v3954_v34 = vsel %vm3858_vm8, %v3810_v56, %v3906_v11  ;;  %v4662_v33 = vpack.c.bf16 %v3978_v26, %v3978_v26  ;;  %v3976_v39 = vsel %vm3880_vm9, %v3832_v0, %v3928_v22  ;;  %vm3883_vm11 = vcmp.ge.f32.partialorder %v3835_v10, 0.0 }
 0x2f7   : > { %v4638_v28 = vpack.c.bf16 %v3954_v34, %v3954_v34  ;;  %v3952_v48 = vsel %vm3856_vm10, %v3808_v35, %v3904_v9  ;;  %v4660_v37 = vpack.c.bf16 %v3976_v39, %v3976_v39  ;;  %vm3859_vm0 = vcmp.ge.f32.partialorder %v3811_v25, 0.0 }
 0x2f8   : > { %4219 = vst.msk [vmem:[%s5098_s28 + $0xb8] sm:$0xf] %vm4172_vm14, %v4662_v33  ;;  %v4636_v43 = vpack.c.bf16 %v3952_v48, %v3952_v48  ;;  %v3907_v31 = vmul.f32 0.01, %v3811_v25  ;;  %v3931_v36 = vmul.f32 0.01, %v3835_v10  ;;  %v3754_v54 = vmul.f32 %v6076_v3, %v3618_v19 }
 0x2f9   : > { %4195 = vst.msk [vmem:[%s5098_s28 + $0x58] sm:$0xf] %vm4172_vm14, %v4638_v28  ;;  %4217 = vst.msk [vmem:[%s5098_s28 + $0xb0] sm:$0xf] %vm4172_vm14, %v4660_v37  ;;  %v3833_v50 = vadd.f32 %v6082_v60, %v3778_v29 }
 0x2fa   : > { %4193 = vst.msk [vmem:[%s5098_s28 + $0x50] sm:$0xf] %vm4172_vm14, %v4636_v43  ;;  %v3955_v20 = vsel %vm3859_vm0, %v3811_v25, %v3907_v31  ;;  %v3979_v27 = vsel %vm3883_vm11, %v3835_v10, %v3931_v36  ;;  %v3809_v18 = vadd.f32 %v6082_v60, %v3754_v54 }
 0x2fb   : > { %v4639_v49 = vpack.c.bf16 %v3955_v20, %v3955_v20  ;;  %v4663_v57 = vpack.c.bf16 %v3979_v27, %v3979_v27  ;;  %vm3881_vm12 = vcmp.ge.f32.partialorder %v3833_v50, 0.0  ;;  %v3929_v42 = vmul.f32 0.01, %v3833_v50 }
 0x2fc   : > { %vm3857_vm1 = vcmp.ge.f32.partialorder %v3809_v18, 0.0  ;;  %v3905_v3 = vmul.f32 0.01, %v3809_v18 }
 0x2fd   : > { %4196 = vst.msk [vmem:[%s5098_s28 + $0x5c] sm:$0xf] %vm4172_vm14, %v4639_v49  ;;  %4220 = vst.msk [vmem:[%s5098_s28 + $0xbc] sm:$0xf] %vm4172_vm14, %v4663_v57  ;;  %v3977_v21 = vsel %vm3881_vm12, %v3833_v50, %v3929_v42 }
 0x2fe   : > { %v3953_v2 = vsel %vm3857_vm1, %v3809_v18, %v3905_v3  ;;  %v4661_v12 = vpack.c.bf16 %v3977_v21, %v3977_v21 }
 0x2ff   : > { %v4637_v40 = vpack.c.bf16 %v3953_v2, %v3953_v2 }
 0x300   : > { %4218 = vst.msk [vmem:[%s5098_s28 + $0xb4] sm:$0xf] %vm4172_vm14, %v4661_v12 }
 0x301   : > { %4194 = vst.msk [vmem:[%s5098_s28 + $0x54] sm:$0xf] %vm4172_vm14, %v4637_v40 }
 0x302 PF: > { %s14_s17 = sadd.s32 1, %s5036_s17   ;;  %s6330_s15 = smov %s5032_s16 }
 0x303   : > { %p11_p5 = scmp.ge.s32.totalorder %s14_s17, 4   ;;  %s6331_s16 = smov %s6333_s18 }
 0x305   :  { %13 = sbr.rel (!%p11_p5) target bundleno = 2 (0x2), region = 102 }
 0x30c   :  { %4250 = vsyncmov [#allocation4] }
 0x30f   :  { %s4251_s24 = vpop.sfrf %4250 }
 0x310   :  { %p4615_p6 = scmp.ne.s32.totalorder %s4251_s24, 0 }
 0x312   :  { %4255 = shalt.err (%p4615_p6)  }

</bundles_post_ra>
